<compile_context>
chip_gen: v6e
topology: v6e:2x2x1
jax: 0.10.0
libtpu: 0.0.40
codegen_flags: <defaults>
</compile_context>

<pallas_src>
import functools

import jax
import jax.numpy as jnp
from jax import lax
from jax.experimental import pallas as pl
from jax.experimental.pallas import tpu as pltpu


def _ibasic_block_kernel(x_ref, w1_ref, w2_ref,
                         bn1s_ref, bn1b_ref,
                         bn2s_ref, bn2b_ref, alpha_ref,
                         bn3s_ref, bn3b_ref,
                         out_ref,
                         pad_ref,
                         *, H, W, C):
    """One batch element per grid step.

    Block shapes:
      x_ref / out_ref : (1, H, W, C)   (NHWC, channels lane-dense)
      w1_ref / w2_ref : (3, 3, C, C)   (HWIO, in VMEM)
      bn*/alpha refs  : (1, C)
      pad_ref scratch : (H+2, W+2, C) f32 — shared padded buffer for both convs.
    """
    f32 = jnp.float32

    # Zero only the 1-pixel halo (interior is fully overwritten below).
    # Done every grid step so the kernel stays correct when the "parallel"
    # batch axis is sharded across TensorCores (scratch is per-core).
    zrow = jnp.zeros((1, W + 2, C), f32)
    zcol = jnp.zeros((H + 2, 1, C), f32)
    pad_ref[0:1, :, :] = zrow
    pad_ref[H + 1:H + 2, :, :] = zrow
    pad_ref[:, 0:1, :] = zcol
    pad_ref[:, W + 1:W + 2, :] = zcol

    x = x_ref[0]                                           # (H, W, C) f32

    # ---- bn1 (folded, eval mode) -> padded buffer interior ----
    pad_ref[1:H + 1, 1:W + 1, :] = x * bn1s_ref[...] + bn1b_ref[...]

    # ---- conv1: 9 accumulated channel-dim matmuls on the MXU ----
    acc = jnp.zeros((H * W, C), f32)
    for ky in range(3):
        for kx in range(3):
            tap = pad_ref[ky:ky + H, kx:kx + W, :].reshape(H * W, C)
            acc = acc + jnp.dot(tap, w1_ref[ky, kx],
                                preferred_element_type=f32)

    # ---- fused epilogue: bn2 + per-channel PReLU (one lane-dense pass) ----
    h = acc * bn2s_ref[...] + bn2b_ref[...]
    h = jnp.where(h >= 0.0, h, alpha_ref[...] * h)

    # Feed conv2 through the same padded buffer (halo is still zero).
    pad_ref[1:H + 1, 1:W + 1, :] = h.reshape(H, W, C)

    # ---- conv2: 9 accumulated channel-dim matmuls on the MXU ----
    acc2 = jnp.zeros((H * W, C), f32)
    for ky in range(3):
        for kx in range(3):
            tap = pad_ref[ky:ky + H, kx:kx + W, :].reshape(H * W, C)
            acc2 = acc2 + jnp.dot(tap, w2_ref[ky, kx],
                                  preferred_element_type=f32)

    # ---- fused epilogue: bn3 + identity residual ----
    y = acc2 * bn3s_ref[...] + bn3b_ref[...] + x.reshape(H * W, C)
    out_ref[0] = y.reshape(H, W, C).astype(out_ref.dtype)


def ibasic_block_pallas(x, params):
    """x: (N, C, H, W) float32.  stride=1, groups=1, downsample=None, eval BN."""
    N, C, H, W = x.shape
    Cout = params["w1"].shape[0]
    assert Cout == C, "identity residual requires planes == inplanes (no downsample)"

    # NHWC activations (channels on the 128-lane axis); HWIO weights.
    x_nhwc = jnp.transpose(x, (0, 2, 3, 1))
    w1 = jnp.transpose(params["w1"], (2, 3, 1, 0)).astype(jnp.float32)
    w2 = jnp.transpose(params["w2"], (2, 3, 1, 0)).astype(jnp.float32)

    def row(v):
        return v.reshape(1, -1).astype(jnp.float32)

    kernel = functools.partial(_ibasic_block_kernel, H=H, W=W, C=C)

    act_spec = pl.BlockSpec((1, H, W, C), lambda n: (n, 0, 0, 0))
    w_spec = pl.BlockSpec((3, 3, C, C), lambda n: (0, 0, 0, 0))
    vec_spec = pl.BlockSpec((1, C), lambda n: (0, 0))

    out_nhwc = pl.pallas_call(
        kernel,
        out_shape=jax.ShapeDtypeStruct((N, H, W, C), jnp.float32),
        grid=(N,),
        in_specs=[act_spec, w_spec, w_spec] + [vec_spec] * 7,
        out_specs=act_spec,
        scratch_shapes=[pltpu.VMEM((H + 2, W + 2, C), jnp.float32)],
        compiler_params=pltpu.CompilerParams(
            dimension_semantics=("parallel",)),
    )(x_nhwc, w1, w2,
      row(params["bn1_scale"]), row(params["bn1_shift"]),
      row(params["bn2_scale"]), row(params["bn2_shift"]),
      row(params["prelu_alpha"]),
      row(params["bn3_scale"]), row(params["bn3_shift"]))

    return jnp.transpose(out_nhwc, (0, 3, 1, 2))


# ----------------------------- reference (plain JAX) -----------------------------
def ibasic_block_ref(x, params):
    def bn(t, s, b):
        return t * s[None, :, None, None] + b[None, :, None, None]

    def conv3x3(t, w):
        return lax.conv_general_dilated(
            t, w, window_strides=(1, 1), padding=[(1, 1), (1, 1)],
            dimension_numbers=("NCHW", "OIHW", "NCHW"))

    out = bn(x, params["bn1_scale"], params["bn1_shift"])
    out = conv3x3(out, params["w1"])
    out = bn(out, params["bn2_scale"], params["bn2_shift"])
    a = params["prelu_alpha"][None, :, None, None]
    out = jnp.where(out >= 0.0, out, a * out)
    out = conv3x3(out, params["w2"])
    out = bn(out, params["bn3_scale"], params["bn3_shift"])
    return out + x


# ----------------------------- parameter construction -----------------------------
def make_params(key, inplanes, planes, eps=1e-5):
    ks = jax.random.split(key, 16)

    def fold_bn(kg, kb, km, kv, c):
        gamma = jax.random.normal(kg, (c,), jnp.float32) * 0.1 + 1.0
        beta = jax.random.normal(kb, (c,), jnp.float32) * 0.1
        mean = jax.random.normal(km, (c,), jnp.float32) * 0.1
        var = jax.random.uniform(kv, (c,), jnp.float32, 0.5, 1.5)
        scale = gamma / jnp.sqrt(var + eps)
        shift = beta - mean * scale
        return scale, shift

    bn1_scale, bn1_shift = fold_bn(ks[0], ks[1], ks[2], ks[3], inplanes)
    bn2_scale, bn2_shift = fold_bn(ks[4], ks[5], ks[6], ks[7], planes)
    bn3_scale, bn3_shift = fold_bn(ks[8], ks[9], ks[10], ks[11], planes)

    w1 = jax.random.normal(ks[12], (planes, inplanes, 3, 3), jnp.float32) * 0.1
    w2 = jax.random.normal(ks[13], (planes, planes, 3, 3), jnp.float32) * 0.1
    prelu_alpha = jnp.full((planes,), 0.25, jnp.float32)  # nn.PReLU default init

    return dict(bn1_scale=bn1_scale, bn1_shift=bn1_shift,
                bn2_scale=bn2_scale, bn2_shift=bn2_shift,
                bn3_scale=bn3_scale, bn3_shift=bn3_shift,
                w1=w1, w2=w2, prelu_alpha=prelu_alpha)


if __name__ == "__main__":
    key = jax.random.PRNGKey(0)
    kx_, kp = jax.random.split(key)

    N, C, Hs, Ws = 2, 4, 16, 16          # inplanes = planes = 4, stride = 1
    x = jax.random.normal(kx_, (N, C, Hs, Ws), jnp.float32)
    params = make_params(kp, inplanes=C, planes=C)

    out = jax.block_until_ready(ibasic_block_pallas(x, params))
    ref = jax.block_until_ready(ibasic_block_ref(x, params))

    assert out.shape == (N, C, Hs, Ws)
    # The MXU's default f32 matmul precision may use bf16 passes, so compare at
    # a tolerance that covers that (a functional bug would show up as O(0.1-1)).
    max_err = float(jnp.max(jnp.abs(out - ref)))
    assert jnp.allclose(out, ref, atol=2e-2, rtol=2e-2), (
        f"Pallas output does not match JAX reference, max |err| = {max_err}")

    print("KERNEL_OK")
</pallas_src>

<mosaic_0001>
module attributes {stable_mosaic.version = 11 : i64} {
  func.func @_ibasic_block_kernel(%arg0: i32, %arg1: memref<1x16x16x4xf32, #tpu.memory_space<vmem>>, %arg2: memref<3x3x4x4xf32, #tpu.memory_space<vmem>>, %arg3: memref<3x3x4x4xf32, #tpu.memory_space<vmem>>, %arg4: memref<1x4xf32, #tpu.memory_space<vmem>>, %arg5: memref<1x4xf32, #tpu.memory_space<vmem>>, %arg6: memref<1x4xf32, #tpu.memory_space<vmem>>, %arg7: memref<1x4xf32, #tpu.memory_space<vmem>>, %arg8: memref<1x4xf32, #tpu.memory_space<vmem>>, %arg9: memref<1x4xf32, #tpu.memory_space<vmem>>, %arg10: memref<1x4xf32, #tpu.memory_space<vmem>>, %arg11: memref<1x16x16x4xf32, #tpu.memory_space<vmem>>, %arg12: memref<18x18x4xf32, #tpu.memory_space<vmem>>) attributes {dimension_semantics = [#tpu.dimension_semantics<parallel>], iteration_bounds = array<i64: 2>, scalar_prefetch = 0 : i64, scratch_operands = 1 : i64, tpu.core_type = #tpu.core_type<tc>, window_params = [{transform_indices = @transform_0, window_bounds = array<i64: 1, 16, 16, 4>}, {pipeline_mode = #tpu.pipeline_mode<synchronous>, transform_indices = @transform_1, window_bounds = array<i64: 3, 3, 4, 4>}, {pipeline_mode = #tpu.pipeline_mode<synchronous>, transform_indices = @transform_2, window_bounds = array<i64: 3, 3, 4, 4>}, {pipeline_mode = #tpu.pipeline_mode<synchronous>, transform_indices = @transform_3, window_bounds = array<i64: 1, 4>}, {pipeline_mode = #tpu.pipeline_mode<synchronous>, transform_indices = @transform_4, window_bounds = array<i64: 1, 4>}, {pipeline_mode = #tpu.pipeline_mode<synchronous>, transform_indices = @transform_5, window_bounds = array<i64: 1, 4>}, {pipeline_mode = #tpu.pipeline_mode<synchronous>, transform_indices = @transform_6, window_bounds = array<i64: 1, 4>}, {pipeline_mode = #tpu.pipeline_mode<synchronous>, transform_indices = @transform_7, window_bounds = array<i64: 1, 4>}, {pipeline_mode = #tpu.pipeline_mode<synchronous>, transform_indices = @transform_8, window_bounds = array<i64: 1, 4>}, {pipeline_mode = #tpu.pipeline_mode<synchronous>, transform_indices = @transform_9, window_bounds = array<i64: 1, 4>}, {transform_indices = @transform_10, window_bounds = array<i64: 1, 16, 16, 4>}]} {
    %cst = arith.constant 0.000000e+00 : f32
    %0 = vector.broadcast %cst : f32 to vector<1x18x4xf32>
    %cst_0 = arith.constant 0.000000e+00 : f32
    %1 = vector.broadcast %cst_0 : f32 to vector<18x1x4xf32>
    %c0 = arith.constant 0 : index
    %c0_1 = arith.constant 0 : index
    %c0_2 = arith.constant 0 : index
    %2 = vector.load %arg12[%c0, %c0_1, %c0_2] : memref<18x18x4xf32, #tpu.memory_space<vmem>>, vector<1x18x4xf32>
    tpu.vector_store %arg12[%c0, %c0_1, %c0_2], %0 {strides = array<i32>} : memref<18x18x4xf32, #tpu.memory_space<vmem>>, vector<1x18x4xf32>,
    %c17 = arith.constant 17 : index
    %c0_3 = arith.constant 0 : index
    %c0_4 = arith.constant 0 : index
    %3 = vector.load %arg12[%c17, %c0_3, %c0_4] : memref<18x18x4xf32, #tpu.memory_space<vmem>>, vector<1x18x4xf32>
    tpu.vector_store %arg12[%c17, %c0_3, %c0_4], %0 {strides = array<i32>} : memref<18x18x4xf32, #tpu.memory_space<vmem>>, vector<1x18x4xf32>,
    %c0_5 = arith.constant 0 : index
    %c0_6 = arith.constant 0 : index
    %c0_7 = arith.constant 0 : index
    %4 = vector.load %arg12[%c0_5, %c0_6, %c0_7] : memref<18x18x4xf32, #tpu.memory_space<vmem>>, vector<18x1x4xf32>
    tpu.vector_store %arg12[%c0_5, %c0_6, %c0_7], %1 {strides = array<i32>} : memref<18x18x4xf32, #tpu.memory_space<vmem>>, vector<18x1x4xf32>,
    %c0_8 = arith.constant 0 : index
    %c17_9 = arith.constant 17 : index
    %c0_10 = arith.constant 0 : index
    %5 = vector.load %arg12[%c0_8, %c17_9, %c0_10] : memref<18x18x4xf32, #tpu.memory_space<vmem>>, vector<18x1x4xf32>
    tpu.vector_store %arg12[%c0_8, %c17_9, %c0_10], %1 {strides = array<i32>} : memref<18x18x4xf32, #tpu.memory_space<vmem>>, vector<18x1x4xf32>,
    %c0_11 = arith.constant 0 : index
    %c0_12 = arith.constant 0 : index
    %c0_13 = arith.constant 0 : index
    %c0_14 = arith.constant 0 : index
    %6 = vector.load %arg1[%c0_11, %c0_12, %c0_13, %c0_14] : memref<1x16x16x4xf32, #tpu.memory_space<vmem>>, vector<1x16x16x4xf32>
    %7 = vector.shape_cast %6 : vector<1x16x16x4xf32> to vector<16x16x4xf32>
    %c0_15 = arith.constant 0 : index
    %c0_16 = arith.constant 0 : index
    %8 = vector.load %arg4[%c0_15, %c0_16] : memref<1x4xf32, #tpu.memory_space<vmem>>, vector<1x4xf32>
    %9 = vector.shape_cast %8 : vector<1x4xf32> to vector<1x1x4xf32>
    %10 = vector.broadcast %9 : vector<1x1x4xf32> to vector<16x16x4xf32>
    %11 = arith.mulf %7, %10 : vector<16x16x4xf32>
    %c0_17 = arith.constant 0 : index
    %c0_18 = arith.constant 0 : index
    %12 = vector.load %arg5[%c0_17, %c0_18] : memref<1x4xf32, #tpu.memory_space<vmem>>, vector<1x4xf32>
    %13 = vector.shape_cast %12 : vector<1x4xf32> to vector<1x1x4xf32>
    %14 = vector.broadcast %13 : vector<1x1x4xf32> to vector<16x16x4xf32>
    %15 = arith.addf %11, %14 : vector<16x16x4xf32>
    %c1 = arith.constant 1 : index
    %c1_19 = arith.constant 1 : index
    %c0_20 = arith.constant 0 : index
    %16 = vector.load %arg12[%c1, %c1_19, %c0_20] : memref<18x18x4xf32, #tpu.memory_space<vmem>>, vector<16x16x4xf32>
    tpu.vector_store %arg12[%c1, %c1_19, %c0_20], %15 {strides = array<i32>} : memref<18x18x4xf32, #tpu.memory_space<vmem>>, vector<16x16x4xf32>,
    %cst_21 = arith.constant 0.000000e+00 : f32
    %17 = vector.broadcast %cst_21 : f32 to vector<256x4xf32>
    %c0_22 = arith.constant 0 : index
    %c0_23 = arith.constant 0 : index
    %c0_24 = arith.constant 0 : index
    %18 = vector.load %arg12[%c0_22, %c0_23, %c0_24] : memref<18x18x4xf32, #tpu.memory_space<vmem>>, vector<16x16x4xf32>
    %19 = vector.shape_cast %18 : vector<16x16x4xf32> to vector<256x4xf32>
    %c0_25 = arith.constant 0 : index
    %c0_26 = arith.constant 0 : index
    %c0_27 = arith.constant 0 : index
    %c0_28 = arith.constant 0 : index
    %20 = vector.load %arg2[%c0_25, %c0_26, %c0_27, %c0_28] : memref<3x3x4x4xf32, #tpu.memory_space<vmem>>, vector<1x1x4x4xf32>
    %21 = vector.shape_cast %20 : vector<1x1x4x4xf32> to vector<4x4xf32>
    %cst_29 = arith.constant dense<0.000000e+00> : vector<256x4xf32>
    %22 = tpu.matmul %19, %21, %cst_29 {dimension_numbers = #tpu.dot_dimension_numbers<[1], [0], [0], [1], [0, 0, 1, 1], [], []>} : vector<256x4xf32>, vector<4x4xf32>, vector<256x4xf32> -> vector<256x4xf32>
    %23 = arith.addf %17, %22 : vector<256x4xf32>
    %c0_30 = arith.constant 0 : index
    %c1_31 = arith.constant 1 : index
    %c0_32 = arith.constant 0 : index
    %24 = vector.load %arg12[%c0_30, %c1_31, %c0_32] : memref<18x18x4xf32, #tpu.memory_space<vmem>>, vector<16x16x4xf32>
    %25 = vector.shape_cast %24 : vector<16x16x4xf32> to vector<256x4xf32>
    %c0_33 = arith.constant 0 : index
    %c1_34 = arith.constant 1 : index
    %c0_35 = arith.constant 0 : index
    %c0_36 = arith.constant 0 : index
    %26 = vector.load %arg2[%c0_33, %c1_34, %c0_35, %c0_36] : memref<3x3x4x4xf32, #tpu.memory_space<vmem>>, vector<1x1x4x4xf32>
    %27 = vector.shape_cast %26 : vector<1x1x4x4xf32> to vector<4x4xf32>
    %cst_37 = arith.constant dense<0.000000e+00> : vector<256x4xf32>
    %28 = tpu.matmul %25, %27, %cst_37 {dimension_numbers = #tpu.dot_dimension_numbers<[1], [0], [0], [1], [0, 0, 1, 1], [], []>} : vector<256x4xf32>, vector<4x4xf32>, vector<256x4xf32> -> vector<256x4xf32>
    %29 = arith.addf %23, %28 : vector<256x4xf32>
    %c0_38 = arith.constant 0 : index
    %c2 = arith.constant 2 : index
    %c0_39 = arith.constant 0 : index
    %30 = vector.load %arg12[%c0_38, %c2, %c0_39] : memref<18x18x4xf32, #tpu.memory_space<vmem>>, vector<16x16x4xf32>
    %31 = vector.shape_cast %30 : vector<16x16x4xf32> to vector<256x4xf32>
    %c0_40 = arith.constant 0 : index
    %c2_41 = arith.constant 2 : index
    %c0_42 = arith.constant 0 : index
    %c0_43 = arith.constant 0 : index
    %32 = vector.load %arg2[%c0_40, %c2_41, %c0_42, %c0_43] : memref<3x3x4x4xf32, #tpu.memory_space<vmem>>, vector<1x1x4x4xf32>
    %33 = vector.shape_cast %32 : vector<1x1x4x4xf32> to vector<4x4xf32>
    %cst_44 = arith.constant dense<0.000000e+00> : vector<256x4xf32>
    %34 = tpu.matmul %31, %33, %cst_44 {dimension_numbers = #tpu.dot_dimension_numbers<[1], [0], [0], [1], [0, 0, 1, 1], [], []>} : vector<256x4xf32>, vector<4x4xf32>, vector<256x4xf32> -> vector<256x4xf32>
    %35 = arith.addf %29, %34 : vector<256x4xf32>
    %c1_45 = arith.constant 1 : index
    %c0_46 = arith.constant 0 : index
    %c0_47 = arith.constant 0 : index
    %36 = vector.load %arg12[%c1_45, %c0_46, %c0_47] : memref<18x18x4xf32, #tpu.memory_space<vmem>>, vector<16x16x4xf32>
    %37 = vector.shape_cast %36 : vector<16x16x4xf32> to vector<256x4xf32>
    %c1_48 = arith.constant 1 : index
    %c0_49 = arith.constant 0 : index
    %c0_50 = arith.constant 0 : index
    %c0_51 = arith.constant 0 : index
    %38 = vector.load %arg2[%c1_48, %c0_49, %c0_50, %c0_51] : memref<3x3x4x4xf32, #tpu.memory_space<vmem>>, vector<1x1x4x4xf32>
    %39 = vector.shape_cast %38 : vector<1x1x4x4xf32> to vector<4x4xf32>
    %cst_52 = arith.constant dense<0.000000e+00> : vector<256x4xf32>
    %40 = tpu.matmul %37, %39, %cst_52 {dimension_numbers = #tpu.dot_dimension_numbers<[1], [0], [0], [1], [0, 0, 1, 1], [], []>} : vector<256x4xf32>, vector<4x4xf32>, vector<256x4xf32> -> vector<256x4xf32>
    %41 = arith.addf %35, %40 : vector<256x4xf32>
    %c1_53 = arith.constant 1 : index
    %c1_54 = arith.constant 1 : index
    %c0_55 = arith.constant 0 : index
    %42 = vector.load %arg12[%c1_53, %c1_54, %c0_55] : memref<18x18x4xf32, #tpu.memory_space<vmem>>, vector<16x16x4xf32>
    %43 = vector.shape_cast %42 : vector<16x16x4xf32> to vector<256x4xf32>
    %c1_56 = arith.constant 1 : index
    %c1_57 = arith.constant 1 : index
    %c0_58 = arith.constant 0 : index
    %c0_59 = arith.constant 0 : index
    %44 = vector.load %arg2[%c1_56, %c1_57, %c0_58, %c0_59] : memref<3x3x4x4xf32, #tpu.memory_space<vmem>>, vector<1x1x4x4xf32>
    %45 = vector.shape_cast %44 : vector<1x1x4x4xf32> to vector<4x4xf32>
    %cst_60 = arith.constant dense<0.000000e+00> : vector<256x4xf32>
    %46 = tpu.matmul %43, %45, %cst_60 {dimension_numbers = #tpu.dot_dimension_numbers<[1], [0], [0], [1], [0, 0, 1, 1], [], []>} : vector<256x4xf32>, vector<4x4xf32>, vector<256x4xf32> -> vector<256x4xf32>
    %47 = arith.addf %41, %46 : vector<256x4xf32>
    %c1_61 = arith.constant 1 : index
    %c2_62 = arith.constant 2 : index
    %c0_63 = arith.constant 0 : index
    %48 = vector.load %arg12[%c1_61, %c2_62, %c0_63] : memref<18x18x4xf32, #tpu.memory_space<vmem>>, vector<16x16x4xf32>
    %49 = vector.shape_cast %48 : vector<16x16x4xf32> to vector<256x4xf32>
    %c1_64 = arith.constant 1 : index
    %c2_65 = arith.constant 2 : index
    %c0_66 = arith.constant 0 : index
    %c0_67 = arith.constant 0 : index
    %50 = vector.load %arg2[%c1_64, %c2_65, %c0_66, %c0_67] : memref<3x3x4x4xf32, #tpu.memory_space<vmem>>, vector<1x1x4x4xf32>
    %51 = vector.shape_cast %50 : vector<1x1x4x4xf32> to vector<4x4xf32>
    %cst_68 = arith.constant dense<0.000000e+00> : vector<256x4xf32>
    %52 = tpu.matmul %49, %51, %cst_68 {dimension_numbers = #tpu.dot_dimension_numbers<[1], [0], [0], [1], [0, 0, 1, 1], [], []>} : vector<256x4xf32>, vector<4x4xf32>, vector<256x4xf32> -> vector<256x4xf32>
    %53 = arith.addf %47, %52 : vector<256x4xf32>
    %c2_69 = arith.constant 2 : index
    %c0_70 = arith.constant 0 : index
    %c0_71 = arith.constant 0 : index
    %54 = vector.load %arg12[%c2_69, %c0_70, %c0_71] : memref<18x18x4xf32, #tpu.memory_space<vmem>>, vector<16x16x4xf32>
    %55 = vector.shape_cast %54 : vector<16x16x4xf32> to vector<256x4xf32>
    %c2_72 = arith.constant 2 : index
    %c0_73 = arith.constant 0 : index
    %c0_74 = arith.constant 0 : index
    %c0_75 = arith.constant 0 : index
    %56 = vector.load %arg2[%c2_72, %c0_73, %c0_74, %c0_75] : memref<3x3x4x4xf32, #tpu.memory_space<vmem>>, vector<1x1x4x4xf32>
    %57 = vector.shape_cast %56 : vector<1x1x4x4xf32> to vector<4x4xf32>
    %cst_76 = arith.constant dense<0.000000e+00> : vector<256x4xf32>
    %58 = tpu.matmul %55, %57, %cst_76 {dimension_numbers = #tpu.dot_dimension_numbers<[1], [0], [0], [1], [0, 0, 1, 1], [], []>} : vector<256x4xf32>, vector<4x4xf32>, vector<256x4xf32> -> vector<256x4xf32>
    %59 = arith.addf %53, %58 : vector<256x4xf32>
    %c2_77 = arith.constant 2 : index
    %c1_78 = arith.constant 1 : index
    %c0_79 = arith.constant 0 : index
    %60 = vector.load %arg12[%c2_77, %c1_78, %c0_79] : memref<18x18x4xf32, #tpu.memory_space<vmem>>, vector<16x16x4xf32>
    %61 = vector.shape_cast %60 : vector<16x16x4xf32> to vector<256x4xf32>
    %c2_80 = arith.constant 2 : index
    %c1_81 = arith.constant 1 : index
    %c0_82 = arith.constant 0 : index
    %c0_83 = arith.constant 0 : index
    %62 = vector.load %arg2[%c2_80, %c1_81, %c0_82, %c0_83] : memref<3x3x4x4xf32, #tpu.memory_space<vmem>>, vector<1x1x4x4xf32>
    %63 = vector.shape_cast %62 : vector<1x1x4x4xf32> to vector<4x4xf32>
    %cst_84 = arith.constant dense<0.000000e+00> : vector<256x4xf32>
    %64 = tpu.matmul %61, %63, %cst_84 {dimension_numbers = #tpu.dot_dimension_numbers<[1], [0], [0], [1], [0, 0, 1, 1], [], []>} : vector<256x4xf32>, vector<4x4xf32>, vector<256x4xf32> -> vector<256x4xf32>
    %65 = arith.addf %59, %64 : vector<256x4xf32>
    %c2_85 = arith.constant 2 : index
    %c2_86 = arith.constant 2 : index
    %c0_87 = arith.constant 0 : index
    %66 = vector.load %arg12[%c2_85, %c2_86, %c0_87] : memref<18x18x4xf32, #tpu.memory_space<vmem>>, vector<16x16x4xf32>
    %67 = vector.shape_cast %66 : vector<16x16x4xf32> to vector<256x4xf32>
    %c2_88 = arith.constant 2 : index
    %c2_89 = arith.constant 2 : index
    %c0_90 = arith.constant 0 : index
    %c0_91 = arith.constant 0 : index
    %68 = vector.load %arg2[%c2_88, %c2_89, %c0_90, %c0_91] : memref<3x3x4x4xf32, #tpu.memory_space<vmem>>, vector<1x1x4x4xf32>
    %69 = vector.shape_cast %68 : vector<1x1x4x4xf32> to vector<4x4xf32>
    %cst_92 = arith.constant dense<0.000000e+00> : vector<256x4xf32>
    %70 = tpu.matmul %67, %69, %cst_92 {dimension_numbers = #tpu.dot_dimension_numbers<[1], [0], [0], [1], [0, 0, 1, 1], [], []>} : vector<256x4xf32>, vector<4x4xf32>, vector<256x4xf32> -> vector<256x4xf32>
    %71 = arith.addf %65, %70 : vector<256x4xf32>
    %c0_93 = arith.constant 0 : index
    %c0_94 = arith.constant 0 : index
    %72 = vector.load %arg6[%c0_93, %c0_94] : memref<1x4xf32, #tpu.memory_space<vmem>>, vector<1x4xf32>
    %73 = vector.broadcast %72 : vector<1x4xf32> to vector<256x4xf32>
    %74 = arith.mulf %71, %73 : vector<256x4xf32>
    %c0_95 = arith.constant 0 : index
    %c0_96 = arith.constant 0 : index
    %75 = vector.load %arg7[%c0_95, %c0_96] : memref<1x4xf32, #tpu.memory_space<vmem>>, vector<1x4xf32>
    %76 = vector.broadcast %75 : vector<1x4xf32> to vector<256x4xf32>
    %77 = arith.addf %74, %76 : vector<256x4xf32>
    %cst_97 = arith.constant 0.000000e+00 : f32
    %78 = vector.broadcast %cst_97 : f32 to vector<256x4xf32>
    %79 = arith.cmpf oge, %77, %78 : vector<256x4xf32>
    %c0_98 = arith.constant 0 : index
    %c0_99 = arith.constant 0 : index
    %80 = vector.load %arg8[%c0_98, %c0_99] : memref<1x4xf32, #tpu.memory_space<vmem>>, vector<1x4xf32>
    %81 = vector.broadcast %80 : vector<1x4xf32> to vector<256x4xf32>
    %82 = arith.mulf %81, %77 : vector<256x4xf32>
    %83 = arith.select %79, %77, %82 : vector<256x4xi1>, vector<256x4xf32>
    %84 = vector.shape_cast %83 : vector<256x4xf32> to vector<16x16x4xf32>
    %c1_100 = arith.constant 1 : index
    %c1_101 = arith.constant 1 : index
    %c0_102 = arith.constant 0 : index
    %85 = vector.load %arg12[%c1_100, %c1_101, %c0_102] : memref<18x18x4xf32, #tpu.memory_space<vmem>>, vector<16x16x4xf32>
    tpu.vector_store %arg12[%c1_100, %c1_101, %c0_102], %84 {strides = array<i32>} : memref<18x18x4xf32, #tpu.memory_space<vmem>>, vector<16x16x4xf32>,
    %cst_103 = arith.constant 0.000000e+00 : f32
    %86 = vector.broadcast %cst_103 : f32 to vector<256x4xf32>
    %c0_104 = arith.constant 0 : index
    %c0_105 = arith.constant 0 : index
    %c0_106 = arith.constant 0 : index
    %87 = vector.load %arg12[%c0_104, %c0_105, %c0_106] : memref<18x18x4xf32, #tpu.memory_space<vmem>>, vector<16x16x4xf32>
    %88 = vector.shape_cast %87 : vector<16x16x4xf32> to vector<256x4xf32>
    %c0_107 = arith.constant 0 : index
    %c0_108 = arith.constant 0 : index
    %c0_109 = arith.constant 0 : index
    %c0_110 = arith.constant 0 : index
    %89 = vector.load %arg3[%c0_107, %c0_108, %c0_109, %c0_110] : memref<3x3x4x4xf32, #tpu.memory_space<vmem>>, vector<1x1x4x4xf32>
    %90 = vector.shape_cast %89 : vector<1x1x4x4xf32> to vector<4x4xf32>
    %cst_111 = arith.constant dense<0.000000e+00> : vector<256x4xf32>
    %91 = tpu.matmul %88, %90, %cst_111 {dimension_numbers = #tpu.dot_dimension_numbers<[1], [0], [0], [1], [0, 0, 1, 1], [], []>} : vector<256x4xf32>, vector<4x4xf32>, vector<256x4xf32> -> vector<256x4xf32>
    %92 = arith.addf %86, %91 : vector<256x4xf32>
    %c0_112 = arith.constant 0 : index
    %c1_113 = arith.constant 1 : index
    %c0_114 = arith.constant 0 : index
    %93 = vector.load %arg12[%c0_112, %c1_113, %c0_114] : memref<18x18x4xf32, #tpu.memory_space<vmem>>, vector<16x16x4xf32>
    %94 = vector.shape_cast %93 : vector<16x16x4xf32> to vector<256x4xf32>
    %c0_115 = arith.constant 0 : index
    %c1_116 = arith.constant 1 : index
    %c0_117 = arith.constant 0 : index
    %c0_118 = arith.constant 0 : index
    %95 = vector.load %arg3[%c0_115, %c1_116, %c0_117, %c0_118] : memref<3x3x4x4xf32, #tpu.memory_space<vmem>>, vector<1x1x4x4xf32>
    %96 = vector.shape_cast %95 : vector<1x1x4x4xf32> to vector<4x4xf32>
    %cst_119 = arith.constant dense<0.000000e+00> : vector<256x4xf32>
    %97 = tpu.matmul %94, %96, %cst_119 {dimension_numbers = #tpu.dot_dimension_numbers<[1], [0], [0], [1], [0, 0, 1, 1], [], []>} : vector<256x4xf32>, vector<4x4xf32>, vector<256x4xf32> -> vector<256x4xf32>
    %98 = arith.addf %92, %97 : vector<256x4xf32>
    %c0_120 = arith.constant 0 : index
    %c2_121 = arith.constant 2 : index
    %c0_122 = arith.constant 0 : index
    %99 = vector.load %arg12[%c0_120, %c2_121, %c0_122] : memref<18x18x4xf32, #tpu.memory_space<vmem>>, vector<16x16x4xf32>
    %100 = vector.shape_cast %99 : vector<16x16x4xf32> to vector<256x4xf32>
    %c0_123 = arith.constant 0 : index
    %c2_124 = arith.constant 2 : index
    %c0_125 = arith.constant 0 : index
    %c0_126 = arith.constant 0 : index
    %101 = vector.load %arg3[%c0_123, %c2_124, %c0_125, %c0_126] : memref<3x3x4x4xf32, #tpu.memory_space<vmem>>, vector<1x1x4x4xf32>
    %102 = vector.shape_cast %101 : vector<1x1x4x4xf32> to vector<4x4xf32>
    %cst_127 = arith.constant dense<0.000000e+00> : vector<256x4xf32>
    %103 = tpu.matmul %100, %102, %cst_127 {dimension_numbers = #tpu.dot_dimension_numbers<[1], [0], [0], [1], [0, 0, 1, 1], [], []>} : vector<256x4xf32>, vector<4x4xf32>, vector<256x4xf32> -> vector<256x4xf32>
    %104 = arith.addf %98, %103 : vector<256x4xf32>
    %c1_128 = arith.constant 1 : index
    %c0_129 = arith.constant 0 : index
    %c0_130 = arith.constant 0 : index
    %105 = vector.load %arg12[%c1_128, %c0_129, %c0_130] : memref<18x18x4xf32, #tpu.memory_space<vmem>>, vector<16x16x4xf32>
    %106 = vector.shape_cast %105 : vector<16x16x4xf32> to vector<256x4xf32>
    %c1_131 = arith.constant 1 : index
    %c0_132 = arith.constant 0 : index
    %c0_133 = arith.constant 0 : index
    %c0_134 = arith.constant 0 : index
    %107 = vector.load %arg3[%c1_131, %c0_132, %c0_133, %c0_134] : memref<3x3x4x4xf32, #tpu.memory_space<vmem>>, vector<1x1x4x4xf32>
    %108 = vector.shape_cast %107 : vector<1x1x4x4xf32> to vector<4x4xf32>
    %cst_135 = arith.constant dense<0.000000e+00> : vector<256x4xf32>
    %109 = tpu.matmul %106, %108, %cst_135 {dimension_numbers = #tpu.dot_dimension_numbers<[1], [0], [0], [1], [0, 0, 1, 1], [], []>} : vector<256x4xf32>, vector<4x4xf32>, vector<256x4xf32> -> vector<256x4xf32>
    %110 = arith.addf %104, %109 : vector<256x4xf32>
    %c1_136 = arith.constant 1 : index
    %c1_137 = arith.constant 1 : index
    %c0_138 = arith.constant 0 : index
    %111 = vector.load %arg12[%c1_136, %c1_137, %c0_138] : memref<18x18x4xf32, #tpu.memory_space<vmem>>, vector<16x16x4xf32>
    %112 = vector.shape_cast %111 : vector<16x16x4xf32> to vector<256x4xf32>
    %c1_139 = arith.constant 1 : index
    %c1_140 = arith.constant 1 : index
    %c0_141 = arith.constant 0 : index
    %c0_142 = arith.constant 0 : index
    %113 = vector.load %arg3[%c1_139, %c1_140, %c0_141, %c0_142] : memref<3x3x4x4xf32, #tpu.memory_space<vmem>>, vector<1x1x4x4xf32>
    %114 = vector.shape_cast %113 : vector<1x1x4x4xf32> to vector<4x4xf32>
    %cst_143 = arith.constant dense<0.000000e+00> : vector<256x4xf32>
    %115 = tpu.matmul %112, %114, %cst_143 {dimension_numbers = #tpu.dot_dimension_numbers<[1], [0], [0], [1], [0, 0, 1, 1], [], []>} : vector<256x4xf32>, vector<4x4xf32>, vector<256x4xf32> -> vector<256x4xf32>
    %116 = arith.addf %110, %115 : vector<256x4xf32>
    %c1_144 = arith.constant 1 : index
    %c2_145 = arith.constant 2 : index
    %c0_146 = arith.constant 0 : index
    %117 = vector.load %arg12[%c1_144, %c2_145, %c0_146] : memref<18x18x4xf32, #tpu.memory_space<vmem>>, vector<16x16x4xf32>
    %118 = vector.shape_cast %117 : vector<16x16x4xf32> to vector<256x4xf32>
    %c1_147 = arith.constant 1 : index
    %c2_148 = arith.constant 2 : index
    %c0_149 = arith.constant 0 : index
    %c0_150 = arith.constant 0 : index
    %119 = vector.load %arg3[%c1_147, %c2_148, %c0_149, %c0_150] : memref<3x3x4x4xf32, #tpu.memory_space<vmem>>, vector<1x1x4x4xf32>
    %120 = vector.shape_cast %119 : vector<1x1x4x4xf32> to vector<4x4xf32>
    %cst_151 = arith.constant dense<0.000000e+00> : vector<256x4xf32>
    %121 = tpu.matmul %118, %120, %cst_151 {dimension_numbers = #tpu.dot_dimension_numbers<[1], [0], [0], [1], [0, 0, 1, 1], [], []>} : vector<256x4xf32>, vector<4x4xf32>, vector<256x4xf32> -> vector<256x4xf32>
    %122 = arith.addf %116, %121 : vector<256x4xf32>
    %c2_152 = arith.constant 2 : index
    %c0_153 = arith.constant 0 : index
    %c0_154 = arith.constant 0 : index
    %123 = vector.load %arg12[%c2_152, %c0_153, %c0_154] : memref<18x18x4xf32, #tpu.memory_space<vmem>>, vector<16x16x4xf32>
    %124 = vector.shape_cast %123 : vector<16x16x4xf32> to vector<256x4xf32>
    %c2_155 = arith.constant 2 : index
    %c0_156 = arith.constant 0 : index
    %c0_157 = arith.constant 0 : index
    %c0_158 = arith.constant 0 : index
    %125 = vector.load %arg3[%c2_155, %c0_156, %c0_157, %c0_158] : memref<3x3x4x4xf32, #tpu.memory_space<vmem>>, vector<1x1x4x4xf32>
    %126 = vector.shape_cast %125 : vector<1x1x4x4xf32> to vector<4x4xf32>
    %cst_159 = arith.constant dense<0.000000e+00> : vector<256x4xf32>
    %127 = tpu.matmul %124, %126, %cst_159 {dimension_numbers = #tpu.dot_dimension_numbers<[1], [0], [0], [1], [0, 0, 1, 1], [], []>} : vector<256x4xf32>, vector<4x4xf32>, vector<256x4xf32> -> vector<256x4xf32>
    %128 = arith.addf %122, %127 : vector<256x4xf32>
    %c2_160 = arith.constant 2 : index
    %c1_161 = arith.constant 1 : index
    %c0_162 = arith.constant 0 : index
    %129 = vector.load %arg12[%c2_160, %c1_161, %c0_162] : memref<18x18x4xf32, #tpu.memory_space<vmem>>, vector<16x16x4xf32>
    %130 = vector.shape_cast %129 : vector<16x16x4xf32> to vector<256x4xf32>
    %c2_163 = arith.constant 2 : index
    %c1_164 = arith.constant 1 : index
    %c0_165 = arith.constant 0 : index
    %c0_166 = arith.constant 0 : index
    %131 = vector.load %arg3[%c2_163, %c1_164, %c0_165, %c0_166] : memref<3x3x4x4xf32, #tpu.memory_space<vmem>>, vector<1x1x4x4xf32>
    %132 = vector.shape_cast %131 : vector<1x1x4x4xf32> to vector<4x4xf32>
    %cst_167 = arith.constant dense<0.000000e+00> : vector<256x4xf32>
    %133 = tpu.matmul %130, %132, %cst_167 {dimension_numbers = #tpu.dot_dimension_numbers<[1], [0], [0], [1], [0, 0, 1, 1], [], []>} : vector<256x4xf32>, vector<4x4xf32>, vector<256x4xf32> -> vector<256x4xf32>
    %134 = arith.addf %128, %133 : vector<256x4xf32>
    %c2_168 = arith.constant 2 : index
    %c2_169 = arith.constant 2 : index
    %c0_170 = arith.constant 0 : index
    %135 = vector.load %arg12[%c2_168, %c2_169, %c0_170] : memref<18x18x4xf32, #tpu.memory_space<vmem>>, vector<16x16x4xf32>
    %136 = vector.shape_cast %135 : vector<16x16x4xf32> to vector<256x4xf32>
    %c2_171 = arith.constant 2 : index
    %c2_172 = arith.constant 2 : index
    %c0_173 = arith.constant 0 : index
    %c0_174 = arith.constant 0 : index
    %137 = vector.load %arg3[%c2_171, %c2_172, %c0_173, %c0_174] : memref<3x3x4x4xf32, #tpu.memory_space<vmem>>, vector<1x1x4x4xf32>
    %138 = vector.shape_cast %137 : vector<1x1x4x4xf32> to vector<4x4xf32>
    %cst_175 = arith.constant dense<0.000000e+00> : vector<256x4xf32>
    %139 = tpu.matmul %136, %138, %cst_175 {dimension_numbers = #tpu.dot_dimension_numbers<[1], [0], [0], [1], [0, 0, 1, 1], [], []>} : vector<256x4xf32>, vector<4x4xf32>, vector<256x4xf32> -> vector<256x4xf32>
    %140 = arith.addf %134, %139 : vector<256x4xf32>
    %c0_176 = arith.constant 0 : index
    %c0_177 = arith.constant 0 : index
    %141 = vector.load %arg9[%c0_176, %c0_177] : memref<1x4xf32, #tpu.memory_space<vmem>>, vector<1x4xf32>
    %142 = vector.broadcast %141 : vector<1x4xf32> to vector<256x4xf32>
    %143 = arith.mulf %140, %142 : vector<256x4xf32>
    %c0_178 = arith.constant 0 : index
    %c0_179 = arith.constant 0 : index
    %144 = vector.load %arg10[%c0_178, %c0_179] : memref<1x4xf32, #tpu.memory_space<vmem>>, vector<1x4xf32>
    %145 = vector.broadcast %144 : vector<1x4xf32> to vector<256x4xf32>
    %146 = arith.addf %143, %145 : vector<256x4xf32>
    %147 = vector.shape_cast %7 : vector<16x16x4xf32> to vector<256x4xf32>
    %148 = arith.addf %146, %147 : vector<256x4xf32>
    %149 = vector.shape_cast %148 : vector<256x4xf32> to vector<16x16x4xf32>
    %c0_180 = arith.constant 0 : index
    %c0_181 = arith.constant 0 : index
    %c0_182 = arith.constant 0 : index
    %c0_183 = arith.constant 0 : index
    %150 = vector.load %arg11[%c0_180, %c0_181, %c0_182, %c0_183] : memref<1x16x16x4xf32, #tpu.memory_space<vmem>>, vector<1x16x16x4xf32>
    %151 = vector.shape_cast %150 : vector<1x16x16x4xf32> to vector<16x16x4xf32>
    %152 = vector.shape_cast %149 : vector<16x16x4xf32> to vector<1x16x16x4xf32>
    tpu.vector_store %arg11[%c0_180, %c0_181, %c0_182, %c0_183], %152 {strides = array<i32>} : memref<1x16x16x4xf32, #tpu.memory_space<vmem>>, vector<1x16x16x4xf32>,
    return
  }
  func.func @transform_0(%arg0: i32) -> (i32, i32, i32, i32) {
    %c0_i32 = arith.constant 0 : i32
    %c0_i32_0 = arith.constant 0 : i32
    %c0_i32_1 = arith.constant 0 : i32
    %c0_i32_2 = arith.constant 0 : i32
    return %arg0, %c0_i32, %c0_i32_0, %c0_i32_1 : i32, i32, i32, i32
  }
  func.func @transform_1(%arg0: i32) -> (i32, i32, i32, i32) {
    %c0_i32 = arith.constant 0 : i32
    %c0_i32_0 = arith.constant 0 : i32
    %c0_i32_1 = arith.constant 0 : i32
    %c0_i32_2 = arith.constant 0 : i32
    %c0_i32_3 = arith.constant 0 : i32
    return %c0_i32, %c0_i32_0, %c0_i32_1, %c0_i32_2 : i32, i32, i32, i32
  }
  func.func @transform_2(%arg0: i32) -> (i32, i32, i32, i32) {
    %c0_i32 = arith.constant 0 : i32
    %c0_i32_0 = arith.constant 0 : i32
    %c0_i32_1 = arith.constant 0 : i32
    %c0_i32_2 = arith.constant 0 : i32
    %c0_i32_3 = arith.constant 0 : i32
    return %c0_i32, %c0_i32_0, %c0_i32_1, %c0_i32_2 : i32, i32, i32, i32
  }
  func.func @transform_3(%arg0: i32) -> (i32, i32) {
    %c0_i32 = arith.constant 0 : i32
    %c0_i32_0 = arith.constant 0 : i32
    %c0_i32_1 = arith.constant 0 : i32
    return %c0_i32, %c0_i32_0 : i32, i32
  }
  func.func @transform_4(%arg0: i32) -> (i32, i32) {
    %c0_i32 = arith.constant 0 : i32
    %c0_i32_0 = arith.constant 0 : i32
    %c0_i32_1 = arith.constant 0 : i32
    return %c0_i32, %c0_i32_0 : i32, i32
  }
  func.func @transform_5(%arg0: i32) -> (i32, i32) {
    %c0_i32 = arith.constant 0 : i32
    %c0_i32_0 = arith.constant 0 : i32
    %c0_i32_1 = arith.constant 0 : i32
    return %c0_i32, %c0_i32_0 : i32, i32
  }
  func.func @transform_6(%arg0: i32) -> (i32, i32) {
    %c0_i32 = arith.constant 0 : i32
    %c0_i32_0 = arith.constant 0 : i32
    %c0_i32_1 = arith.constant 0 : i32
    return %c0_i32, %c0_i32_0 : i32, i32
  }
  func.func @transform_7(%arg0: i32) -> (i32, i32) {
    %c0_i32 = arith.constant 0 : i32
    %c0_i32_0 = arith.constant 0 : i32
    %c0_i32_1 = arith.constant 0 : i32
    return %c0_i32, %c0_i32_0 : i32, i32
  }
  func.func @transform_8(%arg0: i32) -> (i32, i32) {
    %c0_i32 = arith.constant 0 : i32
    %c0_i32_0 = arith.constant 0 : i32
    %c0_i32_1 = arith.constant 0 : i32
    return %c0_i32, %c0_i32_0 : i32, i32
  }
  func.func @transform_9(%arg0: i32) -> (i32, i32) {
    %c0_i32 = arith.constant 0 : i32
    %c0_i32_0 = arith.constant 0 : i32
    %c0_i32_1 = arith.constant 0 : i32
    return %c0_i32, %c0_i32_0 : i32, i32
  }
  func.func @transform_10(%arg0: i32) -> (i32, i32, i32, i32) {
    %c0_i32 = arith.constant 0 : i32
    %c0_i32_0 = arith.constant 0 : i32
    %c0_i32_1 = arith.constant 0 : i32
    %c0_i32_2 = arith.constant 0 : i32
    return %arg0, %c0_i32, %c0_i32_0, %c0_i32_1 : i32, i32, i32, i32
  }
}

</mosaic_0001>

<bundles_post_ra>
// kernel: tpu_custom_call.1
= control target key start
LH: loop header
LB: loop body
LE: loop exit
PB: predicated region body
PF: predicated region fallthrough
CT: control target
= control target key end

     0   :  { %s10081_s13 = smov 0   ;;  %s13516_s0 = inlined_call_operand.vmem [shape: f32[2,16,16,4], index: 0, kind: input, shape index: {}]   ;;  %s13517_s1 = inlined_call_operand.vmem [shape: f32[3,3,4,4], index: 1, kind: input, shape index: {}]   ;;  %s13518_s2 = inlined_call_operand.vmem [shape: f32[3,3,4,4], index: 2, kind: input, shape index: {}]   ;;  %s13519_s3 = inlined_call_operand.vmem [shape: f32[1,4], index: 3, kind: input, shape index: {}]   ;;  %s13520_s4 = inlined_call_operand.vmem [shape: f32[1,4], index: 4, kind: input, shape index: {}]   ;;  %s13521_s5 = inlined_call_operand.vmem [shape: f32[1,4], index: 5, kind: input, shape index: {}]   ;;  %s13522_s6 = inlined_call_operand.vmem [shape: f32[1,4], index: 6, kind: input, shape index: {}]   ;;  %s13523_s7 = inlined_call_operand.vmem [shape: f32[1,4], index: 7, kind: input, shape index: {}]   ;;  %s13524_s8 = inlined_call_operand.vmem [shape: f32[1,4], index: 8, kind: input, shape index: {}]   ;;  %s13525_s9 = inlined_call_operand.vmem [shape: f32[1,4], index: 9, kind: input, shape index: {}]   ;;  %s13526_s10 = inlined_call_operand.vmem [shape: f32[2,16,16,4], index: 10, kind: output, shape index: {}]  }
   0x1 LB: > { %s7851_s14 = sadd.s32 4294967295, %s10023_s13   ;;  %p7855_p0 = scmp.ge.s32.totalorder %s10023_s13, 1  ;;  %s10023_s13 = sphi %s10081_s13, %s20_s13  }
   0x2   : > { %p312_p1 = scmp.lt.s32.totalorder %s10023_s13, 3 }
   0x4   : > { %p313_p2 = pnand %p7855_p0, %p312_p1 }
   0x6   : > { %316 = sbr.rel (%p313_p2) target bundleno = 1026 (0x402), region = 60 }
   0xb   : > { %v7862_v0 = vld [vmem:[%s13517_s1 + $0x4] sm:$0xf]  ;;  %vm712_vm0 = vcmask 1043456   ;;  %v581_v1 = vld [vmem:[%s13517_s1] sm:$0xf]  ;;  %vm360_vm1 = vcmask 31744  }
   0xc   : > { %9075 = vmatprep.subr.msk.mxu0 %vm712_vm0, %v7862_v0  ;;  %9125 = vmatprep.subr.msk.mxu1 %vm712_vm0, %v581_v1  ;;  %vm369_vm2 = vcmask 24576   ;;  %vm363_vm3 = vcmask 25600   ;;  %v10100_v2 = vld [vmem:[%s13517_s1 + $0x8] sm:$0xf]  ;;  %p10104_p3 = scmp.lt.s32.totalorder %s7851_s14, 1  ;;  %v10025_v3 = vmov 0.0  }
   0xd   : > { %9076 = vmatpush3.msk.msra.mxu0 %vm712_vm0, %v7862_v0  ;;  %361 = vst.msk [vmem:[#allocation2] sm:$0xff] %vm360_vm1, %v10025_v3  ;;  %362 = vst.msk [vmem:[#allocation2 + $0x8] sm:$0xff] %vm360_vm1, %v10025_v3  ;;  %9126 = vmatpush3.msk.msra.mxu1 %vm712_vm0, %v581_v1  ;;  %v10151_v4 = vld [vmem:[%s13517_s1 + $0xc] sm:$0xf]  ;;  %v10171_v5 = vld [vmem:[%s13519_s3] ss:$0 sm:$0xff] }
   0xe   : > { %366 = vst.msk [vmem:[#allocation2 + $0x198] sm:$0xff] %vm360_vm1, %v10025_v3  ;;  %367 = vst.msk [vmem:[#allocation2 + $0x1a0] sm:$0xff] %vm360_vm1, %v10025_v3  ;;  %9175 = vmatprep.subr.msk.mxu0 %vm712_vm0, %v10100_v2  ;;  %s13993_s14 = smov (!%p10104_p3, %s7851_s14), 1  ;;  %9225 = vmatprep.subr.msk.mxu1 %vm712_vm0, %v10151_v4  ;;  %v10183_v6 = vld [vmem:[%s13520_s4] ss:$0 sm:$0xff] }
   0xf   : > { %371 = vst.msk [vmem:[#allocation2 + $0x18] sm:$0x1] %vm369_vm2, %v10025_v3  ;;  %372 = vst.msk [vmem:[#allocation2 + $0x30] sm:$0x1] %vm369_vm2, %v10025_v3  ;;  %s8479_s24 = sshll.u32 %s13993_s14, 8 }
  0x10   : > { %373 = vst.msk [vmem:[#allocation2 + $0x48] sm:$0x1] %vm369_vm2, %v10025_v3  ;;  %374 = vst.msk [vmem:[#allocation2 + $0x60] sm:$0x1] %vm369_vm2, %v10025_v3  ;;  %s10178_s29 = scalar_lea.vmem %s13516_s0, %s8479_s24  ;;  %v10200_v22 = vld [vmem:[%s13517_s1 + $0x10] sm:$0xf]  ;;  %s13244_s25 = scalar_lea.vmem %s13526_s10, %s8479_s24 }
  0x11   : > { %375 = vst.msk [vmem:[#allocation2 + $0x78] sm:$0x1] %vm369_vm2, %v10025_v3  ;;  %376 = vst.msk [vmem:[#allocation2 + $0x90] sm:$0x1] %vm369_vm2, %v10025_v3  ;;  %v406_v7 = vld [vmem:[%s10178_s29] sm:$0xff]  ;;  %v407_v8 = vld [vmem:[%s10178_s29 + $0x8] sm:$0xff] }
  0x12   : > { %377 = vst.msk [vmem:[#allocation2 + $0xa8] sm:$0x1] %vm369_vm2, %v10025_v3  ;;  %378 = vst.msk [vmem:[#allocation2 + $0xc0] sm:$0x1] %vm369_vm2, %v10025_v3  ;;  %v408_v9 = vld [vmem:[%s10178_s29 + $0x10] sm:$0xff]  ;;  %v445_v10 = vmul.f32 %v10171_v5, %v406_v7  ;;  %v446_v11 = vmul.f32 %v10171_v5, %v407_v8  ;;  %v409_v13 = vld [vmem:[%s10178_s29 + $0x18] sm:$0xff] }
  0x13   : > { %379 = vst.msk [vmem:[#allocation2 + $0xd8] sm:$0x1] %vm369_vm2, %v10025_v3  ;;  %380 = vst.msk [vmem:[#allocation2 + $0xf0] sm:$0x1] %vm369_vm2, %v10025_v3  ;;  %v447_v12 = vmul.f32 %v10171_v5, %v408_v9  ;;  %v410_v14 = vld [vmem:[%s10178_s29 + $0x20] sm:$0xff]  ;;  %v411_v15 = vld [vmem:[%s10178_s29 + $0x28] sm:$0xff]  ;;  %v448_v19 = vmul.f32 %v10171_v5, %v409_v13 }
  0x14   : > { %381 = vst.msk [vmem:[#allocation2 + $0x108] sm:$0x1] %vm369_vm2, %v10025_v3  ;;  %382 = vst.msk [vmem:[#allocation2 + $0x120] sm:$0x1] %vm369_vm2, %v10025_v3  ;;  %v582_v16 = vld [vmem:[#allocation2 + $0x1] sm:$0xff]  ;;  %v449_v20 = vmul.f32 %v10171_v5, %v410_v14  ;;  %v450_v21 = vmul.f32 %v10171_v5, %v411_v15  ;;  %v484_v24 = vadd.f32 %v10183_v6, %v445_v10  ;;  %v412_v27 = vld [vmem:[%s10178_s29 + $0x30] sm:$0xff] }
  0x15   : > { %383 = vst.msk [vmem:[#allocation2 + $0x138] sm:$0x1] %vm369_vm2, %v10025_v3  ;;  %384 = vst.msk [vmem:[#allocation2 + $0x150] sm:$0x1] %vm369_vm2, %v10025_v3  ;;  %v550_v18 = vld [vmem:[#allocation2 + $0x8] sm:$0xff]  ;;  %9077 = vmatprep.mubr.msk.f32.mxu0 %vm360_vm1, %v582_v16  ;;  %v485_v25 = vadd.f32 %v10183_v6, %v446_v11  ;;  %v486_v26 = vadd.f32 %v10183_v6, %v447_v12  ;;  %v413_v28 = vld [vmem:[%s10178_s29 + $0x38] sm:$0xff]  ;;  %v487_v29 = vadd.f32 %v10183_v6, %v448_v19 }
  0x16   : > { %385 = vst.msk [vmem:[#allocation2 + $0x168] sm:$0x1] %vm369_vm2, %v10025_v3  ;;  %386 = vst.msk [vmem:[#allocation2 + $0x180] sm:$0x1] %vm369_vm2, %v10025_v3  ;;  %v488_v30 = vadd.f32 %v10183_v6, %v449_v20  ;;  %v489_v31 = vadd.f32 %v10183_v6, %v450_v21  ;;  %v414_v32 = vld [vmem:[%s10178_s29 + $0x40] sm:$0xff]  ;;  %v415_v33 = vld [vmem:[%s10178_s29 + $0x48] sm:$0xff]  ;;  %v451_v35 = vmul.f32 %v10171_v5, %v412_v27 }
  0x17   : > { %389 = vst.msk [vmem:[#allocation2 + $0x29] sm:$0x1] %vm369_vm2, %v10025_v3  ;;  %390 = vst.msk [vmem:[#allocation2 + $0x41] sm:$0x1] %vm369_vm2, %v10025_v3  ;;  %v416_v34 = vld [vmem:[%s10178_s29 + $0x50] sm:$0xff]  ;;  %v452_v36 = vmul.f32 %v10171_v5, %v413_v28  ;;  %v453_v37 = vmul.f32 %v10171_v5, %v414_v32  ;;  %v417_v38 = vld [vmem:[%s10178_s29 + $0x58] sm:$0xff]  ;;  %v454_v41 = vmul.f32 %v10171_v5, %v415_v33 }
  0x18   : > { %391 = vst.msk [vmem:[#allocation2 + $0x59] sm:$0x1] %vm369_vm2, %v10025_v3  ;;  %392 = vst.msk [vmem:[#allocation2 + $0x71] sm:$0x1] %vm369_vm2, %v10025_v3  ;;  %v418_v39 = vld [vmem:[%s10178_s29 + $0x60] sm:$0xff]  ;;  %v419_v40 = vld [vmem:[%s10178_s29 + $0x68] sm:$0xff]  ;;  %v455_v42 = vmul.f32 %v10171_v5, %v416_v34  ;;  %v456_v43 = vmul.f32 %v10171_v5, %v417_v38  ;;  %v490_v48 = vadd.f32 %v10183_v6, %v451_v35 }
  0x19   : > { %393 = vst.msk [vmem:[#allocation2 + $0x89] sm:$0x1] %vm369_vm2, %v10025_v3  ;;  %394 = vst.msk [vmem:[#allocation2 + $0xa1] sm:$0x1] %vm369_vm2, %v10025_v3  ;;  %v457_v44 = vmul.f32 %v10171_v5, %v418_v39  ;;  %v420_v45 = vld [vmem:[%s10178_s29 + $0x70] sm:$0xff]  ;;  %v421_v46 = vld [vmem:[%s10178_s29 + $0x78] sm:$0xff]  ;;  %v491_v49 = vadd.f32 %v10183_v6, %v452_v36  ;;  %v492_v50 = vadd.f32 %v10183_v6, %v453_v37 }
  0x1a   : > { %395 = vst.msk [vmem:[#allocation2 + $0xb9] sm:$0x1] %vm369_vm2, %v10025_v3  ;;  %396 = vst.msk [vmem:[#allocation2 + $0xd1] sm:$0x1] %vm369_vm2, %v10025_v3  ;;  %v422_v47 = vld [vmem:[%s10178_s29 + $0x80] sm:$0xff]  ;;  %v458_v51 = vmul.f32 %v10171_v5, %v419_v40  ;;  %v423_v52 = vld [vmem:[%s10178_s29 + $0x88] sm:$0xff]  ;;  %v493_v55 = vadd.f32 %v10183_v6, %v454_v41  ;;  %v494_v56 = vadd.f32 %v10183_v6, %v455_v42 }
  0x1b   : > { %397 = vst.msk [vmem:[#allocation2 + $0xe9] sm:$0x1] %vm369_vm2, %v10025_v3  ;;  %398 = vst.msk [vmem:[#allocation2 + $0x101] sm:$0x1] %vm369_vm2, %v10025_v3  ;;  %v424_v53 = vld [vmem:[%s10178_s29 + $0x90] sm:$0xff]  ;;  %v425_v54 = vld [vmem:[%s10178_s29 + $0x98] sm:$0xff]  ;;  %v495_v57 = vadd.f32 %v10183_v6, %v456_v43  ;;  %v496_v58 = vadd.f32 %v10183_v6, %v457_v44  ;;  %v459_v62 = vmul.f32 %v10171_v5, %v420_v45 }
  0x1c   : > { %399 = vst.msk [vmem:[#allocation2 + $0x119] sm:$0x1] %vm369_vm2, %v10025_v3  ;;  %400 = vst.msk [vmem:[#allocation2 + $0x131] sm:$0x1] %vm369_vm2, %v10025_v3  ;;  %v426_v59 = vld [vmem:[%s10178_s29 + $0xa0] sm:$0xff]  ;;  %v427_v60 = vld [vmem:[%s10178_s29 + $0xa8] sm:$0xff]  ;;  %v497_v61 = vadd.f32 %v10183_v6, %v458_v51  ;;  %v460_v63 = vmul.f32 %v10171_v5, %v421_v46  ;;  %v461_v0 = vmul.f32 %v10171_v5, %v422_v47 }
  0x1d   : > { %401 = vst.msk [vmem:[#allocation2 + $0x149] sm:$0x1] %vm369_vm2, %v10025_v3  ;;  %402 = vst.msk [vmem:[#allocation2 + $0x161] sm:$0x1] %vm369_vm2, %v10025_v3  ;;  %v428_v1 = vld [vmem:[%s10178_s29 + $0xb0] sm:$0xff]  ;;  %v465_v7 = vmul.f32 %v10171_v5, %v426_v59  ;;  %v429_v8 = vld [vmem:[%s10178_s29 + $0xb8] sm:$0xff]  ;;  %v498_v11 = vadd.f32 %v10183_v6, %v459_v62  ;;  %v466_v14 = vmul.f32 %v10171_v5, %v427_v60 }
  0x1e   : > { %403 = vst.msk [vmem:[#allocation2 + $0x179] sm:$0x1] %vm369_vm2, %v10025_v3  ;;  %404 = vst.msk [vmem:[#allocation2 + $0x191] sm:$0x1] %vm369_vm2, %v10025_v3  ;;  %v430_v9 = vld [vmem:[%s10178_s29 + $0xc0] sm:$0xff]  ;;  %v431_v10 = vld [vmem:[%s10178_s29 + $0xc8] sm:$0xff]  ;;  %v499_v12 = vadd.f32 %v10183_v6, %v460_v63  ;;  %v500_v13 = vadd.f32 %v10183_v6, %v461_v0 }
  0x1f   : > { %364 = vst.msk [vmem:[#allocation2 + $0x10] sm:$0x3] %vm363_vm3, %v10025_v3  ;;  %368 = vst.msk [vmem:[#allocation2 + $0x1a8] sm:$0x3] %vm363_vm3, %v10025_v3  ;;  %v432_v15 = vld [vmem:[%s10178_s29 + $0xd0] sm:$0xff]  ;;  %v433_v16 = vld [vmem:[%s10178_s29 + $0xd8] sm:$0xff]  ;;  %v469_v32 = vmul.f32 %v10171_v5, %v430_v9  ;;  %v470_v33 = vmul.f32 %v10171_v5, %v431_v10 }
  0x20   : > { %370 = vst.msk [vmem:[#allocation2] sm:$0x1] %vm369_vm2, %v10025_v3  ;;  %387 = vst.msk [vmem:[#allocation2 + $0x198] sm:$0x1] %vm369_vm2, %v10025_v3  ;;  %v471_v34 = vmul.f32 %v10171_v5, %v432_v15  ;;  %v435_v35 = vld [vmem:[%s10178_s29 + $0xe8] sm:$0xff]  ;;  %v472_v40 = vmul.f32 %v10171_v5, %v433_v16  ;;  %v437_v15 = vld [vmem:[%s10178_s29 + $0xf8] sm:$0xff] }
  0x21   : > { %388 = vst.msk [vmem:[#allocation2 + $0x11] sm:$0x1] %vm369_vm2, %v10025_v3  ;;  %405 = vst.msk [vmem:[#allocation2 + $0x1a9] sm:$0x1] %vm369_vm2, %v10025_v3  ;;  %v463_v3 = vmul.f32 %v10171_v5, %v424_v53  ;;  %v508_v43 = vadd.f32 %v10183_v6, %v469_v32  ;;  %v509_v44 = vadd.f32 %v10183_v6, %v470_v33 }
  0x22   : > { %517 = vst.msk [vmem:[#allocation2 + $0x19] sm:$0xff] %vm360_vm1, %v484_v24  ;;  %518 = vst.msk [vmem:[#allocation2 + $0x21] sm:$0xff] %vm360_vm1, %v485_v25  ;;  %v504_v25 = vadd.f32 %v10183_v6, %v465_v7  ;;  %v510_v45 = vadd.f32 %v10183_v6, %v471_v34  ;;  %v511_v47 = vadd.f32 %v10183_v6, %v472_v40 }
  0x23   : > { %519 = vst.msk [vmem:[#allocation2 + $0x31] sm:$0xff] %vm360_vm1, %v486_v26  ;;  %520 = vst.msk [vmem:[#allocation2 + $0x39] sm:$0xff] %vm360_vm1, %v487_v29  ;;  %v505_v29 = vadd.f32 %v10183_v6, %v466_v14  ;;  %v10456_v14 = vld [vmem:[%s13517_s1 + $0x14] sm:$0xf] }
  0x24   : > { %521 = vst.msk [vmem:[#allocation2 + $0x49] sm:$0xff] %vm360_vm1, %v488_v30  ;;  %522 = vst.msk [vmem:[#allocation2 + $0x51] sm:$0xff] %vm360_vm1, %v489_v31  ;;  %v467_v30 = vmul.f32 %v10171_v5, %v428_v1  ;;  %v468_v31 = vmul.f32 %v10171_v5, %v429_v8 }
  0x25   : > { %523 = vst.msk [vmem:[#allocation2 + $0x61] sm:$0xff] %vm360_vm1, %v490_v48  ;;  %524 = vst.msk [vmem:[#allocation2 + $0x69] sm:$0xff] %vm360_vm1, %v491_v49  ;;  %v474_v48 = vmul.f32 %v10171_v5, %v435_v35 }
  0x26   : > { %v583_v17 = vld [vmem:[#allocation2 + $0x9] sm:$0xff]  ;;  %525 = vst.msk [vmem:[#allocation2 + $0x79] sm:$0xff] %vm360_vm1, %v492_v50  ;;  %526 = vst.msk [vmem:[#allocation2 + $0x81] sm:$0xff] %vm360_vm1, %v493_v55  ;;  %v506_v38 = vadd.f32 %v10183_v6, %v467_v30  ;;  %v507_v39 = vadd.f32 %v10183_v6, %v468_v31 }
  0x27   : > { %v549_v23 = vld [vmem:[#allocation2] sm:$0xff]  ;;  %9078 = vmatmul.mubr.msk.f32.vlgmr.msra.gmra.mxu0 %vm360_vm1, %v583_v17  ;;  %527 = vst.msk [vmem:[#allocation2 + $0x91] sm:$0xff] %vm360_vm1, %v494_v56  ;;  %528 = vst.msk [vmem:[#allocation2 + $0x99] sm:$0xff] %vm360_vm1, %v495_v57 }
  0x28   : > { %9127 = vmatprep.mubr.msk.f32.mxu1 %vm360_vm1, %v549_v23  ;;  %9176 = vmatpush3.msk.msra.mxu0 %vm712_vm0, %v10100_v2  ;;  %529 = vst.msk [vmem:[#allocation2 + $0xa9] sm:$0xff] %vm360_vm1, %v496_v58  ;;  %v462_v2 = vmul.f32 %v10171_v5, %v423_v52  ;;  %530 = vst.msk [vmem:[#allocation2 + $0xb1] sm:$0xff] %vm360_vm1, %v497_v61  ;;  %v434_v17 = vld [vmem:[%s10178_s29 + $0xe0] sm:$0xff]  ;;  %v502_v23 = vadd.f32 %v10183_v6, %v463_v3 }
  0x29   : > { %9128 = vmatmul.mubr.msk.f32.vlgmr.msra.gmra.mxu1 %vm360_vm1, %v550_v18  ;;  %9275 = vmatprep.subr.msk.mxu0 %vm712_vm0, %v10200_v22  ;;  %v10282_v18 = vld [vmem:[#allocation2 + $0x19] sm:$0xff]  ;;  %v10286_v20 = vld [vmem:[#allocation2 + $0x21] sm:$0xff]  ;;  %531 = vst.msk [vmem:[#allocation2 + $0xc1] sm:$0xff] %vm360_vm1, %v498_v11  ;;  %532 = vst.msk [vmem:[#allocation2 + $0xc9] sm:$0xff] %vm360_vm1, %v499_v12  ;;  %v473_v46 = vmul.f32 %v10171_v5, %v434_v17  ;;  %v513_v52 = vadd.f32 %v10183_v6, %v474_v48 }
  0x2a   : > { %9226 = vmatpush3.msk.msra.mxu1 %vm712_vm0, %v10151_v4  ;;  %v464_v4 = vmul.f32 %v10171_v5, %v425_v54  ;;  %v10284_v19 = vld [vmem:[#allocation2 + $0x18] sm:$0xff]  ;;  %v501_v21 = vadd.f32 %v10183_v6, %v462_v2  ;;  %9080 = vmatprep.mubr.msk.f32.mxu0 %vm360_vm1, %v10282_v18  ;;  %v10296_v26 = vld [vmem:[#allocation2 + $0x20] sm:$0xff]  ;;  %v10300_v28 = vld [vmem:[#allocation2 + $0x30] sm:$0xff]  ;;  %533 = vst.msk [vmem:[#allocation2 + $0xd9] sm:$0xff] %vm360_vm1, %v500_v13 }
  0x2b   : > { %9130 = vmatprep.mubr.msk.f32.mxu1 %vm360_vm1, %v10284_v19  ;;  %v10298_v27 = vld [vmem:[#allocation2 + $0x31] sm:$0xff]  ;;  %13586 = vst [vmem:[#allocation3_spill] sm:$0xff] %v10300_v28  ;;  %9081 = vmatmul.mubr.msk.f32.gmra.mxu0 %vm360_vm1, %v10286_v20  ;;  %535 = vst.msk [vmem:[#allocation2 + $0xf1] sm:$0xff] %vm360_vm1, %v502_v23  ;;  %v10324_v36 = vld [vmem:[#allocation2 + $0x39] sm:$0xff]  ;;  %v512_v49 = vadd.f32 %v10183_v6, %v473_v46  ;;  %v476_v23 = vmul.f32 %v10171_v5, %v437_v15 }
  0x2c   : > { %v503_v24 = vadd.f32 %v10183_v6, %v464_v4  ;;  %534 = vst.msk [vmem:[#allocation2 + $0xe1] sm:$0xff] %vm360_vm1, %v501_v21  ;;  %537 = vst.msk [vmem:[#allocation2 + $0x109] sm:$0xff] %vm360_vm1, %v504_v25  ;;  %9083 = vmatprep.mubr.msk.f32.mxu0 %vm360_vm1, %v10298_v27  ;;  %v10326_v37 = vld [vmem:[#allocation2 + $0x38] sm:$0xff]  ;;  %v10332_v41 = vld [vmem:[#allocation2 + $0x49] sm:$0xff]  ;;  %9325 = vmatprep.subr.msk.mxu1 %vm712_vm0, %v10456_v14 }
  0x2d   : > { %9131 = vmatmul.mubr.msk.f32.gmra.mxu1 %vm360_vm1, %v10296_v26  ;;  %13587 = vst [vmem:[#allocation4_spill] sm:$0xff] %v10326_v37  ;;  %538 = vst.msk [vmem:[#allocation2 + $0x111] sm:$0xff] %vm360_vm1, %v505_v29  ;;  %v10334_v42 = vld [vmem:[#allocation2 + $0x48] sm:$0xff]  ;;  %v10356_v50 = vld [vmem:[#allocation2 + $0x51] sm:$0xff]  ;;  %v515_v30 = vadd.f32 %v10183_v6, %v476_v23 }
  0x2e   : > { %536 = vst.msk [vmem:[#allocation2 + $0xf9] sm:$0xff] %vm360_vm1, %v503_v24  ;;  %9133 = vmatprep.mubr.msk.f32.mxu1 %vm360_vm1, %v10300_v28  ;;  %13588 = vst [vmem:[#allocation5_spill] sm:$0xff] %v10334_v42  ;;  %v10358_v51 = vld [vmem:[#allocation2 + $0x50] sm:$0xff]  ;;  %v10362_v53 = vld [vmem:[#allocation2 + $0x61] sm:$0xff] }
  0x2f   : > { %539 = vst.msk [vmem:[#allocation2 + $0x121] sm:$0xff] %vm360_vm1, %v506_v38  ;;  %540 = vst.msk [vmem:[#allocation2 + $0x129] sm:$0xff] %vm360_vm1, %v507_v39  ;;  %9084 = vmatmul.mubr.msk.f32.gmra.mxu0 %vm360_vm1, %v10324_v36  ;;  %v10364_v54 = vld [vmem:[#allocation2 + $0x60] sm:$0xff]  ;;  %v10376_v55 = vld [vmem:[#allocation2 + $0x69] sm:$0xff] }
  0x30   : > { %541 = vst.msk [vmem:[#allocation2 + $0x139] sm:$0xff] %vm360_vm1, %v508_v43  ;;  %542 = vst.msk [vmem:[#allocation2 + $0x141] sm:$0xff] %vm360_vm1, %v509_v44  ;;  %9086 = vmatprep.mubr.msk.f32.mxu0 %vm360_vm1, %v10332_v41  ;;  %v10378_v56 = vld [vmem:[#allocation2 + $0x68] sm:$0xff]  ;;  %v10380_v57 = vld [vmem:[#allocation2 + $0x79] sm:$0xff] }
  0x31   : > { %9134 = vmatmul.mubr.msk.f32.gmra.mxu1 %vm360_vm1, %v10326_v37  ;;  %543 = vst.msk [vmem:[#allocation2 + $0x151] sm:$0xff] %vm360_vm1, %v510_v45  ;;  %13589 = vst [vmem:[#allocation6_spill] sm:$0xff] %v10358_v51  ;;  %v10382_v58 = vld [vmem:[#allocation2 + $0x78] sm:$0xff]  ;;  %v10392_v59 = vld [vmem:[#allocation2 + $0x81] sm:$0xff] }
  0x32   : > { %9136 = vmatprep.mubr.msk.f32.mxu1 %vm360_vm1, %v10334_v42  ;;  %544 = vst.msk [vmem:[#allocation2 + $0x159] sm:$0xff] %vm360_vm1, %v511_v47  ;;  %13590 = vst [vmem:[#allocation7_spill] sm:$0xff] %v10364_v54  ;;  %v10394_v60 = vld [vmem:[#allocation2 + $0x80] sm:$0xff]  ;;  %v10396_v61 = vld [vmem:[#allocation2 + $0x91] sm:$0xff] }
  0x33   : > { %545 = vst.msk [vmem:[#allocation2 + $0x169] sm:$0xff] %vm360_vm1, %v512_v49  ;;  %546 = vst.msk [vmem:[#allocation2 + $0x171] sm:$0xff] %vm360_vm1, %v513_v52  ;;  %9087 = vmatmul.mubr.msk.f32.gmra.mxu0 %vm360_vm1, %v10356_v50  ;;  %v10398_v62 = vld [vmem:[#allocation2 + $0x90] sm:$0xff]  ;;  %v10408_v63 = vld [vmem:[#allocation2 + $0x99] sm:$0xff] }
  0x34   : > { %9089 = vmatprep.mubr.msk.f32.mxu0 %vm360_vm1, %v10362_v53  ;;  %13591 = vst [vmem:[#allocation8_spill] sm:$0xff] %v10378_v56  ;;  %13592 = vst [vmem:[#allocation9_spill] sm:$0xff] %v10382_v58  ;;  %v10410_v0 = vld [vmem:[#allocation2 + $0x98] sm:$0xff]  ;;  %v10412_v1 = vld [vmem:[#allocation2 + $0xa9] sm:$0xff] }
  0x35   : > { %9137 = vmatmul.mubr.msk.f32.gmra.mxu1 %vm360_vm1, %v10358_v51  ;;  %13593 = vst [vmem:[#allocation10_spill] sm:$0xff] %v10394_v60  ;;  %13594 = vst [vmem:[#allocation11_spill] sm:$0xff] %v10398_v62  ;;  %v10414_v2 = vld [vmem:[#allocation2 + $0xa8] sm:$0xff]  ;;  %v10424_v3 = vld [vmem:[#allocation2 + $0xb1] sm:$0xff] }
  0x36   : > { %9139 = vmatprep.mubr.msk.f32.mxu1 %vm360_vm1, %v10364_v54  ;;  %13595 = vst [vmem:[#allocation12_spill] sm:$0xff] %v10410_v0  ;;  %13596 = vst [vmem:[#allocation13_spill] sm:$0xff] %v10414_v2  ;;  %v10426_v4 = vld [vmem:[#allocation2 + $0xb0] sm:$0xff]  ;;  %v10428_v7 = vld [vmem:[#allocation2 + $0xc1] sm:$0xff] }
  0x37   : > { %9090 = vmatmul.mubr.msk.f32.gmra.mxu0 %vm360_vm1, %v10376_v55  ;;  %13597 = vst [vmem:[#allocation14_spill] sm:$0xff] %v10426_v4  ;;  %v10430_v8 = vld [vmem:[#allocation2 + $0xc0] sm:$0xff]  ;;  %v10440_v9 = vld [vmem:[#allocation2 + $0xc9] sm:$0xff]  ;;  %v10446_v12 = vld [vmem:[#allocation2 + $0xd8] sm:$0xff] }
  0x38   : > { %9092 = vmatprep.mubr.msk.f32.mxu0 %vm360_vm1, %v10380_v57  ;;  %13598 = vst [vmem:[#allocation15_spill] sm:$0xff] %v10430_v8  ;;  %v10442_v10 = vld [vmem:[#allocation2 + $0xc8] sm:$0xff]  ;;  %v10444_v11 = vld [vmem:[#allocation2 + $0xd9] sm:$0xff]  ;;  %13600 = vst [vmem:[#allocation17_spill] sm:$0xff] %v10446_v12 }
  0x39   : > { %9140 = vmatmul.mubr.msk.f32.gmra.mxu1 %vm360_vm1, %v10378_v56  ;;  %13599 = vst [vmem:[#allocation16_spill] sm:$0xff] %v10442_v10  ;;  %v436_v13 = vld [vmem:[%s10178_s29 + $0xf0] sm:$0xff]  ;;  %v10463_v16 = vld [vmem:[#allocation2 + $0xe1] sm:$0xff]  ;;  %v10487_v31 = vld [vmem:[#allocation2 + $0xf8] sm:$0xff] }
  0x3a   : > { %9142 = vmatprep.mubr.msk.f32.mxu1 %vm360_vm1, %v10382_v58  ;;  %v10465_v17 = vld [vmem:[#allocation2 + $0xe0] sm:$0xff]  ;;  %v475_v21 = vmul.f32 %v10171_v5, %v436_v13  ;;  %v10469_v24 = vld [vmem:[#allocation2 + $0xf1] sm:$0xff]  ;;  %13603 = vst [vmem:[#allocation20_spill] sm:$0xff] %v10487_v31  ;;  %548 = vst.msk [vmem:[#allocation2 + $0x189] sm:$0xff] %vm360_vm1, %v515_v30 }
  0x3b   : > { %9093 = vmatmul.mubr.msk.f32.gmra.mxu0 %vm360_vm1, %v10392_v59  ;;  %13601 = vst [vmem:[#allocation18_spill] sm:$0xff] %v10465_v17  ;;  %v10471_v25 = vld [vmem:[#allocation2 + $0xf0] sm:$0xff]  ;;  %v10485_v5 = vld [vmem:[#allocation2 + $0xf9] sm:$0xff]  ;;  %v10493_v32 = vld [vmem:[#allocation2 + $0x108] sm:$0xff] }
  0x3c   : > { %9095 = vmatprep.mubr.msk.f32.mxu0 %vm360_vm1, %v10396_v61  ;;  %13602 = vst [vmem:[#allocation19_spill] sm:$0xff] %v10471_v25  ;;  %v514_v29 = vadd.f32 %v10183_v6, %v475_v21  ;;  %v10491_v6 = vld [vmem:[#allocation2 + $0x109] sm:$0xff]  ;;  %13604 = vst [vmem:[#allocation21_spill] sm:$0xff] %v10493_v32  ;;  %v10503_v33 = vld [vmem:[#allocation2 + $0x111] sm:$0xff] }
  0x3d   : > { %9143 = vmatmul.mubr.msk.f32.gmra.mxu1 %vm360_vm1, %v10394_v60  ;;  %v10505_v34 = vld [vmem:[#allocation2 + $0x110] sm:$0xff]  ;;  %v10507_v35 = vld [vmem:[#allocation2 + $0x121] sm:$0xff]  ;;  %v10523_v43 = vld [vmem:[#allocation2 + $0x139] sm:$0xff] }
  0x3e   : > { %9145 = vmatprep.mubr.msk.f32.mxu1 %vm360_vm1, %v10398_v62  ;;  %547 = vst.msk [vmem:[#allocation2 + $0x181] sm:$0xff] %vm360_vm1, %v514_v29  ;;  %13605 = vst [vmem:[#allocation22_spill] sm:$0xff] %v10505_v34  ;;  %v10509_v38 = vld [vmem:[#allocation2 + $0x120] sm:$0xff]  ;;  %v10519_v39 = vld [vmem:[#allocation2 + $0x129] sm:$0xff] }
  0x3f   : > { %9096 = vmatmul.mubr.msk.f32.gmra.mxu0 %vm360_vm1, %v10408_v63  ;;  %13606 = vst [vmem:[#allocation23_spill] sm:$0xff] %v10509_v38  ;;  %v10521_v40 = vld [vmem:[#allocation2 + $0x128] sm:$0xff]  ;;  %v10525_v44 = vld [vmem:[#allocation2 + $0x138] sm:$0xff]  ;;  %v10537_v46 = vld [vmem:[#allocation2 + $0x140] sm:$0xff] }
  0x40   : > { %9098 = vmatprep.mubr.msk.f32.mxu0 %vm360_vm1, %v10412_v1  ;;  %13607 = vst [vmem:[#allocation24_spill] sm:$0xff] %v10521_v40  ;;  %13608 = vst [vmem:[#allocation25_spill] sm:$0xff] %v10525_v44  ;;  %v10535_v45 = vld [vmem:[#allocation2 + $0x141] sm:$0xff]  ;;  %v10539_v47 = vld [vmem:[#allocation2 + $0x151] sm:$0xff] }
  0x41   : > { %9146 = vmatmul.mubr.msk.f32.gmra.mxu1 %vm360_vm1, %v10410_v0  ;;  %13609 = vst [vmem:[#allocation26_spill] sm:$0xff] %v10537_v46  ;;  %v10541_v48 = vld [vmem:[#allocation2 + $0x150] sm:$0xff]  ;;  %v10551_v49 = vld [vmem:[#allocation2 + $0x159] sm:$0xff]  ;;  %v10557_v15 = vld [vmem:[#allocation2 + $0x168] sm:$0xff] }
  0x42   : > { %9148 = vmatprep.mubr.msk.f32.mxu1 %vm360_vm1, %v10414_v2  ;;  %13610 = vst [vmem:[#allocation27_spill] sm:$0xff] %v10541_v48  ;;  %v10553_v52 = vld [vmem:[#allocation2 + $0x158] sm:$0xff]  ;;  %v10555_v13 = vld [vmem:[#allocation2 + $0x169] sm:$0xff] }
  0x43   : > { %9099 = vmatmul.mubr.msk.f32.gmra.mxu0 %vm360_vm1, %v10424_v3  ;;  %13611 = vst [vmem:[#allocation28_spill] sm:$0xff] %v10553_v52  ;;  %13612 = vst [vmem:[#allocation29_spill] sm:$0xff] %v10555_v13  ;;  %v10567_v21 = vld [vmem:[#allocation2 + $0x171] sm:$0xff]  ;;  %v1265_v29 = vld [vmem:[#allocation2 + $0x2] sm:$0xff] }
  0x44   : > { %9101 = vmatprep.mubr.msk.f32.mxu0 %vm360_vm1, %v10428_v7  ;;  %13613 = vst [vmem:[#allocation30_spill] sm:$0xff] %v10567_v21  ;;  %v10569_v23 = vld [vmem:[#allocation2 + $0x170] sm:$0xff] }
  0x45   : > { %9149 = vmatmul.mubr.msk.f32.gmra.mxu1 %vm360_vm1, %v10426_v4  ;;  %v1266_v30 = vld [vmem:[#allocation2 + $0xa] sm:$0xff] }
  0x46   : > { %9151 = vmatprep.mubr.msk.f32.mxu1 %vm360_vm1, %v10430_v8 }
  0x47   : > { %9102 = vmatmul.mubr.msk.f32.gmra.mxu0 %vm360_vm1, %v10440_v9 }
  0x48   : > { %9104 = vmatprep.mubr.msk.f32.mxu0 %vm360_vm1, %v10444_v11 }
  0x49   : > { %9152 = vmatmul.mubr.msk.f32.gmra.mxu1 %vm360_vm1, %v10442_v10 }
  0x4a   : > { %9154 = vmatprep.mubr.msk.f32.mxu1 %vm360_vm1, %v10446_v12 }
  0x4b   : > { %9105 = vmatmul.mubr.msk.f32.gmra.mxu0 %vm360_vm1, %v10463_v16 }
  0x4c   : > { %9107 = vmatprep.mubr.msk.f32.mxu0 %vm360_vm1, %v10469_v24 }
  0x4d   : > { %9155 = vmatmul.mubr.msk.f32.gmra.mxu1 %vm360_vm1, %v10465_v17 }
  0x4e   : > { %9157 = vmatprep.mubr.msk.f32.mxu1 %vm360_vm1, %v10471_v25 }
  0x4f   : > { %9108 = vmatmul.mubr.msk.f32.gmra.mxu0 %vm360_vm1, %v10485_v5 }
  0x50   : > { %9110 = vmatprep.mubr.msk.f32.mxu0 %vm360_vm1, %v10491_v6 }
  0x51   : > { %9158 = vmatmul.mubr.msk.f32.gmra.mxu1 %vm360_vm1, %v10487_v31 }
  0x52   : > { %9160 = vmatprep.mubr.msk.f32.mxu1 %vm360_vm1, %v10493_v32 }
  0x53   : > { %9111 = vmatmul.mubr.msk.f32.gmra.mxu0 %vm360_vm1, %v10503_v33 }
  0x54   : > { %9113 = vmatprep.mubr.msk.f32.mxu0 %vm360_vm1, %v10507_v35 }
  0x55   : > { %9161 = vmatmul.mubr.msk.f32.gmra.mxu1 %vm360_vm1, %v10505_v34 }
  0x56   : > { %9163 = vmatprep.mubr.msk.f32.mxu1 %vm360_vm1, %v10509_v38 }
  0x57   : > { %9114 = vmatmul.mubr.msk.f32.gmra.mxu0 %vm360_vm1, %v10519_v39 }
  0x58   : > { %9116 = vmatprep.mubr.msk.f32.mxu0 %vm360_vm1, %v10523_v43 }
  0x59   : > { %9164 = vmatmul.mubr.msk.f32.gmra.mxu1 %vm360_vm1, %v10521_v40 }
  0x5a   : > { %9166 = vmatprep.mubr.msk.f32.mxu1 %vm360_vm1, %v10525_v44 }
  0x5b   : > { %9117 = vmatmul.mubr.msk.f32.gmra.mxu0 %vm360_vm1, %v10535_v45 }
  0x5c   : > { %9119 = vmatprep.mubr.msk.f32.mxu0 %vm360_vm1, %v10539_v47 }
  0x5d   : > { %9167 = vmatmul.mubr.msk.f32.gmra.mxu1 %vm360_vm1, %v10537_v46 }
  0x5e   : > { %9169 = vmatprep.mubr.msk.f32.mxu1 %vm360_vm1, %v10541_v48 }
  0x5f   : > { %9120 = vmatmul.mubr.msk.f32.gmra.mxu0 %vm360_vm1, %v10551_v49 }
  0x60   : > { %9122 = vmatprep.mubr.msk.f32.mxu0 %vm360_vm1, %v10555_v13  ;;  %v10578_v13 = vld [vmem:[#allocation2 + $0x1a] sm:$0xff] }
  0x61   : > { %9170 = vmatmul.mubr.msk.f32.gmra.mxu1 %vm360_vm1, %v10553_v52 }
  0x62   : > { %9172 = vmatprep.mubr.msk.f32.mxu1 %vm360_vm1, %v10557_v15 }
  0x63   : > { %9123 = vmatmul.mubr.msk.f32.gmra.mxu0 %vm360_vm1, %v10567_v21  ;;  %v10586_v21 = vld [vmem:[%s13517_s1 + $0x18] sm:$0xf] }
  0x64   : > { %9177 = vmatprep.mubr.msk.f32.mxu0 %vm360_vm1, %v1265_v29  ;;  %v10591_v29 = vld [vmem:[%s13517_s1 + $0x1c] sm:$0xf] }
  0x65   : > { %9173 = vmatmul.mubr.msk.f32.gmra.mxu1 %vm360_vm1, %v10569_v23 }
  0x66   : > { %9227 = vmatprep.mubr.msk.f32.mxu1 %vm360_vm1, %v10284_v19  ;;  %v10597_v19 = vld [vmem:[#allocation2 + $0x22] sm:$0xff] }
  0x67   : > { %9178 = vmatmul.mubr.msk.f32.vlgmr.msra.gmra.mxu0 %vm360_vm1, %v1266_v30  ;;  %v10627_v30 = vld [vmem:[#allocation2 + $0x52] sm:$0xff] }
  0x68   : > { %9276 = vmatpush3.msk.msra.mxu0 %vm712_vm0, %v10200_v22  ;;  %9180 = vmatprep.mubr.msk.f32.mxu0 %vm360_vm1, %v10578_v13  ;;  %v10615_v22 = vld [vmem:[#allocation2 + $0x3a] sm:$0xff] }
  0x69   : > { %9228 = vmatmul.mubr.msk.f32.vlgmr.msra.gmra.mxu1 %vm360_vm1, %v10296_v26  ;;  %v10601_v26 = vld [vmem:[#allocation2 + $0x32] sm:$0xff]  ;;  %9375 = vmatprep.subr.msk.mxu0 %vm712_vm0, %v10586_v21 }
  0x6a   : > { %9230 = vmatprep.mubr.msk.f32.mxu1 %vm360_vm1, %v10300_v28  ;;  %9326 = vmatpush3.msk.msra.mxu1 %vm712_vm0, %v10456_v14  ;;  %v10619_v14 = vld [vmem:[#allocation2 + $0x4a] sm:$0xff]  ;;  %v10765_v28 = vld [vmem:[#allocation2 + $0x180] sm:$0xff] }
  0x6b   : > { %9425 = vmatprep.subr.msk.mxu1 %vm712_vm0, %v10591_v29  ;;  %9181 = vmatmul.mubr.msk.f32.gmra.mxu0 %vm360_vm1, %v10597_v19  ;;  %13614 = vst [vmem:[#allocation31_spill] sm:$0xff] %v10765_v28 }
  0x6c   : > { %9183 = vmatprep.mubr.msk.f32.mxu0 %vm360_vm1, %v10601_v26 }
  0x6d   : > { %9231 = vmatmul.mubr.msk.f32.gmra.mxu1 %vm360_vm1, %v10326_v37  ;;  %v10631_v37 = vld [vmem:[#allocation2 + $0x62] sm:$0xff] }
  0x6e   : > { %9233 = vmatprep.mubr.msk.f32.mxu1 %vm360_vm1, %v10334_v42  ;;  %v10643_v42 = vld [vmem:[#allocation2 + $0x7a] sm:$0xff] }
  0x6f   : > { %9184 = vmatmul.mubr.msk.f32.gmra.mxu0 %vm360_vm1, %v10615_v22 }
  0x70   : > { %9186 = vmatprep.mubr.msk.f32.mxu0 %vm360_vm1, %v10619_v14 }
  0x71   : > { %9234 = vmatmul.mubr.msk.f32.gmra.mxu1 %vm360_vm1, %v10358_v51  ;;  %v10639_v51 = vld [vmem:[#allocation2 + $0x6a] sm:$0xff] }
  0x72   : > { %9236 = vmatprep.mubr.msk.f32.mxu1 %vm360_vm1, %v10364_v54  ;;  %v10655_v54 = vld [vmem:[#allocation2 + $0x92] sm:$0xff] }
  0x73   : > { %9187 = vmatmul.mubr.msk.f32.gmra.mxu0 %vm360_vm1, %v10627_v30 }
  0x74   : > { %9189 = vmatprep.mubr.msk.f32.mxu0 %vm360_vm1, %v10631_v37 }
  0x75   : > { %9237 = vmatmul.mubr.msk.f32.gmra.mxu1 %vm360_vm1, %v10378_v56  ;;  %v10651_v56 = vld [vmem:[#allocation2 + $0x82] sm:$0xff] }
  0x76   : > { %9239 = vmatprep.mubr.msk.f32.mxu1 %vm360_vm1, %v10382_v58  ;;  %v10667_v58 = vld [vmem:[#allocation2 + $0xaa] sm:$0xff] }
  0x77   : > { %9190 = vmatmul.mubr.msk.f32.gmra.mxu0 %vm360_vm1, %v10639_v51 }
  0x78   : > { %9192 = vmatprep.mubr.msk.f32.mxu0 %vm360_vm1, %v10643_v42 }
  0x79   : > { %9240 = vmatmul.mubr.msk.f32.gmra.mxu1 %vm360_vm1, %v10394_v60  ;;  %v10663_v60 = vld [vmem:[#allocation2 + $0x9a] sm:$0xff] }
  0x7a   : > { %9242 = vmatprep.mubr.msk.f32.mxu1 %vm360_vm1, %v10398_v62  ;;  %v10679_v62 = vld [vmem:[#allocation2 + $0xc2] sm:$0xff] }
  0x7b   : > { %9193 = vmatmul.mubr.msk.f32.gmra.mxu0 %vm360_vm1, %v10651_v56 }
  0x7c   : > { %9195 = vmatprep.mubr.msk.f32.mxu0 %vm360_vm1, %v10655_v54 }
  0x7d   : > { %9243 = vmatmul.mubr.msk.f32.gmra.mxu1 %vm360_vm1, %v10410_v0  ;;  %v10675_v0 = vld [vmem:[#allocation2 + $0xb2] sm:$0xff] }
  0x7e   : > { %9245 = vmatprep.mubr.msk.f32.mxu1 %vm360_vm1, %v10414_v2  ;;  %v10691_v2 = vld [vmem:[#allocation2 + $0xda] sm:$0xff] }
  0x7f   : > { %9196 = vmatmul.mubr.msk.f32.gmra.mxu0 %vm360_vm1, %v10663_v60 }
  0x80   : > { %9198 = vmatprep.mubr.msk.f32.mxu0 %vm360_vm1, %v10667_v58 }
  0x81   : > { %9246 = vmatmul.mubr.msk.f32.gmra.mxu1 %vm360_vm1, %v10426_v4  ;;  %v10687_v4 = vld [vmem:[#allocation2 + $0xca] sm:$0xff] }
  0x82   : > { %9248 = vmatprep.mubr.msk.f32.mxu1 %vm360_vm1, %v10430_v8  ;;  %v10703_v8 = vld [vmem:[#allocation2 + $0xf2] sm:$0xff] }
  0x83   : > { %9199 = vmatmul.mubr.msk.f32.gmra.mxu0 %vm360_vm1, %v10675_v0 }
  0x84   : > { %9201 = vmatprep.mubr.msk.f32.mxu0 %vm360_vm1, %v10679_v62 }
  0x85   : > { %9249 = vmatmul.mubr.msk.f32.gmra.mxu1 %vm360_vm1, %v10442_v10  ;;  %v10699_v10 = vld [vmem:[#allocation2 + $0xe2] sm:$0xff] }
  0x86   : > { %9251 = vmatprep.mubr.msk.f32.mxu1 %vm360_vm1, %v10446_v12  ;;  %v10715_v12 = vld [vmem:[#allocation2 + $0x10a] sm:$0xff] }
  0x87   : > { %9202 = vmatmul.mubr.msk.f32.gmra.mxu0 %vm360_vm1, %v10687_v4 }
  0x88   : > { %9204 = vmatprep.mubr.msk.f32.mxu0 %vm360_vm1, %v10691_v2 }
  0x89   : > { %9252 = vmatmul.mubr.msk.f32.gmra.mxu1 %vm360_vm1, %v10465_v17  ;;  %v10711_v17 = vld [vmem:[#allocation2 + $0xfa] sm:$0xff] }
  0x8a   : > { %9254 = vmatprep.mubr.msk.f32.mxu1 %vm360_vm1, %v10471_v25  ;;  %v10727_v25 = vld [vmem:[#allocation2 + $0x122] sm:$0xff] }
  0x8b   : > { %9205 = vmatmul.mubr.msk.f32.gmra.mxu0 %vm360_vm1, %v10699_v10 }
  0x8c   : > { %9207 = vmatprep.mubr.msk.f32.mxu0 %vm360_vm1, %v10703_v8 }
  0x8d   : > { %9255 = vmatmul.mubr.msk.f32.gmra.mxu1 %vm360_vm1, %v10487_v31  ;;  %v10723_v31 = vld [vmem:[#allocation2 + $0x112] sm:$0xff] }
  0x8e   : > { %9257 = vmatprep.mubr.msk.f32.mxu1 %vm360_vm1, %v10493_v32  ;;  %v10739_v32 = vld [vmem:[#allocation2 + $0x13a] sm:$0xff] }
  0x8f   : > { %9208 = vmatmul.mubr.msk.f32.gmra.mxu0 %vm360_vm1, %v10711_v17 }
  0x90   : > { %9210 = vmatprep.mubr.msk.f32.mxu0 %vm360_vm1, %v10715_v12 }
  0x91   : > { %9258 = vmatmul.mubr.msk.f32.gmra.mxu1 %vm360_vm1, %v10505_v34  ;;  %v10735_v34 = vld [vmem:[#allocation2 + $0x12a] sm:$0xff] }
  0x92   : > { %9260 = vmatprep.mubr.msk.f32.mxu1 %vm360_vm1, %v10509_v38  ;;  %v10751_v38 = vld [vmem:[#allocation2 + $0x152] sm:$0xff] }
  0x93   : > { %9211 = vmatmul.mubr.msk.f32.gmra.mxu0 %vm360_vm1, %v10723_v31 }
  0x94   : > { %9213 = vmatprep.mubr.msk.f32.mxu0 %vm360_vm1, %v10727_v25 }
  0x95   : > { %9261 = vmatmul.mubr.msk.f32.gmra.mxu1 %vm360_vm1, %v10521_v40  ;;  %v10747_v40 = vld [vmem:[#allocation2 + $0x142] sm:$0xff] }
  0x96   : > { %9263 = vmatprep.mubr.msk.f32.mxu1 %vm360_vm1, %v10525_v44  ;;  %v10763_v44 = vld [vmem:[#allocation2 + $0x16a] sm:$0xff] }
  0x97   : > { %9214 = vmatmul.mubr.msk.f32.gmra.mxu0 %vm360_vm1, %v10735_v34 }
  0x98   : > { %9216 = vmatprep.mubr.msk.f32.mxu0 %vm360_vm1, %v10739_v32 }
  0x99   : > { %9264 = vmatmul.mubr.msk.f32.gmra.mxu1 %vm360_vm1, %v10537_v46  ;;  %v10759_v46 = vld [vmem:[#allocation2 + $0x15a] sm:$0xff] }
  0x9a   : > { %9266 = vmatprep.mubr.msk.f32.mxu1 %vm360_vm1, %v10541_v48  ;;  %v10777_v48 = vld [vmem:[#allocation2 + $0x188] sm:$0xff] }
  0x9b   : > { %9217 = vmatmul.mubr.msk.f32.gmra.mxu0 %vm360_vm1, %v10747_v40 }
  0x9c   : > { %9219 = vmatprep.mubr.msk.f32.mxu0 %vm360_vm1, %v10751_v38 }
  0x9d   : > { %9267 = vmatmul.mubr.msk.f32.gmra.mxu1 %vm360_vm1, %v10553_v52  ;;  %v10773_v52 = vld [vmem:[#allocation2 + $0x172] sm:$0xff] }
  0x9e   : > { %9269 = vmatprep.mubr.msk.f32.mxu1 %vm360_vm1, %v10557_v15 }
  0x9f   : > { %9220 = vmatmul.mubr.msk.f32.gmra.mxu0 %vm360_vm1, %v10759_v46 }
  0xa0   : > { %9222 = vmatprep.mubr.msk.f32.mxu0 %vm360_vm1, %v10763_v44 }
  0xa1   : > { %9270 = vmatmul.mubr.msk.f32.gmra.mxu1 %vm360_vm1, %v10569_v23 }
  0xa2   : > { %9272 = vmatprep.mubr.msk.f32.mxu1 %vm360_vm1, %v10765_v28  ;;  %v10794_v28 = vld [vmem:[%s13517_s1 + $0x20] sm:$0xf] }
  0xa3   : > { %9223 = vmatmul.mubr.msk.f32.gmra.mxu0 %vm360_vm1, %v10773_v52 }
  0xa4   : > { %9277 = vmatprep.mubr.msk.f32.mxu0 %vm360_vm1, %v10282_v18  ;;  %v13615_v18 = vld [vmem:[#allocation29_spill] sm:$0xff] }
  0xa5   : > { %9273 = vmatmul.mubr.msk.f32.gmra.mxu1 %vm360_vm1, %v10777_v48 }
  0xa6   : > { %9327 = vmatprep.mubr.msk.f32.mxu1 %vm360_vm1, %v10578_v13 }
  0xa7   : > { %9278 = vmatmul.mubr.msk.f32.vlgmr.msra.gmra.mxu0 %vm360_vm1, %v10286_v20  ;;  %v10910_v20 = vld [vmem:[#allocation2 + $0x181] sm:$0xff] }
  0xa8   : > { %9376 = vmatpush3.msk.msra.mxu0 %vm712_vm0, %v10586_v21  ;;  %9280 = vmatprep.mubr.msk.f32.mxu0 %vm360_vm1, %v10298_v27 }
  0xa9   : > { %9328 = vmatmul.mubr.msk.f32.vlgmr.msra.gmra.mxu1 %vm360_vm1, %v10597_v19  ;;  %9475 = vmatprep.subr.msk.mxu0 %vm712_vm0, %v10794_v28 }
  0xaa   : > { %9330 = vmatprep.mubr.msk.f32.mxu1 %vm360_vm1, %v10601_v26  ;;  %9426 = vmatpush3.msk.msra.mxu1 %vm712_vm0, %v10591_v29 }
  0xab   : > { %9281 = vmatmul.mubr.msk.f32.gmra.mxu0 %vm360_vm1, %v10324_v36 }
  0xac   : > { %9283 = vmatprep.mubr.msk.f32.mxu0 %vm360_vm1, %v10332_v41 }
  0xad   : > { %9331 = vmatmul.mubr.msk.f32.gmra.mxu1 %vm360_vm1, %v10615_v22 }
  0xae   : > { %9333 = vmatprep.mubr.msk.f32.mxu1 %vm360_vm1, %v10619_v14 }
  0xaf   : > { %9284 = vmatmul.mubr.msk.f32.gmra.mxu0 %vm360_vm1, %v10356_v50 }
  0xb0   : > { %9286 = vmatprep.mubr.msk.f32.mxu0 %vm360_vm1, %v10362_v53 }
  0xb1   : > { %9334 = vmatmul.mubr.msk.f32.gmra.mxu1 %vm360_vm1, %v10627_v30 }
  0xb2   : > { %9336 = vmatprep.mubr.msk.f32.mxu1 %vm360_vm1, %v10631_v37 }
  0xb3   : > { %9287 = vmatmul.mubr.msk.f32.gmra.mxu0 %vm360_vm1, %v10376_v55 }
  0xb4   : > { %9289 = vmatprep.mubr.msk.f32.mxu0 %vm360_vm1, %v10380_v57 }
  0xb5   : > { %9337 = vmatmul.mubr.msk.f32.gmra.mxu1 %vm360_vm1, %v10639_v51 }
  0xb6   : > { %9339 = vmatprep.mubr.msk.f32.mxu1 %vm360_vm1, %v10643_v42 }
  0xb7   : > { %9290 = vmatmul.mubr.msk.f32.gmra.mxu0 %vm360_vm1, %v10392_v59 }
  0xb8   : > { %9292 = vmatprep.mubr.msk.f32.mxu0 %vm360_vm1, %v10396_v61 }
  0xb9   : > { %9340 = vmatmul.mubr.msk.f32.gmra.mxu1 %vm360_vm1, %v10651_v56 }
  0xba   : > { %9342 = vmatprep.mubr.msk.f32.mxu1 %vm360_vm1, %v10655_v54 }
  0xbb   : > { %9293 = vmatmul.mubr.msk.f32.gmra.mxu0 %vm360_vm1, %v10408_v63 }
  0xbc   : > { %9295 = vmatprep.mubr.msk.f32.mxu0 %vm360_vm1, %v10412_v1 }
  0xbd   : > { %9343 = vmatmul.mubr.msk.f32.gmra.mxu1 %vm360_vm1, %v10663_v60 }
  0xbe   : > { %9345 = vmatprep.mubr.msk.f32.mxu1 %vm360_vm1, %v10667_v58 }
  0xbf   : > { %9296 = vmatmul.mubr.msk.f32.gmra.mxu0 %vm360_vm1, %v10424_v3 }
  0xc0   : > { %9298 = vmatprep.mubr.msk.f32.mxu0 %vm360_vm1, %v10428_v7 }
  0xc1   : > { %9346 = vmatmul.mubr.msk.f32.gmra.mxu1 %vm360_vm1, %v10675_v0 }
  0xc2   : > { %9348 = vmatprep.mubr.msk.f32.mxu1 %vm360_vm1, %v10679_v62 }
  0xc3   : > { %9299 = vmatmul.mubr.msk.f32.gmra.mxu0 %vm360_vm1, %v10440_v9 }
  0xc4   : > { %9301 = vmatprep.mubr.msk.f32.mxu0 %vm360_vm1, %v10444_v11 }
  0xc5   : > { %9349 = vmatmul.mubr.msk.f32.gmra.mxu1 %vm360_vm1, %v10687_v4 }
  0xc6   : > { %9351 = vmatprep.mubr.msk.f32.mxu1 %vm360_vm1, %v10691_v2 }
  0xc7   : > { %9302 = vmatmul.mubr.msk.f32.gmra.mxu0 %vm360_vm1, %v10463_v16 }
  0xc8   : > { %9304 = vmatprep.mubr.msk.f32.mxu0 %vm360_vm1, %v10469_v24 }
  0xc9   : > { %9352 = vmatmul.mubr.msk.f32.gmra.mxu1 %vm360_vm1, %v10699_v10  ;;  %v13616_v10 = vld [vmem:[#allocation30_spill] sm:$0xff] }
  0xca   : > { %9354 = vmatprep.mubr.msk.f32.mxu1 %vm360_vm1, %v10703_v8  ;;  %v10912_v8 = vld [vmem:[#allocation2 + $0x182] sm:$0xff] }
  0xcb   : > { %9305 = vmatmul.mubr.msk.f32.gmra.mxu0 %vm360_vm1, %v10485_v5 }
  0xcc   : > { %9307 = vmatprep.mubr.msk.f32.mxu0 %vm360_vm1, %v10491_v6 }
  0xcd   : > { %9355 = vmatmul.mubr.msk.f32.gmra.mxu1 %vm360_vm1, %v10711_v17  ;;  %v10924_v17 = vld [vmem:[#allocation2 + $0x18a] sm:$0xff] }
  0xce   : > { %9357 = vmatprep.mubr.msk.f32.mxu1 %vm360_vm1, %v10715_v12  ;;  %v10920_v12 = vld [vmem:[#allocation2 + $0x189] sm:$0xff] }
  0xcf   : > { %9308 = vmatmul.mubr.msk.f32.gmra.mxu0 %vm360_vm1, %v10503_v33 }
  0xd0   : > { %9310 = vmatprep.mubr.msk.f32.mxu0 %vm360_vm1, %v10507_v35 }
  0xd1   : > { %9358 = vmatmul.mubr.msk.f32.gmra.mxu1 %vm360_vm1, %v10723_v31 }
  0xd2   : > { %9360 = vmatprep.mubr.msk.f32.mxu1 %vm360_vm1, %v10727_v25 }
  0xd3   : > { %9311 = vmatmul.mubr.msk.f32.gmra.mxu0 %vm360_vm1, %v10519_v39 }
  0xd4   : > { %9313 = vmatprep.mubr.msk.f32.mxu0 %vm360_vm1, %v10523_v43 }
  0xd5   : > { %9361 = vmatmul.mubr.msk.f32.gmra.mxu1 %vm360_vm1, %v10735_v34 }
  0xd6   : > { %9363 = vmatprep.mubr.msk.f32.mxu1 %vm360_vm1, %v10739_v32 }
  0xd7   : > { %9314 = vmatmul.mubr.msk.f32.gmra.mxu0 %vm360_vm1, %v10535_v45 }
  0xd8   : > { %9316 = vmatprep.mubr.msk.f32.mxu0 %vm360_vm1, %v10539_v47 }
  0xd9   : > { %9364 = vmatmul.mubr.msk.f32.gmra.mxu1 %vm360_vm1, %v10747_v40 }
  0xda   : > { %9366 = vmatprep.mubr.msk.f32.mxu1 %vm360_vm1, %v10751_v38  ;;  %v13617_v38 = vld [vmem:[#allocation3_spill] sm:$0xff] }
  0xdb   : > { %9317 = vmatmul.mubr.msk.f32.gmra.mxu0 %vm360_vm1, %v10551_v49 }
  0xdc   : > { %9319 = vmatprep.mubr.msk.f32.mxu0 %vm360_vm1, %v13615_v18 }
  0xdd   : > { %9367 = vmatmul.mubr.msk.f32.gmra.mxu1 %vm360_vm1, %v10759_v46  ;;  %v13618_v46 = vld [vmem:[#allocation4_spill] sm:$0xff] }
  0xde   : > { %9369 = vmatprep.mubr.msk.f32.mxu1 %vm360_vm1, %v10763_v44 }
  0xdf   : > { %9320 = vmatmul.mubr.msk.f32.gmra.mxu0 %vm360_vm1, %v13616_v10 }
  0xe0   : > { %9322 = vmatprep.mubr.msk.f32.mxu0 %vm360_vm1, %v10910_v20 }
  0xe1   : > { %9370 = vmatmul.mubr.msk.f32.gmra.mxu1 %vm360_vm1, %v10773_v52  ;;  %v13619_v52 = vld [vmem:[#allocation5_spill] sm:$0xff] }
  0xe2   : > { %9372 = vmatprep.mubr.msk.f32.mxu1 %vm360_vm1, %v10912_v8 }
  0xe3   : > { %9323 = vmatmul.mubr.msk.f32.gmra.mxu0 %vm360_vm1, %v10920_v12 }
  0xe4   : > { %9377 = vmatprep.mubr.msk.f32.mxu0 %vm360_vm1, %v13617_v38  ;;  %v13623_v38 = vld [vmem:[#allocation9_spill] sm:$0xff] }
  0xe5   : > { %9373 = vmatmul.mubr.msk.f32.gmra.mxu1 %vm360_vm1, %v10924_v17 }
  0xe6   : > { %9427 = vmatprep.mubr.msk.f32.mxu1 %vm360_vm1, %v10298_v27  ;;  %v13620_v27 = vld [vmem:[#allocation6_spill] sm:$0xff] }
  0xe7   : > { %v9079_v25 = vpop.f32.mrf.mxu0  ;;  %9378 = vmatmul.mubr.msk.f32.vlgmr.msra.gmra.mxu0 %vm360_vm1, %v13618_v46 }
  0xe8   : > { %9476 = vmatpush3.msk.msra.mxu0 %vm712_vm0, %v10794_v28  ;;  %9380 = vmatprep.mubr.msk.f32.mxu0 %vm360_vm1, %v13619_v52 }
  0xe9   : > { %v9129_v31 = vpop.f32.mrf.mxu1  ;;  %v782_v34 = vpop.f32.mrf.mxu0  ;;  %9428 = vmatmul.mubr.msk.f32.vlgmr.msra.gmra.mxu1 %vm360_vm1, %v10324_v36  ;;  %v13621_v36 = vld [vmem:[#allocation7_spill] sm:$0xff] }
  0xea   : > { %v10928_v32 = vadd.f32 %v9129_v31, %v9079_v25  ;;  %9430 = vmatprep.mubr.msk.f32.mxu1 %vm360_vm1, %v10332_v41 }
  0xeb   : > { %v1106_v40 = vpop.f32.mrf.mxu1  ;;  %v9082_v13 = vpop.f32.mrf.mxu0  ;;  %9381 = vmatmul.mubr.msk.f32.gmra.mxu0 %vm360_vm1, %v13620_v27  ;;  %v13625_v27 = vld [vmem:[#allocation11_spill] sm:$0xff] }
  0xec   : > { %v10936_v44 = vadd.f32 %v1106_v40, %v782_v34  ;;  %9383 = vmatprep.mubr.msk.f32.mxu0 %vm360_vm1, %v13621_v36  ;;  %v13622_v34 = vld [vmem:[#allocation8_spill] sm:$0xff] }
  0xed   : > { %v9132_v21 = vpop.f32.mrf.mxu1  ;;  %9431 = vmatmul.mubr.msk.f32.gmra.mxu1 %vm360_vm1, %v10356_v50  ;;  %v792_v28 = vpop.f32.mrf.mxu0 }
  0xee   : > { %v10952_v29 = vadd.f32 %v9132_v21, %v9082_v13  ;;  %9433 = vmatprep.mubr.msk.f32.mxu1 %vm360_vm1, %v10362_v53  ;;  %v13624_v21 = vld [vmem:[#allocation10_spill] sm:$0xff] }
  0xef   : > { %v1116_v19 = vpop.f32.mrf.mxu1  ;;  %v9085_v41 = vpop.f32.mrf.mxu0  ;;  %9384 = vmatmul.mubr.msk.f32.gmra.mxu0 %vm360_vm1, %v13622_v34  ;;  %v13627_v34 = vld [vmem:[#allocation13_spill] sm:$0xff] }
  0xf0   : > { %v10958_v25 = vadd.f32 %v1116_v19, %v792_v28  ;;  %9386 = vmatprep.mubr.msk.f32.mxu0 %vm360_vm1, %v13623_v38 }
  0xf1   : > { %v9135_v31 = vpop.f32.mrf.mxu1  ;;  %9434 = vmatmul.mubr.msk.f32.gmra.mxu1 %vm360_vm1, %v10376_v55  ;;  %v802_v53 = vpop.f32.mrf.mxu0 }
  0xf2   : > { %v10964_v50 = vadd.f32 %v9135_v31, %v9085_v41  ;;  %9436 = vmatprep.mubr.msk.f32.mxu1 %vm360_vm1, %v10380_v57  ;;  %v13626_v31 = vld [vmem:[#allocation12_spill] sm:$0xff] }
  0xf3   : > { %v1126_v40 = vpop.f32.mrf.mxu1  ;;  %v9088_v52 = vpop.f32.mrf.mxu0  ;;  %9387 = vmatmul.mubr.msk.f32.gmra.mxu0 %vm360_vm1, %v13624_v21  ;;  %v13629_v21 = vld [vmem:[#allocation15_spill] sm:$0xff] }
  0xf4   : > { %v10970_v46 = vadd.f32 %v1126_v40, %v802_v53  ;;  %9389 = vmatprep.mubr.msk.f32.mxu0 %vm360_vm1, %v13625_v27 }
  0xf5   : > { %v9138_v13 = vpop.f32.mrf.mxu1  ;;  %9437 = vmatmul.mubr.msk.f32.gmra.mxu1 %vm360_vm1, %v10392_v59  ;;  %v812_v57 = vpop.f32.mrf.mxu0 }
  0xf6   : > { %v10976_v55 = vadd.f32 %v9138_v13, %v9088_v52  ;;  %9439 = vmatprep.mubr.msk.f32.mxu1 %vm360_vm1, %v10396_v61  ;;  %v13628_v13 = vld [vmem:[#allocation14_spill] sm:$0xff] }
  0xf7   : > { %v1136_v36 = vpop.f32.mrf.mxu1  ;;  %v9091_v19 = vpop.f32.mrf.mxu0  ;;  %9390 = vmatmul.mubr.msk.f32.gmra.mxu0 %vm360_vm1, %v13626_v31  ;;  %v13631_v31 = vld [vmem:[#allocation17_spill] sm:$0xff] }
  0xf8   : > { %v10982_v28 = vadd.f32 %v1136_v36, %v812_v57  ;;  %9392 = vmatprep.mubr.msk.f32.mxu0 %vm360_vm1, %v13627_v34 }
  0xf9   : > { %v9141_v41 = vpop.f32.mrf.mxu1  ;;  %9440 = vmatmul.mubr.msk.f32.gmra.mxu1 %vm360_vm1, %v10408_v63  ;;  %v822_v61 = vpop.f32.mrf.mxu0 }
  0xfa   : > { %v10988_v59 = vadd.f32 %v9141_v41, %v9091_v19  ;;  %9442 = vmatprep.mubr.msk.f32.mxu1 %vm360_vm1, %v10412_v1  ;;  %v13630_v41 = vld [vmem:[#allocation16_spill] sm:$0xff] }
  0xfb   : > { %v1146_v38 = vpop.f32.mrf.mxu1  ;;  %v9094_v40 = vpop.f32.mrf.mxu0  ;;  %9393 = vmatmul.mubr.msk.f32.gmra.mxu0 %vm360_vm1, %v13628_v13  ;;  %v13633_v13 = vld [vmem:[#allocation19_spill] sm:$0xff] }
  0xfc   : > { %v10994_v53 = vadd.f32 %v1146_v38, %v822_v61  ;;  %9395 = vmatprep.mubr.msk.f32.mxu0 %vm360_vm1, %v13629_v21 }
  0xfd   : > { %v9144_v52 = vpop.f32.mrf.mxu1  ;;  %9443 = vmatmul.mubr.msk.f32.gmra.mxu1 %vm360_vm1, %v10424_v3  ;;  %v832_v1 = vpop.f32.mrf.mxu0 }
  0xfe   : > { %v11000_v63 = vadd.f32 %v9144_v52, %v9094_v40  ;;  %9445 = vmatprep.mubr.msk.f32.mxu1 %vm360_vm1, %v10428_v7  ;;  %v13632_v52 = vld [vmem:[#allocation18_spill] sm:$0xff] }
  0xff   : > { %v1156_v27 = vpop.f32.mrf.mxu1  ;;  %v9097_v36 = vpop.f32.mrf.mxu0  ;;  %9396 = vmatmul.mubr.msk.f32.gmra.mxu0 %vm360_vm1, %v13630_v41  ;;  %v13635_v41 = vld [vmem:[#allocation21_spill] sm:$0xff] }
 0x100   : > { %v11006_v57 = vadd.f32 %v1156_v27, %v832_v1  ;;  %9398 = vmatprep.mubr.msk.f32.mxu0 %vm360_vm1, %v13631_v31 }
 0x101   : > { %v9147_v19 = vpop.f32.mrf.mxu1  ;;  %9446 = vmatmul.mubr.msk.f32.gmra.mxu1 %vm360_vm1, %v10440_v9  ;;  %v842_v7 = vpop.f32.mrf.mxu0 }
 0x102   : > { %v11012_v3 = vadd.f32 %v9147_v19, %v9097_v36  ;;  %9448 = vmatprep.mubr.msk.f32.mxu1 %vm360_vm1, %v10444_v11  ;;  %v13634_v19 = vld [vmem:[#allocation20_spill] sm:$0xff] }
 0x103   : > { %v1166_v34 = vpop.f32.mrf.mxu1  ;;  %v9100_v38 = vpop.f32.mrf.mxu0  ;;  %9399 = vmatmul.mubr.msk.f32.gmra.mxu0 %vm360_vm1, %v13632_v52 }
 0x104   : > { %v11018_v61 = vadd.f32 %v1166_v34, %v842_v7  ;;  %9401 = vmatprep.mubr.msk.f32.mxu0 %vm360_vm1, %v13633_v13 }
 0x105   : > { %v9150_v40 = vpop.f32.mrf.mxu1  ;;  %9449 = vmatmul.mubr.msk.f32.gmra.mxu1 %vm360_vm1, %v10463_v16  ;;  %v852_v11 = vpop.f32.mrf.mxu0 }
 0x106   : > { %v11024_v9 = vadd.f32 %v9150_v40, %v9100_v38  ;;  %9451 = vmatprep.mubr.msk.f32.mxu1 %vm360_vm1, %v10469_v24  ;;  %v13636_v38 = vld [vmem:[#allocation22_spill] sm:$0xff]  ;;  %v13637_v40 = vld [vmem:[#allocation23_spill] sm:$0xff] }
 0x107   : > { %v1176_v21 = vpop.f32.mrf.mxu1  ;;  %v9103_v27 = vpop.f32.mrf.mxu0  ;;  %9402 = vmatmul.mubr.msk.f32.gmra.mxu0 %vm360_vm1, %v13634_v19 }
 0x108   : > { %v11030_v1 = vadd.f32 %v1176_v21, %v852_v11  ;;  %9404 = vmatprep.mubr.msk.f32.mxu0 %vm360_vm1, %v13635_v41  ;;  %v13638_v21 = vld [vmem:[#allocation24_spill] sm:$0xff] }
 0x109   : > { %v9153_v36 = vpop.f32.mrf.mxu1  ;;  %9452 = vmatmul.mubr.msk.f32.gmra.mxu1 %vm360_vm1, %v10485_v5  ;;  %v11042_v24 = vpop.f32.mrf.mxu0 }
 0x10a   : > { %v11036_v16 = vadd.f32 %v9153_v36, %v9103_v27  ;;  %9454 = vmatprep.mubr.msk.f32.mxu1 %vm360_vm1, %v10491_v6  ;;  %v13639_v27 = vld [vmem:[#allocation25_spill] sm:$0xff] }
 0x10b   : > { %v11044_v31 = vpop.f32.mrf.mxu1  ;;  %v9106_v7 = vpop.f32.mrf.mxu0  ;;  %9405 = vmatmul.mubr.msk.f32.gmra.mxu0 %vm360_vm1, %v13636_v38 }
 0x10c   : > { %9407 = vmatprep.mubr.msk.f32.mxu0 %vm360_vm1, %v13637_v40 }
 0x10d   : > { %v9156_v34 = vpop.f32.mrf.mxu1  ;;  %9455 = vmatmul.mubr.msk.f32.gmra.mxu1 %vm360_vm1, %v10503_v33  ;;  %v11056_v6 = vpop.f32.mrf.mxu0 }
 0x10e   : > { %v11050_v5 = vadd.f32 %v9156_v34, %v9106_v7  ;;  %9457 = vmatprep.mubr.msk.f32.mxu1 %vm360_vm1, %v10507_v35  ;;  %v13640_v7 = vld [vmem:[#allocation26_spill] sm:$0xff]  ;;  %v13641_v34 = vld [vmem:[#allocation27_spill] sm:$0xff] }
 0x10f   : > { %v11058_v52 = vpop.f32.mrf.mxu1  ;;  %v9109_v13 = vpop.f32.mrf.mxu0  ;;  %9408 = vmatmul.mubr.msk.f32.gmra.mxu0 %vm360_vm1, %v13638_v21 }
 0x110   : > { %9410 = vmatprep.mubr.msk.f32.mxu0 %vm360_vm1, %v13639_v27 }
 0x111   : > { %v9159_v11 = vpop.f32.mrf.mxu1  ;;  %9458 = vmatmul.mubr.msk.f32.gmra.mxu1 %vm360_vm1, %v10519_v39  ;;  %v11070_v35 = vpop.f32.mrf.mxu0 }
 0x112   : > { %v11064_v33 = vadd.f32 %v9159_v11, %v9109_v13  ;;  %9460 = vmatprep.mubr.msk.f32.mxu1 %vm360_vm1, %v10523_v43  ;;  %v13642_v11 = vld [vmem:[#allocation28_spill] sm:$0xff] }
 0x113   : > { %v11072_v36 = vpop.f32.mrf.mxu1  ;;  %v9112_v19 = vpop.f32.mrf.mxu0  ;;  %9411 = vmatmul.mubr.msk.f32.gmra.mxu0 %vm360_vm1, %v13640_v7  ;;  %v2856_v7 = vld [vmem:[#allocation2 + $0x198] sm:$0xff] }
 0x114   : > { %9413 = vmatprep.mubr.msk.f32.mxu0 %vm360_vm1, %v13641_v34  ;;  %v3246_v34 = vld [vmem:[#allocation2 + $0x199] sm:$0xff] }
 0x115   : > { %v9162_v41 = vpop.f32.mrf.mxu1  ;;  %9461 = vmatmul.mubr.msk.f32.gmra.mxu1 %vm360_vm1, %v10535_v45  ;;  %v11084_v43 = vpop.f32.mrf.mxu0 }
 0x116   : > { %v11078_v39 = vadd.f32 %v9162_v41, %v9112_v19  ;;  %9463 = vmatprep.mubr.msk.f32.mxu1 %vm360_vm1, %v10539_v47  ;;  %v13643_v41 = vld [vmem:[#allocation31_spill] sm:$0xff] }
 0x117   : > { %v11086_v38 = vpop.f32.mrf.mxu1  ;;  %v9115_v40 = vpop.f32.mrf.mxu0  ;;  %9414 = vmatmul.mubr.msk.f32.gmra.mxu0 %vm360_vm1, %v13642_v11 }
 0x118   : > { %9416 = vmatprep.mubr.msk.f32.mxu0 %vm360_vm1, %v10557_v15 }
 0x119   : > { %v9165_v13 = vpop.f32.mrf.mxu1  ;;  %9464 = vmatmul.mubr.msk.f32.gmra.mxu1 %vm360_vm1, %v10551_v49  ;;  %v11098_v47 = vpop.f32.mrf.mxu0 }
 0x11a   : > { %v11092_v45 = vadd.f32 %v9165_v13, %v9115_v40  ;;  %9466 = vmatprep.mubr.msk.f32.mxu1 %vm360_vm1, %v13615_v18 }
 0x11b   : > { %v11100_v21 = vpop.f32.mrf.mxu1  ;;  %v9118_v27 = vpop.f32.mrf.mxu0  ;;  %9417 = vmatmul.mubr.msk.f32.gmra.mxu0 %vm360_vm1, %v10569_v23 }
 0x11c   : > { %9419 = vmatprep.mubr.msk.f32.mxu0 %vm360_vm1, %v13643_v41 }
 0x11d   : > { %v9168_v19 = vpop.f32.mrf.mxu1  ;;  %9467 = vmatmul.mubr.msk.f32.gmra.mxu1 %vm360_vm1, %v13616_v10  ;;  %v11112_v15 = vpop.f32.mrf.mxu0  ;;  %v2857_v10 = vld [vmem:[#allocation2 + $0x1a0] sm:$0xff] }
 0x11e   : > { %v11106_v49 = vadd.f32 %v9168_v19, %v9118_v27  ;;  %9469 = vmatprep.mubr.msk.f32.mxu1 %vm360_vm1, %v10910_v20  ;;  %v3247_v20 = vld [vmem:[#allocation2 + $0x1a1] sm:$0xff] }
 0x11f   : > { %v11114_v18 = vpop.f32.mrf.mxu1  ;;  %v9121_v40 = vpop.f32.mrf.mxu0  ;;  %9420 = vmatmul.mubr.msk.f32.gmra.mxu0 %vm360_vm1, %v10777_v48 }
 0x120   : > { %9422 = vmatprep.mubr.msk.f32.mxu0 %vm360_vm1, %v2856_v7 }
 0x121   : > { %v9171_v13 = vpop.f32.mrf.mxu1  ;;  %9470 = vmatmul.mubr.msk.f32.gmra.mxu1 %vm360_vm1, %v10920_v12  ;;  %v11124_v11 = vpop.f32.mrf.mxu0 }
 0x122   : > { %v11120_v23 = vadd.f32 %v9171_v13, %v9121_v40  ;;  %9472 = vmatprep.mubr.msk.f32.mxu1 %vm360_vm1, %v3246_v34 }
 0x123   : > { %v11126_v27 = vpop.f32.mrf.mxu1  ;;  %v9124_v19 = vpop.f32.mrf.mxu0  ;;  %9423 = vmatmul.mubr.msk.f32.gmra.mxu0 %vm360_vm1, %v2857_v10 }
 0x124   : > { %9477 = vmatprep.mubr.msk.f32.mxu0 %vm360_vm1, %v10601_v26 }
 0x125   : > { %v9174_v41 = vpop.f32.mrf.mxu1  ;;  %9473 = vmatmul.mubr.msk.f32.gmra.mxu1 %vm360_vm1, %v3247_v20  ;;  %v11134_v12 = vpop.f32.mrf.mxu0 }
 0x126   : > { %v11130_v48 = vadd.f32 %v9174_v41, %v9124_v19 }
 0x127   : > { %v11136_v7 = vpop.f32.mrf.mxu1  ;;  %v9179_v34 = vpop.f32.mrf.mxu0  ;;  %9478 = vmatmul.mubr.msk.f32.vlgmr.msra.gmra.mxu0 %vm360_vm1, %v10615_v22 }
 0x128   : > { %13644 = vst [vmem:[#allocation29_spill] sm:$0xff] %v11136_v7  ;;  %v1624_v13 = vadd.f32 %v9179_v34, %v10928_v32  ;;  %9480 = vmatprep.mubr.msk.f32.mxu0 %vm360_vm1, %v10619_v14 }
 0x129   : > { %v9229_v40 = vpop.f32.mrf.mxu1  ;;  %v1464_v10 = vpop.f32.mrf.mxu0 }
 0x12a   : > { %v11146_v19 = vadd.f32 %v1464_v10, %v10936_v44  ;;  %v11148_v26 = vadd.f32 %v9229_v40, %v1624_v13 }
 0x12b   : > { %v11143_v20 = vpop.f32.mrf.mxu1  ;;  %v9182_v41 = vpop.f32.mrf.mxu0  ;;  %9481 = vmatmul.mubr.msk.f32.gmra.mxu0 %vm360_vm1, %v10627_v30 }
 0x12c   : > { %v1626_v22 = vadd.f32 %v9182_v41, %v10952_v29  ;;  %9483 = vmatprep.mubr.msk.f32.mxu0 %vm360_vm1, %v10631_v37 }
 0x12d   : > { %v9232_v7 = vpop.f32.mrf.mxu1  ;;  %v1474_v32 = vpop.f32.mrf.mxu0 }
 0x12e   : > { %v11158_v34 = vadd.f32 %v1474_v32, %v10958_v25  ;;  %v11160_v44 = vadd.f32 %v9232_v7, %v1626_v22 }
 0x12f   : > { %v11155_v14 = vpop.f32.mrf.mxu1  ;;  %v9185_v40 = vpop.f32.mrf.mxu0  ;;  %9484 = vmatmul.mubr.msk.f32.gmra.mxu0 %vm360_vm1, %v10639_v51 }
 0x130   : > { %v1628_v30 = vadd.f32 %v9185_v40, %v10964_v50  ;;  %9486 = vmatprep.mubr.msk.f32.mxu0 %vm360_vm1, %v10643_v42 }
 0x131   : > { %v9235_v13 = vpop.f32.mrf.mxu1  ;;  %v1484_v29 = vpop.f32.mrf.mxu0 }
 0x132   : > { %v11170_v10 = vadd.f32 %v1484_v29, %v10970_v46  ;;  %v11172_v25 = vadd.f32 %v9235_v13, %v1628_v30 }
 0x133   : > { %v11167_v37 = vpop.f32.mrf.mxu1  ;;  %v9188_v7 = vpop.f32.mrf.mxu0  ;;  %9487 = vmatmul.mubr.msk.f32.gmra.mxu0 %vm360_vm1, %v10651_v56 }
 0x134   : > { %v1630_v51 = vadd.f32 %v9188_v7, %v10976_v55  ;;  %9489 = vmatprep.mubr.msk.f32.mxu0 %vm360_vm1, %v10655_v54  ;;  %v8170_v54 = vld [vmem:[%s13518_s2 + $0x4] sm:$0xf] }
 0x135   : > { %v9238_v41 = vpop.f32.mrf.mxu1  ;;  %v1494_v50 = vpop.f32.mrf.mxu0  ;;  %9525 = vmatprep.subr.msk.mxu1 %vm712_vm0, %v8170_v54 }
 0x136   : > { %v11182_v22 = vadd.f32 %v1494_v50, %v10982_v28  ;;  %v11184_v46 = vadd.f32 %v9238_v41, %v1630_v51  ;;  %9526 = vmatpush3.msk.msra.mxu1 %vm712_vm0, %v8170_v54 }
 0x137   : > { %v11179_v42 = vpop.f32.mrf.mxu1  ;;  %v9191_v32 = vpop.f32.mrf.mxu0  ;;  %9490 = vmatmul.mubr.msk.f32.gmra.mxu0 %vm360_vm1, %v10663_v60 }
 0x138   : > { %v1632_v56 = vadd.f32 %v9191_v32, %v10988_v59  ;;  %9492 = vmatprep.mubr.msk.f32.mxu0 %vm360_vm1, %v10667_v58 }
 0x139   : > { %v9241_v40 = vpop.f32.mrf.mxu1  ;;  %v1504_v55 = vpop.f32.mrf.mxu0 }
 0x13a   : > { %v11198_v28 = vadd.f32 %v1504_v55, %v10994_v53  ;;  %v11200_v30 = vadd.f32 %v9241_v40, %v1632_v56  ;;  %v3622_v40 = vld [vmem:[#allocation2 + $0xf2] sm:$0xff] }
 0x13b   : > { %v11194_v13 = vpop.f32.mrf.mxu1  ;;  %v9194_v60 = vpop.f32.mrf.mxu0  ;;  %9493 = vmatmul.mubr.msk.f32.gmra.mxu0 %vm360_vm1, %v10675_v0 }
 0x13c   : > { %v1634_v59 = vadd.f32 %v9194_v60, %v11000_v63  ;;  %9495 = vmatprep.mubr.msk.f32.mxu0 %vm360_vm1, %v10679_v62  ;;  %v3621_v63 = vld [vmem:[#allocation2 + $0xe2] sm:$0xff] }
 0x13d   : > { %v9244_v58 = vpop.f32.mrf.mxu1  ;;  %v1514_v29 = vpop.f32.mrf.mxu0 }
 0x13e   : > { %v11211_v53 = vadd.f32 %v1514_v29, %v11006_v57  ;;  %v11213_v41 = vadd.f32 %v9244_v58, %v1634_v59  ;;  %v3624_v58 = vld [vmem:[#allocation2 + $0x10a] sm:$0xff] }
 0x13f   : > { %v11208_v7 = vpop.f32.mrf.mxu1  ;;  %v9197_v51 = vpop.f32.mrf.mxu0  ;;  %9496 = vmatmul.mubr.msk.f32.gmra.mxu0 %vm360_vm1, %v10687_v4 }
 0x140   : > { %v1636_v0 = vadd.f32 %v9197_v51, %v11012_v3  ;;  %9498 = vmatprep.mubr.msk.f32.mxu0 %vm360_vm1, %v10691_v2  ;;  %v3623_v3 = vld [vmem:[#allocation2 + $0xfa] sm:$0xff] }
 0x141   : > { %v9247_v50 = vpop.f32.mrf.mxu1  ;;  %v1524_v62 = vpop.f32.mrf.mxu0 }
 0x142   : > { %v11223_v57 = vadd.f32 %v1524_v62, %v11018_v61  ;;  %v11225_v56 = vadd.f32 %v9247_v50, %v1636_v0  ;;  %v1187_v50 = vadd.f32 %v11044_v31, %v11042_v24  ;;  %v3625_v0 = vld [vmem:[#allocation2 + $0x112] sm:$0xff] }
 0x143   : > { %v11220_v32 = vpop.f32.mrf.mxu1  ;;  %v9200_v54 = vpop.f32.mrf.mxu0  ;;  %9499 = vmatmul.mubr.msk.f32.gmra.mxu0 %vm360_vm1, %v3621_v63 }
 0x144   : > { %v1638_v55 = vadd.f32 %v9200_v54, %v11024_v9  ;;  %9501 = vmatprep.mubr.msk.f32.mxu0 %vm360_vm1, %v3622_v40  ;;  %v3626_v40 = vld [vmem:[#allocation2 + $0x122] sm:$0xff] }
 0x145   : > { %v9250_v4 = vpop.f32.mrf.mxu1  ;;  %v1534_v2 = vpop.f32.mrf.mxu0 }
 0x146   : > { %v11233_v59 = vadd.f32 %v1534_v2, %v11030_v1  ;;  %v11235_v61 = vadd.f32 %v9250_v4, %v1638_v55  ;;  %v3628_v2 = vld [vmem:[#allocation2 + $0x13a] sm:$0xff] }
 0x147   : > { %v11230_v60 = vpop.f32.mrf.mxu1  ;;  %v9203_v29 = vpop.f32.mrf.mxu0  ;;  %9502 = vmatmul.mubr.msk.f32.gmra.mxu0 %vm360_vm1, %v3623_v3 }
 0x148   : > { %v1640_v9 = vadd.f32 %v9203_v29, %v11036_v16  ;;  %9504 = vmatprep.mubr.msk.f32.mxu0 %vm360_vm1, %v3624_v58  ;;  %v3627_v16 = vld [vmem:[#allocation2 + $0x12a] sm:$0xff] }
 0x149   : > { %v9253_v51 = vpop.f32.mrf.mxu1  ;;  %v1544_v63 = vpop.f32.mrf.mxu0 }
 0x14a   : > { %v11244_v1 = vadd.f32 %v1544_v63, %v1187_v50  ;;  %v11246_v54 = vadd.f32 %v9253_v51, %v1640_v9  ;;  %v3629_v9 = vld [vmem:[#allocation2 + $0x142] sm:$0xff]  ;;  %v3630_v63 = vld [vmem:[#allocation2 + $0x152] sm:$0xff] }
 0x14b   : > { %v11242_v62 = vpop.f32.mrf.mxu1  ;;  %v9206_v4 = vpop.f32.mrf.mxu0  ;;  %9505 = vmatmul.mubr.msk.f32.gmra.mxu0 %vm360_vm1, %v3625_v0 }
 0x14c   : > { %13645 = vst [vmem:[#allocation30_spill] sm:$0xff] %v11242_v62  ;;  %13646 = vst [vmem:[#allocation3_spill] sm:$0xff] %v11244_v1  ;;  %v1642_v3 = vadd.f32 %v9206_v4, %v11050_v5  ;;  %9507 = vmatprep.mubr.msk.f32.mxu0 %vm360_vm1, %v3626_v40 }
 0x14d   : > { %v9256_v55 = vpop.f32.mrf.mxu1  ;;  %v11251_v24 = vpop.f32.mrf.mxu0 }
 0x14e   : > { %v11255_v58 = vadd.f32 %v9256_v55, %v1642_v3 }
 0x14f   : > { %v11253_v31 = vpop.f32.mrf.mxu1  ;;  %v9209_v29 = vpop.f32.mrf.mxu0  ;;  %9508 = vmatmul.mubr.msk.f32.gmra.mxu0 %vm360_vm1, %v3627_v16  ;;  %v3631_v16 = vld [vmem:[#allocation2 + $0x15a] sm:$0xff] }
 0x150   : > { %13647 = vst [vmem:[#allocation4_spill] sm:$0xff] %v11253_v31  ;;  %v1644_v50 = vadd.f32 %v9209_v29, %v11064_v33  ;;  %9510 = vmatprep.mubr.msk.f32.mxu0 %vm360_vm1, %v3628_v2  ;;  %v3632_v29 = vld [vmem:[#allocation2 + $0x16a] sm:$0xff] }
 0x151   : > { %v9259_v51 = vpop.f32.mrf.mxu1  ;;  %v11260_v5 = vpop.f32.mrf.mxu0 }
 0x152   : > { %v11264_v40 = vadd.f32 %v9259_v51, %v1644_v50 }
 0x153   : > { %v11262_v0 = vpop.f32.mrf.mxu1  ;;  %v9212_v4 = vpop.f32.mrf.mxu0  ;;  %9511 = vmatmul.mubr.msk.f32.gmra.mxu0 %vm360_vm1, %v3629_v9  ;;  %v3633_v9 = vld [vmem:[#allocation2 + $0x172] sm:$0xff] }
 0x154   : > { %13648 = vst [vmem:[#allocation5_spill] sm:$0xff] %v11262_v0  ;;  %v1646_v3 = vadd.f32 %v9212_v4, %v11078_v39  ;;  %9513 = vmatprep.mubr.msk.f32.mxu0 %vm360_vm1, %v3630_v63 }
 0x155   : > { %v9262_v55 = vpop.f32.mrf.mxu1  ;;  %v11269_v33 = vpop.f32.mrf.mxu0 }
 0x156   : > { %v11273_v31 = vadd.f32 %v9262_v55, %v1646_v3 }
 0x157   : > { %v11271_v2 = vpop.f32.mrf.mxu1  ;;  %v9215_v0 = vpop.f32.mrf.mxu0  ;;  %9514 = vmatmul.mubr.msk.f32.gmra.mxu0 %vm360_vm1, %v3631_v16 }
 0x158   : > { %13649 = vst [vmem:[#allocation6_spill] sm:$0xff] %v11271_v2  ;;  %v1648_v50 = vadd.f32 %v9215_v0, %v11092_v45  ;;  %9516 = vmatprep.mubr.msk.f32.mxu0 %vm360_vm1, %v3632_v29  ;;  %v3636_v0 = vld [vmem:[#allocation2 + $0x19a] sm:$0xff] }
 0x159   : > { %v9265_v51 = vpop.f32.mrf.mxu1  ;;  %v11278_v39 = vpop.f32.mrf.mxu0 }
 0x15a   : > { %v11282_v4 = vadd.f32 %v9265_v51, %v1648_v50 }
 0x15b   : > { %v11280_v63 = vpop.f32.mrf.mxu1  ;;  %v9218_v62 = vpop.f32.mrf.mxu0  ;;  %9517 = vmatmul.mubr.msk.f32.gmra.mxu0 %vm360_vm1, %v3633_v9 }
 0x15c   : > { %13650 = vst [vmem:[#allocation7_spill] sm:$0xff] %v11280_v63  ;;  %v1650_v3 = vadd.f32 %v9218_v62, %v11106_v49  ;;  %9519 = vmatprep.mubr.msk.f32.mxu0 %vm360_vm1, %v10912_v8  ;;  %v3637_v49 = vld [vmem:[#allocation2 + $0x1a2] sm:$0xff] }
 0x15d   : > { %v9268_v55 = vpop.f32.mrf.mxu1  ;;  %v11288_v16 = vpop.f32.mrf.mxu0 }
 0x15e   : > { %v11292_v29 = vadd.f32 %v9268_v55, %v1650_v3 }
 0x15f   : > { %v11290_v45 = vpop.f32.mrf.mxu1  ;;  %v9221_v2 = vpop.f32.mrf.mxu0  ;;  %9520 = vmatmul.mubr.msk.f32.gmra.mxu0 %vm360_vm1, %v10924_v17 }
 0x160   : > { %13651 = vst [vmem:[#allocation8_spill] sm:$0xff] %v11290_v45  ;;  %v1652_v50 = vadd.f32 %v9221_v2, %v11120_v23  ;;  %9522 = vmatprep.mubr.msk.f32.mxu0 %vm360_vm1, %v3636_v0 }
 0x161   : > { %v9271_v51 = vpop.f32.mrf.mxu1  ;;  %v11298_v62 = vpop.f32.mrf.mxu0 }
 0x162   : > { %v11302_v9 = vadd.f32 %v9271_v51, %v1652_v50 }
 0x163   : > { %v11300_v8 = vpop.f32.mrf.mxu1  ;;  %v9224_v45 = vpop.f32.mrf.mxu0  ;;  %9523 = vmatmul.mubr.msk.f32.gmra.mxu0 %vm360_vm1, %v3637_v49 }
 0x164   : > { %13652 = vst [vmem:[#allocation9_spill] sm:$0xff] %v11300_v8  ;;  %v1654_v3 = vadd.f32 %v9224_v45, %v11130_v48 }
 0x165   : > { %v9274_v55 = vpop.f32.mrf.mxu1  ;;  %v11306_v63 = vpop.f32.mrf.mxu0 }
 0x166   : > { %v11310_v23 = vadd.f32 %v9274_v55, %v1654_v3 }
 0x167   : > { %v11308_v17 = vpop.f32.mrf.mxu1  ;;  %v9279_v2 = vpop.f32.mrf.mxu0 }
 0x168   : > { %13653 = vst [vmem:[#allocation10_spill] sm:$0xff] %v11308_v17  ;;  %v11315_v1 = vadd.f32 %v9279_v2, %v11148_v26 }
 0x169   : > { %v11312_v0 = vpop.f32.mrf.mxu1  ;;  %v11317_v51 = vpop.f32.mrf.mxu0 }
 0x16a   : > { %13654 = vst [vmem:[#allocation11_spill] sm:$0xff] %v11312_v0  ;;  %13655 = vst [vmem:[#allocation12_spill] sm:$0xff] %v11315_v1 }
 0x16b   : > { %v11319_v50 = vpop.f32.mrf.mxu1  ;;  %v9282_v49 = vpop.f32.mrf.mxu0 }
 0x16c   : > { %13656 = vst [vmem:[#allocation13_spill] sm:$0xff] %v11319_v50  ;;  %v11324_v48 = vadd.f32 %v9282_v49, %v11160_v44  ;;  %v4241_v49 = vld [vmem:[%s13518_s2] sm:$0xf] }
 0x16d   : > { %v11321_v8 = vpop.f32.mrf.mxu1  ;;  %v11326_v45 = vpop.f32.mrf.mxu0  ;;  %9575 = vmatprep.subr.msk.mxu0 %vm712_vm0, %v4241_v49 }
 0x16e   : > { %13657 = vst [vmem:[#allocation14_spill] sm:$0xff] %v11321_v8  ;;  %13658 = vst [vmem:[#allocation15_spill] sm:$0xff] %v11324_v48  ;;  %9576 = vmatpush3.msk.msra.mxu0 %vm712_vm0, %v4241_v49 }
 0x16f   : > { %v11328_v55 = vpop.f32.mrf.mxu1  ;;  %v9285_v3 = vpop.f32.mrf.mxu0 }
 0x170   : > { %13659 = vst [vmem:[#allocation16_spill] sm:$0xff] %v11328_v55  ;;  %v11333_v26 = vadd.f32 %v9285_v3, %v11172_v25  ;;  %v4242_v25 = vld [vmem:[#allocation2 + $0x1] sm:$0xff] }
 0x171   : > { %v11330_v17 = vpop.f32.mrf.mxu1  ;;  %v11335_v2 = vpop.f32.mrf.mxu0  ;;  %v4209_v3 = vld [vmem:[#allocation2] sm:$0xff]  ;;  %9527 = vmatprep.mubr.msk.f32.mxu1 %vm360_vm1, %v4242_v25 }
 0x172   : > { %13660 = vst [vmem:[#allocation17_spill] sm:$0xff] %v11330_v17  ;;  %13661 = vst [vmem:[#allocation18_spill] sm:$0xff] %v11333_v26  ;;  %9577 = vmatprep.mubr.msk.f32.mxu0 %vm360_vm1, %v4209_v3 }
 0x173   : > { %v11337_v0 = vpop.f32.mrf.mxu1  ;;  %v9288_v50 = vpop.f32.mrf.mxu0 }
 0x174   : > { %13662 = vst [vmem:[#allocation19_spill] sm:$0xff] %v11337_v0  ;;  %v11342_v44 = vadd.f32 %v9288_v50, %v11184_v46  ;;  %v4210_v0 = vld [vmem:[#allocation2 + $0x8] sm:$0xff] }
 0x175   : > { %v11339_v1 = vpop.f32.mrf.mxu1  ;;  %v11347_v55 = vpop.f32.mrf.mxu0  ;;  %9578 = vmatmul.mubr.msk.f32.vlgmr.msra.gmra.mxu0 %vm360_vm1, %v4210_v0 }
 0x176   : > { %13663 = vst [vmem:[#allocation20_spill] sm:$0xff] %v11339_v1  ;;  %13664 = vst [vmem:[#allocation21_spill] sm:$0xff] %v11342_v44  ;;  %v4243_v1 = vld [vmem:[#allocation2 + $0x9] sm:$0xff] }
 0x177   : > { %v11349_v17 = vpop.f32.mrf.mxu1  ;;  %v9291_v46 = vpop.f32.mrf.mxu0  ;;  %9528 = vmatmul.mubr.msk.f32.vlgmr.msra.gmra.mxu1 %vm360_vm1, %v4243_v1 }
 0x178   : > { %13665 = vst [vmem:[#allocation22_spill] sm:$0xff] %v11349_v17  ;;  %v11359_v44 = vadd.f32 %v9291_v46, %v11200_v30 }
 0x179   : > { %v11354_v50 = vpop.f32.mrf.mxu1  ;;  %v11362_v17 = vpop.f32.mrf.mxu0 }
 0x17a   : > { %13666 = vst [vmem:[#allocation23_spill] sm:$0xff] %v11354_v50  ;;  %13667 = vst [vmem:[#allocation24_spill] sm:$0xff] %v11359_v44 }
 0x17b   : > { %v11364_v26 = vpop.f32.mrf.mxu1  ;;  %v9294_v25 = vpop.f32.mrf.mxu0 }
 0x17c   : > { %13668 = vst [vmem:[#allocation25_spill] sm:$0xff] %v11364_v26  ;;  %v11369_v8 = vadd.f32 %v9294_v25, %v11213_v41 }
 0x17d   : > { %v11366_v49 = vpop.f32.mrf.mxu1  ;;  %v11371_v50 = vpop.f32.mrf.mxu0 }
 0x17e   : > { %13669 = vst [vmem:[#allocation26_spill] sm:$0xff] %v11366_v49  ;;  %13670 = vst [vmem:[#allocation27_spill] sm:$0xff] %v11369_v8  ;;  %v8237_v49 = vld [vmem:[%s13518_s2 + $0x8] sm:$0xf] }
 0x17f   : > { %v11373_v3 = vpop.f32.mrf.mxu1  ;;  %v9297_v1 = vpop.f32.mrf.mxu0  ;;  %9625 = vmatprep.subr.msk.mxu1 %vm712_vm0, %v8237_v49 }
 0x180   : > { %13671 = vst [vmem:[#allocation28_spill] sm:$0xff] %v11373_v3  ;;  %v11378_v30 = vadd.f32 %v9297_v1, %v11225_v56  ;;  %9626 = vmatpush3.msk.msra.mxu1 %vm712_vm0, %v8237_v49 }
 0x181   : > { %v11375_v48 = vpop.f32.mrf.mxu1  ;;  %v11380_v0 = vpop.f32.mrf.mxu0 }
 0x182   : > { %13672 = vst [vmem:[#allocation31_spill] sm:$0xff] %v11375_v48  ;;  %13673 = vst [vmem:[#allocation32_spill] sm:$0xff] %v11378_v30 }
 0x183   : > { %v11382_v46 = vpop.f32.mrf.mxu1  ;;  %v9300_v41 = vpop.f32.mrf.mxu0 }
 0x184   : > { %13674 = vst [vmem:[#allocation33_spill] sm:$0xff] %v11382_v46  ;;  %v11391_v3 = vadd.f32 %v9300_v41, %v11235_v61 }
 0x185   : > { %v11387_v25 = vpop.f32.mrf.mxu1  ;;  %v11394_v56 = vpop.f32.mrf.mxu0 }
 0x186   : > { %13675 = vst [vmem:[#allocation34_spill] sm:$0xff] %v11387_v25  ;;  %13676 = vst [vmem:[#allocation35_spill] sm:$0xff] %v11391_v3 }
 0x187   : > { %v11396_v1 = vpop.f32.mrf.mxu1  ;;  %v9303_v48 = vpop.f32.mrf.mxu0 }
 0x188   : > { %13677 = vst [vmem:[#allocation36_spill] sm:$0xff] %v11396_v1  ;;  %v11401_v30 = vadd.f32 %v9303_v48, %v11246_v54 }
 0x189   : > { %v11398_v46 = vpop.f32.mrf.mxu1  ;;  %v11403_v8 = vpop.f32.mrf.mxu0 }
 0x18a   : > { %13678 = vst [vmem:[#allocation37_spill] sm:$0xff] %v11398_v46  ;;  %13679 = vst [vmem:[#allocation38_spill] sm:$0xff] %v11401_v30 }
 0x18b   : > { %v11405_v25 = vpop.f32.mrf.mxu1  ;;  %v9306_v26 = vpop.f32.mrf.mxu0 }
 0x18c   : > { %13680 = vst [vmem:[#allocation39_spill] sm:$0xff] %v11405_v25  ;;  %v11410_v61 = vadd.f32 %v9306_v26, %v11255_v58 }
 0x18d   : > { %v11407_v44 = vpop.f32.mrf.mxu1  ;;  %v11412_v49 = vpop.f32.mrf.mxu0 }
 0x18e   : > { %13681 = vst [vmem:[#allocation40_spill] sm:$0xff] %v11407_v44  ;;  %13682 = vst [vmem:[#allocation41_spill] sm:$0xff] %v11410_v61 }
 0x18f   : > { %v11414_v41 = vpop.f32.mrf.mxu1  ;;  %v9309_v1 = vpop.f32.mrf.mxu0 }
 0x190   : > { %13683 = vst [vmem:[#allocation42_spill] sm:$0xff] %v11414_v41  ;;  %v11419_v54 = vadd.f32 %v9309_v1, %v11264_v40 }
 0x191   : > { %v11416_v3 = vpop.f32.mrf.mxu1  ;;  %v11421_v48 = vpop.f32.mrf.mxu0 }
 0x192   : > { %13684 = vst [vmem:[#allocation43_spill] sm:$0xff] %v11416_v3  ;;  %13685 = vst [vmem:[#allocation44_spill] sm:$0xff] %v11419_v54 }
 0x193   : > { %v11423_v46 = vpop.f32.mrf.mxu1  ;;  %v9312_v25 = vpop.f32.mrf.mxu0 }
 0x194   : > { %13686 = vst [vmem:[#allocation45_spill] sm:$0xff] %v11423_v46  ;;  %v11428_v58 = vadd.f32 %v9312_v25, %v11273_v31 }
 0x195   : > { %v11425_v30 = vpop.f32.mrf.mxu1  ;;  %v11430_v26 = vpop.f32.mrf.mxu0 }
 0x196   : > { %13687 = vst [vmem:[#allocation46_spill] sm:$0xff] %v11425_v30  ;;  %13688 = vst [vmem:[#allocation47_spill] sm:$0xff] %v11428_v58 }
 0x197   : > { %v11432_v44 = vpop.f32.mrf.mxu1  ;;  %v9315_v41 = vpop.f32.mrf.mxu0 }
 0x198   : > { %13689 = vst [vmem:[#allocation48_spill] sm:$0xff] %v11432_v44  ;;  %v11437_v40 = vadd.f32 %v9315_v41, %v11282_v4 }
 0x199   : > { %v11434_v61 = vpop.f32.mrf.mxu1  ;;  %v11439_v1 = vpop.f32.mrf.mxu0 }
 0x19a   : > { %13690 = vst [vmem:[#allocation49_spill] sm:$0xff] %v11434_v61  ;;  %13691 = vst [vmem:[#allocation50_spill] sm:$0xff] %v11437_v40 }
 0x19b   : > { %v11441_v3 = vpop.f32.mrf.mxu1  ;;  %v9318_v46 = vpop.f32.mrf.mxu0 }
 0x19c   : > { %13692 = vst [vmem:[#allocation51_spill] sm:$0xff] %v11441_v3  ;;  %v11446_v31 = vadd.f32 %v9318_v46, %v11292_v29 }
 0x19d   : > { %v11443_v54 = vpop.f32.mrf.mxu1  ;;  %v11448_v25 = vpop.f32.mrf.mxu0 }
 0x19e   : > { %13693 = vst [vmem:[#allocation52_spill] sm:$0xff] %v11443_v54  ;;  %13694 = vst [vmem:[#allocation53_spill] sm:$0xff] %v11446_v31 }
 0x19f   : > { %v11450_v30 = vpop.f32.mrf.mxu1  ;;  %v9321_v44 = vpop.f32.mrf.mxu0 }
 0x1a0   : > { %13695 = vst [vmem:[#allocation54_spill] sm:$0xff] %v11450_v30  ;;  %v11455_v4 = vadd.f32 %v9321_v44, %v11302_v9 }
 0x1a1   : > { %v11452_v58 = vpop.f32.mrf.mxu1  ;;  %v11457_v41 = vpop.f32.mrf.mxu0 }
 0x1a2   : > { %13696 = vst [vmem:[#allocation55_spill] sm:$0xff] %v11452_v58  ;;  %13697 = vst [vmem:[#allocation56_spill] sm:$0xff] %v11455_v4 }
 0x1a3   : > { %v11459_v61 = vpop.f32.mrf.mxu1  ;;  %v9324_v3 = vpop.f32.mrf.mxu0 }
 0x1a4   : > { %13698 = vst [vmem:[#allocation57_spill] sm:$0xff] %v11459_v61  ;;  %v11464_v29 = vadd.f32 %v9324_v3, %v11310_v23 }
 0x1a5   : > { %v11461_v40 = vpop.f32.mrf.mxu1  ;;  %v11466_v46 = vpop.f32.mrf.mxu0 }
 0x1a6   : > { %13699 = vst [vmem:[#allocation58_spill] sm:$0xff] %v11461_v40  ;;  %13700 = vst [vmem:[#allocation59_spill] sm:$0xff] %v11464_v29 }
 0x1a7   : > { %13701 = vst [vmem:[#allocation60_spill] sm:$0xff] %v11466_v46  ;;  %v11468_v54 = vpop.f32.mrf.mxu1  ;;  %v11470_v30 = vpop.f32.mrf.mxu0 }
 0x1a8   : > { %13702 = vst [vmem:[#allocation61_spill] sm:$0xff] %v11468_v54 }
 0x1a9   : > { %v11472_v58 = vpop.f32.mrf.mxu1  ;;  %v11474_v9 = vpop.f32.mrf.mxu0 }
 0x1aa   : > { %13703 = vst [vmem:[#allocation62_spill] sm:$0xff] %v11472_v58 }
 0x1ab   : > { %v11476_v44 = vpop.f32.mrf.mxu1  ;;  %v11478_v4 = vpop.f32.mrf.mxu0 }
 0x1ac   : > { %13704 = vst [vmem:[#allocation63_spill] sm:$0xff] %v11476_v44  ;;  %13705 = vst [vmem:[#allocation64_spill] sm:$0xff] %v11478_v4  ;;  %v8271_v44 = vld [vmem:[%s13518_s2 + $0xc] sm:$0xf] }
 0x1ad   : > { %v11480_v61 = vpop.f32.mrf.mxu1  ;;  %v11482_v40 = vpop.f32.mrf.mxu0  ;;  %9675 = vmatprep.subr.msk.mxu0 %vm712_vm0, %v8271_v44 }
 0x1ae   : > { %13706 = vst [vmem:[#allocation65_spill] sm:$0xff] %v11480_v61  ;;  %13707 = vst [vmem:[#allocation66_spill] sm:$0xff] %v11482_v40  ;;  %v8305_v61 = vld [vmem:[%s13518_s2 + $0x10] sm:$0xf]  ;;  %9676 = vmatpush3.msk.msra.mxu0 %vm712_vm0, %v8271_v44 }
 0x1af   : > { %v11484_v23 = vpop.f32.mrf.mxu0  ;;  %v11486_v3 = vpop.f32.mrf.mxu1  ;;  %9725 = vmatprep.subr.msk.mxu1 %vm712_vm0, %v8305_v61 }
 0x1b0   : > { %13708 = vst [vmem:[#allocation67_spill] sm:$0xff] %v11484_v23  ;;  %13709 = vst [vmem:[#allocation68_spill] sm:$0xff] %v11486_v3 }
 0x1b1   : > { %v11488_v29 = vpop.f32.mrf.mxu0  ;;  %v11492_v46 = vpop.f32.mrf.mxu1 }
 0x1b2   : > { %13710 = vst [vmem:[#allocation69_spill] sm:$0xff] %v11488_v29  ;;  %13712 = vst [vmem:[#allocation71_spill] sm:$0xff] %v11492_v46 }
 0x1b3   : > { %v11490_v54 = vpop.f32.mrf.mxu0  ;;  %v11507_v3 = vpop.f32.mrf.mxu1 }
 0x1b4   : > { %13711 = vst [vmem:[#allocation70_spill] sm:$0xff] %v11490_v54  ;;  %13715 = vst [vmem:[#allocation74_spill] sm:$0xff] %v11507_v3 }
 0x1b5   : > { %v11494_v58 = vpop.f32.mrf.mxu0  ;;  %v11513_v54 = vpop.f32.mrf.mxu1 }
 0x1b6   : > { %13713 = vst [vmem:[#allocation72_spill] sm:$0xff] %v11494_v58  ;;  %13718 = vst [vmem:[#allocation77_spill] sm:$0xff] %v11513_v54 }
 0x1b7   : > { %v11503_v23 = vpop.f32.mrf.mxu0  ;;  %v11519_v4 = vpop.f32.mrf.mxu1 }
 0x1b8   : > { %13714 = vst [vmem:[#allocation73_spill] sm:$0xff] %v11503_v23  ;;  %13721 = vst [vmem:[#allocation80_spill] sm:$0xff] %v11519_v4 }
 0x1b9   : > { %v11509_v46 = vpop.f32.mrf.mxu0  ;;  %v11525_v44 = vpop.f32.mrf.mxu1 }
 0x1ba   : > { %13716 = vst [vmem:[#allocation75_spill] sm:$0xff] %v11509_v46 }
 0x1bb   : > { %v11511_v58 = vpop.f32.mrf.mxu0  ;;  %v11531_v46 = vpop.f32.mrf.mxu1 }
 0x1bc   : > { %13717 = vst [vmem:[#allocation76_spill] sm:$0xff] %v11511_v58 }
 0x1bd   : > { %v11515_v29 = vpop.f32.mrf.mxu0 }
 0x1be   : > { %13719 = vst [vmem:[#allocation78_spill] sm:$0xff] %v11515_v29  ;;  %v11537_v29 = vpop.f32.mrf.mxu1 }
 0x1bf   : > { %v11517_v40 = vpop.f32.mrf.mxu0 }
 0x1c0   : > { %13720 = vst [vmem:[#allocation79_spill] sm:$0xff] %v11517_v40 }
 0x1c1   : > { %v11521_v31 = vpop.f32.mrf.mxu0 }
 0x1c2   : > { %13722 = vst [vmem:[#allocation81_spill] sm:$0xff] %v11521_v31  ;;  %v11543_v31 = vpop.f32.mrf.mxu1 }
 0x1c3   : > { %v11523_v23 = vpop.f32.mrf.mxu0  ;;  %13730 = vst [vmem:[#allocation89_spill] sm:$0xff] %v11543_v31  ;;  %v13732_v31 = vld [vmem:[#allocation29_spill] sm:$0xff] }
 0x1c4   : > { %13723 = vst [vmem:[#allocation82_spill] sm:$0xff] %v11523_v23 }
 0x1c5   : > { %v11527_v61 = vpop.f32.mrf.mxu0 }
 0x1c6   : > { %13724 = vst [vmem:[#allocation83_spill] sm:$0xff] %v11527_v61  ;;  %v1197_v61 = vadd.f32 %v11058_v52, %v11056_v6  ;;  %v1257_v6 = vadd.f32 %v13732_v31, %v11134_v12  ;;  %v11563_v52 = vpop.f32.mrf.mxu1 }
 0x1c7   : > { %v11529_v3 = vpop.f32.mrf.mxu0 }
 0x1c8   : > { %13725 = vst [vmem:[#allocation84_spill] sm:$0xff] %v11529_v3  ;;  %v1207_v3 = vadd.f32 %v11072_v36, %v11070_v35  ;;  %v2013_v35 = vadd.f32 %v11143_v20, %v11146_v19  ;;  %v2015_v36 = vadd.f32 %v11155_v14, %v11158_v34  ;;  %v1653_v19 = vadd.f32 %v11306_v63, %v1257_v6 }
 0x1c9   : > { %v11533_v58 = vpop.f32.mrf.mxu0  ;;  %v2023_v34 = vadd.f32 %v11208_v7, %v11211_v53  ;;  %v13736_v53 = vld [vmem:[#allocation5_spill] sm:$0xff] }
 0x1ca   : > { %13726 = vst [vmem:[#allocation85_spill] sm:$0xff] %v11533_v58  ;;  %v1217_v58 = vadd.f32 %v11086_v38, %v11084_v43  ;;  %v2017_v43 = vadd.f32 %v11167_v37, %v11170_v10  ;;  %v1641_v38 = vadd.f32 %v11251_v24, %v1197_v61  ;;  %v2025_v37 = vadd.f32 %v11220_v32, %v11223_v57  ;;  %v13737_v57 = vld [vmem:[#allocation6_spill] sm:$0xff]  ;;  %v13743_v61 = vld [vmem:[#allocation11_spill] sm:$0xff] }
 0x1cb   : > { %v11535_v54 = vpop.f32.mrf.mxu0  ;;  %v2027_v10 = vadd.f32 %v11230_v60, %v11233_v59  ;;  %v13738_v60 = vld [vmem:[#allocation7_spill] sm:$0xff] }
 0x1cc   : > { %13727 = vst [vmem:[#allocation86_spill] sm:$0xff] %v11535_v54  ;;  %v2407_v63 = vadd.f32 %v11335_v2, %v2017_v43  ;;  %v13742_v2 = vld [vmem:[#allocation12_spill] sm:$0xff]  ;;  %v13745_v43 = vld [vmem:[#allocation15_spill] sm:$0xff] }
 0x1cd   : > { %v11539_v40 = vpop.f32.mrf.mxu0  ;;  %v2794_v6 = vadd.f32 %v13743_v61, %v13742_v2  ;;  %v13758_v61 = vld [vmem:[#allocation27_spill] sm:$0xff] }
 0x1ce   : > { %13728 = vst [vmem:[#allocation87_spill] sm:$0xff] %v11539_v40  ;;  %v1227_v40 = vadd.f32 %v11100_v21, %v11098_v47  ;;  %v2019_v21 = vadd.f32 %v11179_v42, %v11182_v22  ;;  %v2403_v42 = vadd.f32 %v11317_v51, %v2013_v35  ;;  %v11593_v22 = vpop.f32.mrf.mxu1  ;;  %v13739_v51 = vld [vmem:[#allocation8_spill] sm:$0xff]  ;;  %v13744_v35 = vld [vmem:[#allocation13_spill] sm:$0xff] }
 0x1cf   : > { %v11541_v4 = vpop.f32.mrf.mxu0 }
 0x1d0   : > { %13729 = vst [vmem:[#allocation88_spill] sm:$0xff] %v11541_v4  ;;  %v1237_v4 = vadd.f32 %v11114_v18, %v11112_v15  ;;  %v1643_v15 = vadd.f32 %v11260_v5, %v1207_v3  ;;  %v1645_v18 = vadd.f32 %v11269_v33, %v1217_v58  ;;  %v13735_v5 = vld [vmem:[#allocation4_spill] sm:$0xff] }
 0x1d1   : > { %v11545_v23 = vpop.f32.mrf.mxu0  ;;  %v2031_v33 = vadd.f32 %v13735_v5, %v1641_v38  ;;  %v13746_v38 = vld [vmem:[#allocation14_spill] sm:$0xff]  ;;  %v13751_v5 = vld [vmem:[#allocation21_spill] sm:$0xff] }
 0x1d2   : > { %13731 = vst [vmem:[#allocation90_spill] sm:$0xff] %v11545_v23  ;;  %v1247_v23 = vadd.f32 %v11126_v27, %v11124_v11  ;;  %v1647_v11 = vadd.f32 %v11278_v39, %v1227_v40  ;;  %v2021_v27 = vadd.f32 %v11194_v13, %v11198_v28  ;;  %v1649_v12 = vadd.f32 %v11288_v16, %v1237_v4  ;;  %v13733_v13 = vld [vmem:[#allocation3_spill] sm:$0xff]  ;;  %v13734_v28 = vld [vmem:[#allocation30_spill] sm:$0xff]  ;;  %v13740_v40 = vld [vmem:[#allocation9_spill] sm:$0xff] }
 0x1d3   : > { %v11553_v54 = vpop.f32.mrf.mxu0  ;;  %v2029_v24 = vadd.f32 %v13734_v28, %v13733_v13  ;;  %v2405_v39 = vadd.f32 %v11326_v45, %v2015_v36  ;;  %v2033_v32 = vadd.f32 %v13736_v53, %v1643_v15  ;;  %v2035_v16 = vadd.f32 %v13737_v57, %v1645_v18  ;;  %v13741_v4 = vld [vmem:[#allocation10_spill] sm:$0xff]  ;;  %v13747_v18 = vld [vmem:[#allocation16_spill] sm:$0xff] }
 0x1d4   : > { %v1651_v20 = vadd.f32 %v11298_v62, %v1247_v23  ;;  %v2037_v59 = vadd.f32 %v13738_v60, %v1647_v11  ;;  %v2409_v62 = vadd.f32 %v11347_v55, %v2019_v21  ;;  %v2039_v58 = vadd.f32 %v13739_v51, %v1649_v12  ;;  %v11618_v21 = vpop.f32.mrf.mxu1  ;;  %v13748_v12 = vld [vmem:[#allocation18_spill] sm:$0xff]  ;;  %v13754_v51 = vld [vmem:[#allocation24_spill] sm:$0xff] }
 0x1d5   : > { %v11572_v47 = vpop.f32.mrf.mxu0  ;;  %v2043_v23 = vadd.f32 %v13741_v4, %v1653_v19  ;;  %v2411_v45 = vadd.f32 %v11362_v17, %v2021_v27  ;;  %v2793_v36 = vadd.f32 %v13744_v35, %v2403_v42  ;;  %v2796_v15 = vadd.f32 %v13746_v38, %v13745_v43  ;;  %v13750_v17 = vld [vmem:[#allocation19_spill] sm:$0xff]  ;;  %v13752_v42 = vld [vmem:[#allocation20_spill] sm:$0xff]  ;;  %v13753_v57 = vld [vmem:[#allocation22_spill] sm:$0xff] }
 0x1d6   : > { %v2041_v31 = vadd.f32 %v13740_v40, %v1651_v20  ;;  %v2413_v55 = vadd.f32 %v11371_v50, %v2023_v34  ;;  %v2795_v11 = vadd.f32 %v13747_v18, %v2405_v39  ;;  %v13749_v20 = vld [vmem:[#allocation17_spill] sm:$0xff]  ;;  %v2797_v27 = vadd.f32 %v13750_v17, %v2407_v63  ;;  %v13755_v39 = vld [vmem:[#allocation23_spill] sm:$0xff]  ;;  %v13759_v35 = vld [vmem:[#allocation26_spill] sm:$0xff]  ;;  %v11649_v18 = vpop.f32.mrf.mxu1 }
 0x1d7   : > { %v11584_v14 = vpop.f32.mrf.mxu0  ;;  %v2798_v19 = vadd.f32 %v13749_v20, %v13748_v12  ;;  %v2415_v13 = vadd.f32 %v11380_v0, %v2025_v37  ;;  %v2800_v53 = vadd.f32 %v13752_v42, %v13751_v5  ;;  %v2799_v60 = vadd.f32 %v13753_v57, %v2409_v62  ;;  %v13756_v4 = vld [vmem:[#allocation25_spill] sm:$0xff]  ;;  %v13760_v38 = vld [vmem:[#allocation28_spill] sm:$0xff]  ;;  %v13768_v42 = vld [vmem:[#allocation38_spill] sm:$0xff] }
 0x1d8   : > { %v2417_v50 = vadd.f32 %v11394_v56, %v2027_v10  ;;  %v2419_v34 = vadd.f32 %v11403_v8, %v2029_v24  ;;  %v2802_v40 = vadd.f32 %v13755_v39, %v13754_v51  ;;  %v2801_v2 = vadd.f32 %v13756_v4, %v2411_v45  ;;  %v13761_v56 = vld [vmem:[#allocation32_spill] sm:$0xff]  ;;  %v13762_v10 = vld [vmem:[#allocation31_spill] sm:$0xff]  ;;  %v13763_v45 = vld [vmem:[#allocation33_spill] sm:$0xff] }
 0x1d9   : > { %v11600_v7 = vpop.f32.mrf.mxu0  ;;  %v2421_v63 = vadd.f32 %v11412_v49, %v2031_v33  ;;  %v2423_v0 = vadd.f32 %v11421_v48, %v2033_v32  ;;  %v2804_v43 = vadd.f32 %v13759_v35, %v13758_v61  ;;  %v11642_v62 = vadd.f32 %v13760_v38, %v2413_v55  ;;  %v13764_v48 = vld [vmem:[#allocation35_spill] sm:$0xff]  ;;  %v13765_v33 = vld [vmem:[#allocation34_spill] sm:$0xff]  ;;  %v13767_v17 = vld [vmem:[#allocation36_spill] sm:$0xff] }
 0x1da   : > { %v11646_v8 = vadd.f32 %v13762_v10, %v13761_v56  ;;  %v2425_v24 = vadd.f32 %v11430_v26, %v2035_v16  ;;  %v11652_v49 = vadd.f32 %v13763_v45, %v2415_v13  ;;  %v11656_v32 = vadd.f32 %v13765_v33, %v13764_v48  ;;  %v13769_v26 = vld [vmem:[#allocation37_spill] sm:$0xff]  ;;  %v13770_v57 = vld [vmem:[#allocation39_spill] sm:$0xff]  ;;  %v13772_v4 = vld [vmem:[#allocation40_spill] sm:$0xff]  ;;  %v11698_v33 = vpop.f32.mrf.mxu1 }
 0x1db   : > { %v11610_v3 = vpop.f32.mrf.mxu0  ;;  %v2427_v12 = vadd.f32 %v11439_v1, %v2037_v59  ;;  %v2429_v55 = vadd.f32 %v11448_v25, %v2039_v58  ;;  %v11663_v5 = vadd.f32 %v13767_v17, %v2417_v50  ;;  %v11667_v16 = vadd.f32 %v13769_v26, %v13768_v42  ;;  %v13771_v39 = vld [vmem:[#allocation41_spill] sm:$0xff]  ;;  %v13773_v1 = vld [vmem:[#allocation42_spill] sm:$0xff]  ;;  %v13774_v59 = vld [vmem:[#allocation44_spill] sm:$0xff] }
 0x1dc   : > { %v11670_v13 = vadd.f32 %v13770_v57, %v2419_v34  ;;  %v3185_v51 = vadd.f32 %v11470_v30, %v2794_v6  ;;  %v11675_v61 = vadd.f32 %v13772_v4, %v13771_v39  ;;  %v11678_v25 = vadd.f32 %v13773_v1, %v2421_v63  ;;  %v13775_v58 = vld [vmem:[#allocation43_spill] sm:$0xff]  ;;  %v13776_v35 = vld [vmem:[#allocation45_spill] sm:$0xff]  ;;  %v13779_v10 = vld [vmem:[#allocation46_spill] sm:$0xff] }
 0x1dd   : > { %v11625_v28 = vpop.f32.mrf.mxu0  ;;  %v11682_v50 = vadd.f32 %v13775_v58, %v13774_v59  ;;  %v11685_v38 = vadd.f32 %v13776_v35, %v2423_v0  ;;  %v13778_v34 = vld [vmem:[#allocation47_spill] sm:$0xff]  ;;  %v13780_v30 = vld [vmem:[#allocation48_spill] sm:$0xff]  ;;  %v2431_v48 = vadd.f32 %v11457_v41, %v2041_v31  ;;  %v3184_v63 = vadd.f32 %v11474_v9, %v2793_v36  ;;  %v13781_v17 = vld [vmem:[#allocation50_spill] sm:$0xff] }
 0x1de   : > { %v11691_v45 = vadd.f32 %v13779_v10, %v13778_v34  ;;  %v11694_v6 = vadd.f32 %v13780_v30, %v2425_v24  ;;  %v13782_v42 = vld [vmem:[#allocation49_spill] sm:$0xff]  ;;  %v13783_v0 = vld [vmem:[#allocation51_spill] sm:$0xff]  ;;  %v13785_v4 = vld [vmem:[#allocation52_spill] sm:$0xff] }
 0x1df   : > { %v11637_v37 = vpop.f32.mrf.mxu0  ;;  %v11702_v26 = vadd.f32 %v13782_v42, %v13781_v17  ;;  %v11705_v57 = vadd.f32 %v13783_v0, %v2427_v12  ;;  %v13784_v39 = vld [vmem:[#allocation53_spill] sm:$0xff]  ;;  %v13786_v59 = vld [vmem:[#allocation54_spill] sm:$0xff]  ;;  %v13788_v41 = vld [vmem:[#allocation56_spill] sm:$0xff] }
 0x1e0   : > { %13757 = vst [vmem:[#allocation29_spill] sm:$0xff] %v11637_v37  ;;  %v11709_v1 = vadd.f32 %v13785_v4, %v13784_v39  ;;  %v11712_v24 = vadd.f32 %v13786_v59, %v2429_v55  ;;  %v13789_v9 = vld [vmem:[#allocation55_spill] sm:$0xff]  ;;  %v13790_v36 = vld [vmem:[#allocation60_spill] sm:$0xff]  ;;  %v13791_v34 = vld [vmem:[#allocation62_spill] sm:$0xff] }
 0x1e1   : > { %v11660_v20 = vpop.f32.mrf.mxu0  ;;  %v11718_v31 = vadd.f32 %v13789_v9, %v13788_v41  ;;  %v2433_v35 = vadd.f32 %v13790_v36, %v2043_v23  ;;  %v3575_v10 = vadd.f32 %v13791_v34, %v3185_v51  ;;  %v13792_v30 = vld [vmem:[#allocation64_spill] sm:$0xff]  ;;  %v13793_v17 = vld [vmem:[#allocation66_spill] sm:$0xff]  ;;  %v13794_v0 = vld [vmem:[#allocation67_spill] sm:$0xff] }
 0x1e2   : > { %13766 = vst [vmem:[#allocation3_spill] sm:$0xff] %v11660_v20  ;;  %v3187_v12 = vadd.f32 %v13792_v30, %v2796_v15  ;;  %v3186_v42 = vadd.f32 %v13793_v17, %v2795_v11  ;;  %v3189_v39 = vadd.f32 %v13794_v0, %v2798_v19  ;;  %v13795_v4 = vld [vmem:[#allocation69_spill] sm:$0xff]  ;;  %v13796_v55 = vld [vmem:[#allocation70_spill] sm:$0xff]  ;;  %v13798_v51 = vld [vmem:[#allocation63_spill] sm:$0xff]  ;;  %v11737_v11 = vpop.f32.mrf.mxu1 }
 0x1e3   : > { %v11687_v56 = vpop.f32.mrf.mxu0  ;;  %v3191_v59 = vadd.f32 %v13796_v55, %v2800_v53  ;;  %v11730_v41 = vld [vmem:[%s13521_s5] ss:$0 sm:$0xff]  ;;  %v3574_v36 = vadd.f32 %v13798_v51, %v3184_v63  ;;  %v13799_v15 = vld [vmem:[#allocation72_spill] sm:$0xff]  ;;  %v13800_v30 = vld [vmem:[#allocation59_spill] sm:$0xff] }
 0x1e4   : > { %13777 = vst [vmem:[#allocation30_spill] sm:$0xff] %v11687_v56  ;;  %v3188_v56 = vadd.f32 %v13795_v4, %v2797_v27  ;;  %v13797_v9 = vld [vmem:[#allocation57_spill] sm:$0xff]  ;;  %v3190_v34 = vadd.f32 %v13799_v15, %v2799_v60  ;;  %v13801_v27 = vld [vmem:[#allocation58_spill] sm:$0xff]  ;;  %v13804_v4 = vld [vmem:[#allocation75_spill] sm:$0xff] }
 0x1e5   : > { %v11714_v58 = vpop.f32.mrf.mxu0  ;;  %v11733_v23 = vadd.f32 %v13797_v9, %v2431_v48  ;;  %v11741_v17 = vadd.f32 %v13801_v27, %v13800_v30  ;;  %v13803_v53 = vld [vmem:[#allocation73_spill] sm:$0xff]  ;;  %v3192_v55 = vadd.f32 %v13804_v4, %v2801_v2  ;;  %v13809_v30 = vld [vmem:[#allocation68_spill] sm:$0xff]  ;;  %v13810_v27 = vld [vmem:[#allocation71_spill] sm:$0xff] }
 0x1e6   : > { %13787 = vst [vmem:[#allocation4_spill] sm:$0xff] %v11714_v58  ;;  %v3193_v0 = vadd.f32 %v13803_v53, %v2802_v40  ;;  %v13805_v58 = vld [vmem:[#allocation76_spill] sm:$0xff]  ;;  %v11749_v48 = vld [vmem:[%s13522_s6] ss:$0 sm:$0xff]  ;;  %v3576_v40 = vadd.f32 %v13809_v30, %v3186_v42  ;;  %v3579_v2 = vadd.f32 %v13810_v27, %v3189_v39  ;;  %v13811_v53 = vld [vmem:[#allocation74_spill] sm:$0xff] }
 0x1e7   : > { %v9479_v20 = vpop.f32.mrf.mxu0  ;;  %13802 = vst [vmem:[#allocation5_spill] sm:$0xff] %v11741_v17  ;;  %v3195_v37 = vadd.f32 %v13805_v58, %v2804_v43  ;;  %v13806_v60 = vld [vmem:[#allocation61_spill] sm:$0xff]  ;;  %v3578_v43 = vadd.f32 %v13811_v53, %v3188_v56  ;;  %v11774_v56 = vadd.f32 %v11531_v46, %v3192_v55 }
 0x1e8   : > { %v3965_v19 = vadd.f32 %v9479_v20, %v3575_v10  ;;  %v11752_v9 = vadd.f32 %v13806_v60, %v2433_v35  ;;  %v13808_v20 = vld [vmem:[#allocation65_spill] sm:$0xff]  ;;  %v13813_v60 = vld [vmem:[#allocation80_spill] sm:$0xff]  ;;  %v11771_v39 = vadd.f32 %v11525_v44, %v3193_v0  ;;  %v13815_v44 = vld [vmem:[#allocation79_spill] sm:$0xff] }
 0x1e9   : > { %v3805_v63 = vpop.f32.mrf.mxu0  ;;  %v3577_v10 = vadd.f32 %v13808_v20, %v3187_v12  ;;  %v13812_v58 = vld [vmem:[#allocation77_spill] sm:$0xff]  ;;  %v11766_v12 = vpop.f32.mrf.mxu1  ;;  %v11779_v20 = vadd.f32 %v11537_v29, %v3195_v37  ;;  %v3197_v0 = vadd.f32 %v13815_v44, %v11646_v8  ;;  %v13819_v8 = vld [vmem:[#allocation83_spill] sm:$0xff] }
 0x1ea   : > { %13807 = vst [vmem:[#allocation6_spill] sm:$0xff] %v11752_v9  ;;  %v4004_v51 = vmul.f32 %v11730_v41, %v3965_v19  ;;  %v3964_v15 = vadd.f32 %v3805_v63, %v3574_v36  ;;  %v3581_v4 = vadd.f32 %v13812_v58, %v3191_v59  ;;  %v11763_v17 = vld [vmem:[%s13523_s7] ss:$0 sm:$0xff]  ;;  %v3580_v9 = vadd.f32 %v13813_v60, %v3190_v34  ;;  %v13814_v59 = vld [vmem:[#allocation78_spill] sm:$0xff] }
 0x1eb   : > { %v9482_v35 = vpop.f32.mrf.mxu0  ;;  %v3194_v63 = vadd.f32 %v13814_v59, %v11642_v62  ;;  %v13816_v46 = vld [vmem:[#allocation81_spill] sm:$0xff]  ;;  %v11790_v37 = vpop.f32.mrf.mxu1 }
 0x1ec   : > { %v4043_v36 = vadd.f32 %v11749_v48, %v4004_v51  ;;  %v4003_v42 = vmul.f32 %v11730_v41, %v3964_v15  ;;  %v3967_v19 = vadd.f32 %v9482_v35, %v3577_v10  ;;  %v3196_v55 = vadd.f32 %v13816_v46, %v11652_v49  ;;  %v13817_v15 = vld [vmem:[#allocation82_spill] sm:$0xff]  ;;  %v13818_v60 = vld [vmem:[#allocation89_spill] sm:$0xff] }
 0x1ed   : > { %v3815_v34 = vpop.f32.mrf.mxu0  ;;  %v3199_v62 = vadd.f32 %v13817_v15, %v11656_v32 }
 0x1ee   : > { %vm4075_vm4 = vcmp.ge.f32.partialorder %v4043_v36, 0.0  ;;  %v4114_v30 = vmul.f32 %v11763_v17, %v4043_v36  ;;  %v4042_v51 = vadd.f32 %v11749_v48, %v4003_v42  ;;  %v4006_v10 = vmul.f32 %v11730_v41, %v3967_v19 }
 0x1ef   : > { %v3966_v27 = vadd.f32 %v3815_v34, %v3576_v40  ;;  %v9485_v29 = vpop.f32.mrf.mxu0  ;;  %v11795_v42 = vadd.f32 %v13818_v60, %v3194_v63  ;;  %v3198_v19 = vadd.f32 %v13819_v8, %v11663_v5  ;;  %v11806_v63 = vadd.f32 %v11593_v22, %v3196_v55 }
 0x1f0   : > { %v4146_v53 = vsel %vm4075_vm4, %v4043_v36, %v4114_v30  ;;  %vm4074_vm5 = vcmp.ge.f32.partialorder %v4042_v51, 0.0  ;;  %v4113_v58 = vmul.f32 %v11763_v17, %v4042_v51  ;;  %v4045_v35 = vadd.f32 %v11749_v48, %v4006_v10 }
 0x1f1   : > { %4178 = vst.msk [vmem:[#allocation2 + $0x21] sm:$0xff] %vm360_vm1, %v4146_v53  ;;  %v4005_v49 = vmul.f32 %v11730_v41, %v3966_v27  ;;  %v3969_v32 = vadd.f32 %v9485_v29, %v3579_v2  ;;  %v3825_v40 = vpop.f32.mrf.mxu0  ;;  %v11803_v30 = vadd.f32 %v11563_v52, %v3197_v0  ;;  %v11812_v2 = vadd.f32 %v11618_v21, %v3199_v62  ;;  %v13820_v0 = vld [vmem:[#allocation84_spill] sm:$0xff] }
 0x1f2   : > { %v4145_v59 = vsel %vm4074_vm5, %v4042_v51, %v4113_v58  ;;  %vm4077_vm6 = vcmp.ge.f32.partialorder %v4045_v35, 0.0  ;;  %v4116_v36 = vmul.f32 %v11763_v17, %v4045_v35  ;;  %v3968_v34 = vadd.f32 %v3825_v40, %v3578_v43  ;;  %v11814_v51 = vpop.f32.mrf.mxu1 }
 0x1f3   : > { %4177 = vst.msk [vmem:[#allocation2 + $0x19] sm:$0xff] %vm360_vm1, %v4145_v59  ;;  %v4044_v5 = vadd.f32 %v11749_v48, %v4005_v49  ;;  %v4008_v10 = vmul.f32 %v11730_v41, %v3969_v32  ;;  %v9488_v44 = vpop.f32.mrf.mxu0  ;;  %v3201_v22 = vadd.f32 %v13820_v0, %v11667_v16  ;;  %v11823_v21 = vadd.f32 %v11649_v18, %v3198_v19  ;;  %v11830_v16 = vld [vmem:[%s13518_s2 + $0x14] sm:$0xf]  ;;  %v13822_v32 = vld [vmem:[#allocation86_spill] sm:$0xff] }
 0x1f4   : > { %v4148_v46 = vsel %vm4077_vm6, %v4045_v35, %v4116_v36  ;;  %v4007_v43 = vmul.f32 %v11730_v41, %v3968_v34  ;;  %v3971_v52 = vadd.f32 %v9488_v44, %v3581_v4  ;;  %v13821_v4 = vld [vmem:[#allocation85_spill] sm:$0xff]  ;;  %9775 = vmatprep.subr.msk.mxu0 %vm712_vm0, %v11830_v16  ;;  %v11837_v18 = vpop.f32.mrf.mxu1  ;;  %v3203_v40 = vadd.f32 %v13822_v32, %v11675_v61  ;;  %v13823_v61 = vld [vmem:[#allocation87_spill] sm:$0xff] }
 0x1f5   : > { %4180 = vst.msk [vmem:[#allocation2 + $0x39] sm:$0xff] %vm360_vm1, %v4148_v46  ;;  %vm4076_vm7 = vcmp.ge.f32.partialorder %v4044_v5, 0.0  ;;  %v4115_v55 = vmul.f32 %v11763_v17, %v4044_v5  ;;  %v4047_v15 = vadd.f32 %v11749_v48, %v4008_v10  ;;  %v3835_v27 = vpop.f32.mrf.mxu0  ;;  %v3200_v58 = vadd.f32 %v13821_v4, %v11670_v13 }
 0x1f6   : > { %v4046_v62 = vadd.f32 %v11749_v48, %v4007_v43  ;;  %v4010_v29 = vmul.f32 %v11730_v41, %v3971_v52  ;;  %v3970_v53 = vadd.f32 %v3835_v27, %v3580_v9  ;;  %v11844_v13 = vadd.f32 %v11698_v33, %v3201_v22 }
 0x1f7   : > { %v4147_v35 = vsel %vm4076_vm7, %v4044_v5, %v4115_v55  ;;  %vm4079_vm8 = vcmp.ge.f32.partialorder %v4047_v15, 0.0  ;;  %v4118_v60 = vmul.f32 %v11763_v17, %v4047_v15  ;;  %v9491_v8 = vpop.f32.mrf.mxu0  ;;  %v3202_v52 = vadd.f32 %v13823_v61, %v11678_v25 }
 0x1f8   : > { %4179 = vst.msk [vmem:[#allocation2 + $0x31] sm:$0xff] %vm360_vm1, %v4147_v35  ;;  %vm4078_vm9 = vcmp.ge.f32.partialorder %v4046_v62, 0.0  ;;  %v4117_v9 = vmul.f32 %v11763_v17, %v4046_v62  ;;  %v4049_v19 = vadd.f32 %v11749_v48, %v4010_v29  ;;  %v4009_v49 = vmul.f32 %v11730_v41, %v3970_v53  ;;  %v11867_v55 = vld [vmem:[#allocation2 + $0x21] sm:$0xff] }
 0x1f9   : > { %v4150_v59 = vsel %vm4079_vm8, %v4047_v15, %v4118_v60  ;;  %v3973_v36 = vadd.f32 %v9491_v8, %v11771_v39  ;;  %v3845_v34 = vpop.f32.mrf.mxu0  ;;  %v11869_v15 = vpop.f32.mrf.mxu1  ;;  %v11881_v29 = vadd.f32 %v11766_v12, %v3203_v40 }
 0x1fa   : > { %4182 = vst.msk [vmem:[#allocation2 + $0x51] sm:$0xff] %vm360_vm1, %v4150_v59  ;;  %v4149_v5 = vsel %vm4078_vm9, %v4046_v62, %v4117_v9  ;;  %vm4081_vm10 = vcmp.ge.f32.partialorder %v4049_v19, 0.0  ;;  %v4120_v10 = vmul.f32 %v11763_v17, %v4049_v19  ;;  %v4048_v44 = vadd.f32 %v11749_v48, %v4009_v49  ;;  %v11852_v46 = vld [vmem:[#allocation2 + $0x19] sm:$0xff] }
 0x1fb   : > { %v11854_v43 = vld [vmem:[#allocation2 + $0x18] sm:$0xff]  ;;  %v11856_v33 = vld [vmem:[#allocation2 + $0x20] sm:$0xff]  ;;  %4181 = vst.msk [vmem:[#allocation2 + $0x49] sm:$0xff] %vm360_vm1, %v4149_v5  ;;  %v4012_v39 = vmul.f32 %v11730_v41, %v3973_v36  ;;  %v3972_v0 = vadd.f32 %v3845_v34, %v11774_v56  ;;  %v9494_v22 = vpop.f32.mrf.mxu0  ;;  %9530 = vmatprep.mubr.msk.f32.mxu1 %vm360_vm1, %v11852_v46  ;;  %v11878_v56 = vadd.f32 %v11737_v11, %v3200_v58  ;;  %v11902_v59 = vpop.f32.mrf.mxu1  ;;  %v13825_v5 = vld [vmem:[#allocation90_spill] sm:$0xff] }
 0x1fc   : > { %9580 = vmatprep.mubr.msk.f32.mxu0 %vm360_vm1, %v11854_v43  ;;  %v4152_v27 = vsel %vm4081_vm10, %v4049_v19, %v4120_v10  ;;  %vm4080_vm11 = vcmp.ge.f32.partialorder %v4048_v44, 0.0  ;;  %v4119_v25 = vmul.f32 %v11763_v17, %v4048_v44  ;;  %v3975_v62 = vadd.f32 %v9494_v22, %v11779_v20  ;;  %9531 = vmatmul.mubr.msk.f32.gmra.mxu1 %vm360_vm1, %v11867_v55  ;;  %v13824_v20 = vld [vmem:[#allocation88_spill] sm:$0xff] }
 0x1fd   : > { %9581 = vmatmul.mubr.msk.f32.gmra.mxu0 %vm360_vm1, %v11856_v33  ;;  %4184 = vst.msk [vmem:[#allocation2 + $0x69] sm:$0xff] %vm360_vm1, %v4152_v27  ;;  %v4051_v53 = vadd.f32 %v11749_v48, %v4012_v39  ;;  %v4011_v4 = vmul.f32 %v11730_v41, %v3972_v0  ;;  %v3855_v35 = vpop.f32.mrf.mxu0  ;;  %v3205_v60 = vadd.f32 %v13824_v20, %v11682_v50  ;;  %v11911_v34 = vld [vmem:[#allocation2 + $0x39] sm:$0xff] }
 0x1fe   : > { %v4151_v8 = vsel %vm4080_vm11, %v4048_v44, %v4119_v25  ;;  %v4014_v9 = vmul.f32 %v11730_v41, %v3975_v62  ;;  %v3974_v19 = vadd.f32 %v3855_v35, %v11795_v42  ;;  %v11891_v11 = vadd.f32 %v11790_v37, %v3202_v52  ;;  %v11938_v35 = vpop.f32.mrf.mxu1 }
 0x1ff   : > { %4183 = vst.msk [vmem:[#allocation2 + $0x61] sm:$0xff] %vm360_vm1, %v4151_v8  ;;  %vm4083_vm12 = vcmp.ge.f32.partialorder %v4051_v53, 0.0  ;;  %v4122_v12 = vmul.f32 %v11763_v17, %v4051_v53  ;;  %v4050_v58 = vadd.f32 %v11749_v48, %v4011_v4  ;;  %v9497_v49 = vpop.f32.mrf.mxu0  ;;  %v11896_v32 = vld [vmem:[#allocation2 + $0x31] sm:$0xff]  ;;  %v3204_v10 = vadd.f32 %v13825_v5, %v11685_v38 }
 0x200   : > { %v11898_v40 = vld [vmem:[#allocation2 + $0x30] sm:$0xff]  ;;  %v11900_v50 = vld [vmem:[#allocation2 + $0x38] sm:$0xff]  ;;  %v4053_v42 = vadd.f32 %v11749_v48, %v4014_v9  ;;  %v4013_v37 = vmul.f32 %v11730_v41, %v3974_v19  ;;  %v3977_v36 = vadd.f32 %v9497_v49, %v11803_v30  ;;  %9533 = vmatprep.mubr.msk.f32.mxu1 %vm360_vm1, %v11896_v32  ;;  %v11931_v25 = vadd.f32 %v11814_v51, %v3205_v60 }
 0x201   : > { %9583 = vmatprep.mubr.msk.f32.mxu0 %vm360_vm1, %v11898_v40  ;;  %v4154_v44 = vsel %vm4083_vm12, %v4051_v53, %v4122_v12  ;;  %vm4082_vm13 = vcmp.ge.f32.partialorder %v4050_v58, 0.0  ;;  %v4121_v61 = vmul.f32 %v11763_v17, %v4050_v58  ;;  %9534 = vmatmul.mubr.msk.f32.gmra.mxu1 %vm360_vm1, %v11911_v34  ;;  %v3865_v30 = vpop.f32.mrf.mxu0  ;;  %v11943_v60 = vld [vmem:[#allocation2 + $0x51] sm:$0xff] }
 0x202   : > { %9584 = vmatmul.mubr.msk.f32.gmra.mxu0 %vm360_vm1, %v11900_v50  ;;  %4186 = vst.msk [vmem:[#allocation2 + $0x81] sm:$0xff] %vm360_vm1, %v4154_v44  ;;  %vm4085_vm14 = vcmp.ge.f32.partialorder %v4053_v42, 0.0  ;;  %v4124_v52 = vmul.f32 %v11763_v17, %v4053_v42  ;;  %v4052_v39 = vadd.f32 %v11749_v48, %v4013_v37  ;;  %v4016_v38 = vmul.f32 %v11730_v41, %v3977_v36  ;;  %v11924_v0 = vld [vmem:[#allocation2 + $0x49] sm:$0xff] }
 0x203   : > { %v11926_v22 = vld [vmem:[#allocation2 + $0x48] sm:$0xff]  ;;  %v11928_v27 = vld [vmem:[#allocation2 + $0x50] sm:$0xff]  ;;  %v4153_v62 = vsel %vm4082_vm13, %v4050_v58, %v4121_v61  ;;  %v3976_v53 = vadd.f32 %v3865_v30, %v11806_v63  ;;  %v9500_v4 = vpop.f32.mrf.mxu0  ;;  %9536 = vmatprep.mubr.msk.f32.mxu1 %vm360_vm1, %v11924_v0  ;;  %v3207_v63 = vadd.f32 %v11553_v54, %v11691_v45  ;;  %v11974_v61 = vpop.f32.mrf.mxu1 }
 0x204   : > { %9586 = vmatprep.mubr.msk.f32.mxu0 %vm360_vm1, %v11926_v22  ;;  %4185 = vst.msk [vmem:[#allocation2 + $0x79] sm:$0xff] %vm360_vm1, %v4153_v62  ;;  %v4156_v20 = vsel %vm4085_vm14, %v4053_v42, %v4124_v52  ;;  %vm4084_vm15 = vcmp.ge.f32.partialorder %v4052_v39, 0.0  ;;  %v4123_v8 = vmul.f32 %v11763_v17, %v4052_v39  ;;  %v4055_v51 = vadd.f32 %v11749_v48, %v4016_v38  ;;  %v11978_v52 = vld [vmem:[#allocation2 + $0x69] sm:$0xff] }
 0x205   : > { %4188 = vst.msk [vmem:[#allocation2 + $0x99] sm:$0xff] %vm360_vm1, %v4156_v20  ;;  %v4015_v9 = vmul.f32 %v11730_v41, %v3976_v53  ;;  %v3979_v19 = vadd.f32 %v9500_v4, %v11812_v2  ;;  %9537 = vmatmul.mubr.msk.f32.gmra.mxu1 %vm360_vm1, %v11943_v60  ;;  %v3875_v12 = vpop.f32.mrf.mxu0  ;;  %v3206_v2 = vadd.f32 %v11572_v47, %v11694_v6 }
 0x206   : > { %9587 = vmatmul.mubr.msk.f32.gmra.mxu0 %vm360_vm1, %v11928_v27  ;;  %v4155_v58 = vsel %vm4084_vm15, %v4052_v39, %v4123_v8  ;;  %vm4087_vm2 = vcmp.ge.f32.partialorder %v4055_v51, 0.0  ;;  %v4126_v49 = vmul.f32 %v11763_v17, %v4055_v51  ;;  %v3978_v42 = vadd.f32 %v3875_v12, %v11823_v21  ;;  %v11956_v54 = vld [vmem:[#allocation2 + $0x61] sm:$0xff] }
 0x207   : > { %v11958_v45 = vld [vmem:[#allocation2 + $0x60] sm:$0xff]  ;;  %v11960_v37 = vld [vmem:[#allocation2 + $0x68] sm:$0xff]  ;;  %4187 = vst.msk [vmem:[#allocation2 + $0x91] sm:$0xff] %vm360_vm1, %v4155_v58  ;;  %v4054_v36 = vadd.f32 %v11749_v48, %v4015_v9  ;;  %v4018_v5 = vmul.f32 %v11730_v41, %v3979_v19  ;;  %v9503_v44 = vpop.f32.mrf.mxu0  ;;  %9539 = vmatprep.mubr.msk.f32.mxu1 %vm360_vm1, %v11956_v54  ;;  %v11972_v21 = vadd.f32 %v11837_v18, %v3204_v10 }
 0x208   : > { %9589 = vmatprep.mubr.msk.f32.mxu0 %vm360_vm1, %v11958_v45  ;;  %v4158_v30 = vsel %vm4087_vm2, %v4055_v51, %v4126_v49  ;;  %v4017_v47 = vmul.f32 %v11730_v41, %v3978_v42  ;;  %v3981_v6 = vadd.f32 %v9503_v44, %v11844_v13  ;;  %v11981_v39 = vadd.f32 %v11869_v15, %v3207_v63 }
 0x209   : > { %4190 = vst.msk [vmem:[#allocation2 + $0xb1] sm:$0xff] %vm360_vm1, %v4158_v30  ;;  %vm4086_vm3 = vcmp.ge.f32.partialorder %v4054_v36, 0.0  ;;  %v4125_v38 = vmul.f32 %v11763_v17, %v4054_v36  ;;  %v4057_v18 = vadd.f32 %v11749_v48, %v4018_v5  ;;  %9540 = vmatmul.mubr.msk.f32.gmra.mxu1 %vm360_vm1, %v11978_v52  ;;  %v3885_v10 = vpop.f32.mrf.mxu0  ;;  %v3209_v13 = vadd.f32 %v11584_v14, %v11702_v26  ;;  %v12005_v14 = vpop.f32.mrf.mxu1  ;;  %v12015_v12 = vld [vmem:[#allocation2 + $0x81] sm:$0xff] }
 0x20a   : > { %9590 = vmatmul.mubr.msk.f32.gmra.mxu0 %vm360_vm1, %v11960_v37  ;;  %v4056_v15 = vadd.f32 %v11749_v48, %v4017_v47  ;;  %v4020_v62 = vmul.f32 %v11730_v41, %v3981_v6  ;;  %v3980_v53 = vadd.f32 %v3885_v10, %v11878_v56  ;;  %v11996_v4 = vadd.f32 %v11902_v59, %v3206_v2 }
 0x20b   : > { %v4157_v20 = vsel %vm4086_vm3, %v4054_v36, %v4125_v38  ;;  %vm4089_vm4 = vcmp.ge.f32.partialorder %v4057_v18, 0.0  ;;  %v4128_v8 = vmul.f32 %v11763_v17, %v4057_v18  ;;  %v9506_v51 = vpop.f32.mrf.mxu0  ;;  %v11999_v63 = vld [vmem:[#allocation2 + $0x79] sm:$0xff]  ;;  %v3208_v58 = vadd.f32 %v11600_v7, %v11705_v57 }
 0x20c   : > { %v12001_v9 = vld [vmem:[#allocation2 + $0x78] sm:$0xff]  ;;  %v12003_v19 = vld [vmem:[#allocation2 + $0x80] sm:$0xff]  ;;  %4189 = vst.msk [vmem:[#allocation2 + $0xa9] sm:$0xff] %vm360_vm1, %v4157_v20  ;;  %vm4088_vm5 = vcmp.ge.f32.partialorder %v4056_v15, 0.0  ;;  %v4127_v26 = vmul.f32 %v11763_v17, %v4056_v15  ;;  %v4059_v56 = vadd.f32 %v11749_v48, %v4020_v62  ;;  %v4019_v59 = vmul.f32 %v11730_v41, %v3980_v53  ;;  %9542 = vmatprep.mubr.msk.f32.mxu1 %vm360_vm1, %v11999_v63 }
 0x20d   : > { %9592 = vmatprep.mubr.msk.f32.mxu0 %vm360_vm1, %v12001_v9  ;;  %v4160_v49 = vsel %vm4089_vm4, %v4057_v18, %v4128_v8  ;;  %v3983_v42 = vadd.f32 %v9506_v51, %v11881_v29  ;;  %9543 = vmatmul.mubr.msk.f32.gmra.mxu1 %vm360_vm1, %v12015_v12  ;;  %v3895_v2 = vpop.f32.mrf.mxu0  ;;  %v12035_v30 = vadd.f32 %v11938_v35, %v3209_v13  ;;  %v12044_v18 = vpop.f32.mrf.mxu1 }
 0x20e   : > { %9593 = vmatmul.mubr.msk.f32.gmra.mxu0 %vm360_vm1, %v12003_v19  ;;  %4192 = vst.msk [vmem:[#allocation2 + $0xc9] sm:$0xff] %vm360_vm1, %v4160_v49  ;;  %v4159_v36 = vsel %vm4088_vm5, %v4056_v15, %v4127_v26  ;;  %vm4091_vm6 = vcmp.ge.f32.partialorder %v4059_v56, 0.0  ;;  %v4130_v5 = vmul.f32 %v11763_v17, %v4059_v56  ;;  %v4058_v44 = vadd.f32 %v11749_v48, %v4019_v59  ;;  %v12028_v7 = vld [vmem:[#allocation2 + $0x91] sm:$0xff]  ;;  %v12048_v15 = vld [vmem:[#allocation2 + $0x99] sm:$0xff] }
 0x20f   : > { %v12030_v57 = vld [vmem:[#allocation2 + $0x90] sm:$0xff]  ;;  %v12032_v29 = vld [vmem:[#allocation2 + $0x98] sm:$0xff]  ;;  %4191 = vst.msk [vmem:[#allocation2 + $0xc1] sm:$0xff] %vm360_vm1, %v4159_v36  ;;  %v4022_v47 = vmul.f32 %v11730_v41, %v3983_v42  ;;  %v3982_v6 = vadd.f32 %v3895_v2, %v11891_v11  ;;  %v9509_v38 = vpop.f32.mrf.mxu0  ;;  %9545 = vmatprep.mubr.msk.f32.mxu1 %vm360_vm1, %v12028_v7  ;;  %v3211_v11 = vadd.f32 %v11610_v3, %v11709_v1 }
 0x210   : > { %13826 = vst [vmem:[#allocation7_spill] sm:$0xff] %v12030_v57  ;;  %13827 = vst [vmem:[#allocation8_spill] sm:$0xff] %v12032_v29  ;;  %9595 = vmatprep.mubr.msk.f32.mxu0 %vm360_vm1, %v12030_v57  ;;  %v4162_v10 = vsel %vm4091_vm6, %v4059_v56, %v4130_v5  ;;  %vm4090_vm7 = vcmp.ge.f32.partialorder %v4058_v44, 0.0  ;;  %v4129_v35 = vmul.f32 %v11763_v17, %v4058_v44 }
 0x211   : > { %v3985_v13 = vadd.f32 %v9509_v38, %v11931_v25  ;;  %4194 = vst.msk [vmem:[#allocation2 + $0xe1] sm:$0xff] %vm360_vm1, %v4162_v10  ;;  %v4061_v62 = vadd.f32 %v11749_v48, %v4022_v47  ;;  %v4021_v53 = vmul.f32 %v11730_v41, %v3982_v6  ;;  %9546 = vmatmul.mubr.msk.f32.gmra.mxu1 %vm360_vm1, %v12048_v15  ;;  %v3905_v20 = vpop.f32.mrf.mxu0 }
 0x212   : > { %9596 = vmatmul.mubr.msk.f32.gmra.mxu0 %vm360_vm1, %v12032_v29  ;;  %v3598_v25 = vadd.f32 %v11974_v61, %v3208_v58  ;;  %v4161_v8 = vsel %vm4090_vm7, %v4058_v44, %v4129_v35  ;;  %v3984_v3 = vadd.f32 %v3905_v20, %v11972_v21  ;;  %v3210_v1 = vadd.f32 %v11625_v28, %v11712_v24  ;;  %v9471_v58 = vpop.f32.mrf.mxu1  ;;  %v12080_v24 = vld [vmem:[#allocation2 + $0xb1] sm:$0xff] }
 0x213   : > { %v4024_v51 = vmul.f32 %v11730_v41, %v3985_v13  ;;  %4193 = vst.msk [vmem:[#allocation2 + $0xd9] sm:$0xff] %vm360_vm1, %v4161_v8  ;;  %vm4093_vm8 = vcmp.ge.f32.partialorder %v4061_v62, 0.0  ;;  %v4132_v26 = vmul.f32 %v11763_v17, %v4061_v62  ;;  %v4060_v56 = vadd.f32 %v11749_v48, %v4021_v53  ;;  %v9512_v59 = vpop.f32.mrf.mxu0  ;;  %v12067_v49 = vld [vmem:[#allocation2 + $0xa9] sm:$0xff]  ;;  %v13832_v13 = vld [vmem:[#allocation29_spill] sm:$0xff] }
 0x214   : > { %v12069_v42 = vld [vmem:[#allocation2 + $0xa8] sm:$0xff]  ;;  %v12071_v61 = vld [vmem:[#allocation2 + $0xb0] sm:$0xff]  ;;  %v4023_v2 = vmul.f32 %v11730_v41, %v3984_v3  ;;  %v3987_v28 = vadd.f32 %v9512_v59, %v11981_v39  ;;  %9548 = vmatprep.mubr.msk.f32.mxu1 %vm360_vm1, %v12067_v49  ;;  %v3601_v36 = vadd.f32 %v12005_v14, %v3211_v11  ;;  %v3213_v11 = vadd.f32 %v13832_v13, %v11718_v31  ;;  %v3555_v8 = vpop.f32.mrf.mxu1 }
 0x215   : > { %13828 = vst [vmem:[#allocation9_spill] sm:$0xff] %v12069_v42  ;;  %13829 = vst [vmem:[#allocation10_spill] sm:$0xff] %v12071_v61  ;;  %v4063_v21 = vadd.f32 %v11749_v48, %v4024_v51  ;;  %9598 = vmatprep.mubr.msk.f32.mxu0 %vm360_vm1, %v12069_v42  ;;  %v4164_v5 = vsel %vm4093_vm8, %v4061_v62, %v4132_v26  ;;  %vm4092_vm9 = vcmp.ge.f32.partialorder %v4060_v56, 0.0  ;;  %9549 = vmatmul.mubr.msk.f32.gmra.mxu1 %vm360_vm1, %v12080_v24  ;;  %v3915_v39 = vpop.f32.mrf.mxu0  ;;  %v12108_v31 = vld [vmem:[#allocation2 + $0xc9] sm:$0xff] }
 0x216   : > { %v4131_v44 = vmul.f32 %v11763_v17, %v4060_v56  ;;  %9599 = vmatmul.mubr.msk.f32.gmra.mxu0 %vm360_vm1, %v12071_v61  ;;  %4196 = vst.msk [vmem:[#allocation2 + $0xf9] sm:$0xff] %vm360_vm1, %v4164_v5  ;;  %v4062_v6 = vadd.f32 %v11749_v48, %v4023_v2  ;;  %v4026_v14 = vmul.f32 %v11730_v41, %v3987_v28  ;;  %v12092_v38 = vld [vmem:[#allocation2 + $0xc1] sm:$0xff] }
 0x217   : > { %vm4095_vm10 = vcmp.ge.f32.partialorder %v4063_v21, 0.0  ;;  %v4134_v47 = vmul.f32 %v11763_v17, %v4063_v21  ;;  %v12094_v10 = vld [vmem:[#allocation2 + $0xc0] sm:$0xff]  ;;  %v12096_v35 = vld [vmem:[#allocation2 + $0xc8] sm:$0xff]  ;;  %v3986_v53 = vadd.f32 %v3915_v39, %v11996_v4  ;;  %v9515_v20 = vpop.f32.mrf.mxu0  ;;  %9551 = vmatprep.mubr.msk.f32.mxu1 %vm360_vm1, %v12092_v38  ;;  %v13833_v4 = vld [vmem:[#allocation3_spill] sm:$0xff] }
 0x218   : > { %13830 = vst [vmem:[#allocation12_spill] sm:$0xff] %v12094_v10  ;;  %13831 = vst [vmem:[#allocation11_spill] sm:$0xff] %v12096_v35  ;;  %v4163_v62 = vsel %vm4092_vm9, %v4060_v56, %v4131_v44  ;;  %9601 = vmatprep.mubr.msk.f32.mxu0 %vm360_vm1, %v12094_v10  ;;  %vm4094_vm11 = vcmp.ge.f32.partialorder %v4062_v6, 0.0  ;;  %v4133_v3 = vmul.f32 %v11763_v17, %v4062_v6 }
 0x219   : > { %4195 = vst.msk [vmem:[#allocation2 + $0xf1] sm:$0xff] %vm360_vm1, %v4163_v62  ;;  %v4166_v51 = vsel %vm4095_vm10, %v4063_v21, %v4134_v47  ;;  %v4065_v26 = vadd.f32 %v11749_v48, %v4026_v14  ;;  %v3212_v56 = vadd.f32 %v13833_v4, %v11733_v23  ;;  %v4025_v59 = vmul.f32 %v11730_v41, %v3986_v53  ;;  %v3925_v21 = vpop.f32.mrf.mxu0 }
 0x21a   : > { %4198 = vst.msk [vmem:[#allocation2 + $0x111] sm:$0xff] %vm360_vm1, %v4166_v51  ;;  %v3989_v2 = vadd.f32 %v9515_v20, %v12035_v30  ;;  %9552 = vmatmul.mubr.msk.f32.gmra.mxu1 %vm360_vm1, %v12108_v31  ;;  %9602 = vmatmul.mubr.msk.f32.gmra.mxu0 %vm360_vm1, %v12096_v35  ;;  %v4165_v28 = vsel %vm4094_vm11, %v4062_v6, %v4133_v3  ;;  %v12120_v39 = vld [vmem:[#allocation2 + $0xd9] sm:$0xff]  ;;  %v9474_v6 = vpop.f32.mrf.mxu1  ;;  %v13838_v3 = vld [vmem:[#allocation30_spill] sm:$0xff] }
 0x21b   : > { %vm4097_vm12 = vcmp.ge.f32.partialorder %v4065_v26, 0.0  ;;  %v4136_v5 = vmul.f32 %v11763_v17, %v4065_v26  ;;  %v3988_v44 = vadd.f32 %v3925_v21, %v3598_v25  ;;  %v12122_v23 = vld [vmem:[#allocation2 + $0xd8] sm:$0xff]  ;;  %v12124_v47 = vld [vmem:[#allocation2 + $0xe0] sm:$0xff]  ;;  %v3600_v30 = vadd.f32 %v12044_v18, %v3210_v1  ;;  %4197 = vst.msk [vmem:[#allocation2 + $0x109] sm:$0xff] %vm360_vm1, %v4165_v28  ;;  %v9518_v62 = vpop.f32.mrf.mxu0  ;;  %9554 = vmatprep.mubr.msk.f32.mxu1 %vm360_vm1, %v12120_v39  ;;  %v13839_v28 = vld [vmem:[#allocation6_spill] sm:$0xff] }
 0x21c   : > { %13834 = vst [vmem:[#allocation13_spill] sm:$0xff] %v12122_v23  ;;  %13835 = vst [vmem:[#allocation15_spill] sm:$0xff] %v12124_v47  ;;  %v4064_v14 = vadd.f32 %v11749_v48, %v4025_v59  ;;  %v4028_v13 = vmul.f32 %v11730_v41, %v3989_v2  ;;  %9604 = vmatprep.mubr.msk.f32.mxu0 %vm360_vm1, %v12122_v23  ;;  %v3603_v25 = vadd.f32 %v9471_v58, %v3213_v11  ;;  %v12135_v18 = vld [vmem:[#allocation2 + $0xe1] sm:$0xff] }
 0x21d   : > { %v4168_v53 = vsel %vm4097_vm12, %v4065_v26, %v4136_v5  ;;  %v4027_v20 = vmul.f32 %v11730_v41, %v3988_v44  ;;  %v3991_v51 = vadd.f32 %v9518_v62, %v3601_v36  ;;  %13836 = vst [vmem:[#allocation14_spill] sm:$0xff] %v12135_v18  ;;  %v13837_v1 = vld [vmem:[#allocation5_spill] sm:$0xff]  ;;  %v3935_v58 = vpop.f32.mrf.mxu0  ;;  %v3602_v36 = vadd.f32 %v3555_v8, %v3212_v56  ;;  %v13840_v5 = vld [vmem:[#allocation4_spill] sm:$0xff]  ;;  %v3565_v8 = vpop.f32.mrf.mxu1 }
 0x21e   : > { %v3215_v4 = vadd.f32 %v13838_v3, %v13837_v1  ;;  %4200 = vst.msk [vmem:[#allocation2 + $0x129] sm:$0xff] %vm360_vm1, %v4168_v53  ;;  %vm4096_vm13 = vcmp.ge.f32.partialorder %v4064_v14, 0.0  ;;  %v4135_v59 = vmul.f32 %v11763_v17, %v4064_v14  ;;  %v4067_v2 = vadd.f32 %v11749_v48, %v4028_v13  ;;  %9555 = vmatmul.mubr.msk.f32.gmra.mxu1 %vm360_vm1, %v12135_v18 }
 0x21f   : > { %9605 = vmatmul.mubr.msk.f32.gmra.mxu0 %vm360_vm1, %v12124_v47  ;;  %v4066_v11 = vadd.f32 %v11749_v48, %v4027_v20  ;;  %v4030_v26 = vmul.f32 %v11730_v41, %v3991_v51  ;;  %v3990_v21 = vadd.f32 %v3935_v58, %v3600_v30  ;;  %v3214_v44 = vadd.f32 %v13840_v5, %v13839_v28  ;;  %v9521_v53 = vpop.f32.mrf.mxu0  ;;  %v12165_v20 = vld [vmem:[#allocation2 + $0xf9] sm:$0xff] }
 0x220   : > { %v4167_v62 = vsel %vm4096_vm13, %v4064_v14, %v4135_v59  ;;  %vm4099_vm14 = vcmp.ge.f32.partialorder %v4067_v2, 0.0  ;;  %v4138_v13 = vmul.f32 %v11763_v17, %v4067_v2  ;;  %v12151_v1 = vld [vmem:[#allocation2 + $0xf1] sm:$0xff]  ;;  %v3605_v51 = vadd.f32 %v9474_v6, %v3215_v4 }
 0x221   : > { %v12153_v3 = vld [vmem:[#allocation2 + $0xf0] sm:$0xff]  ;;  %v12155_v18 = vld [vmem:[#allocation2 + $0xf8] sm:$0xff]  ;;  %4199 = vst.msk [vmem:[#allocation2 + $0x121] sm:$0xff] %vm360_vm1, %v4167_v62  ;;  %vm4098_vm15 = vcmp.ge.f32.partialorder %v4066_v11, 0.0  ;;  %v4137_v56 = vmul.f32 %v11763_v17, %v4066_v11  ;;  %v4069_v30 = vadd.f32 %v11749_v48, %v4030_v26  ;;  %v4029_v14 = vmul.f32 %v11730_v41, %v3990_v21  ;;  %9557 = vmatprep.mubr.msk.f32.mxu1 %vm360_vm1, %v12151_v1  ;;  %v3945_v26 = vpop.f32.mrf.mxu0 }
 0x222   : > { %13841 = vst [vmem:[#allocation16_spill] sm:$0xff] %v12153_v3  ;;  %13842 = vst [vmem:[#allocation18_spill] sm:$0xff] %v12155_v18  ;;  %9607 = vmatprep.mubr.msk.f32.mxu0 %vm360_vm1, %v12153_v3  ;;  %v4170_v59 = vsel %vm4099_vm14, %v4067_v2, %v4138_v13  ;;  %v3993_v58 = vadd.f32 %v9521_v53, %v3603_v25  ;;  %9558 = vmatmul.mubr.msk.f32.gmra.mxu1 %vm360_vm1, %v12165_v20  ;;  %v12175_v62 = vld [vmem:[#allocation2 + $0x109] sm:$0xff] }
 0x223   : > { %9608 = vmatmul.mubr.msk.f32.gmra.mxu0 %vm360_vm1, %v12155_v18  ;;  %4202 = vst.msk [vmem:[#allocation2 + $0x141] sm:$0xff] %vm360_vm1, %v4170_v59  ;;  %v4169_v21 = vsel %vm4098_vm15, %v4066_v11, %v4137_v56  ;;  %vm4101_vm2 = vcmp.ge.f32.partialorder %v4069_v30, 0.0  ;;  %v4140_v28 = vmul.f32 %v11763_v17, %v4069_v30  ;;  %v4068_v5 = vadd.f32 %v11749_v48, %v4029_v14  ;;  %v12177_v6 = vld [vmem:[#allocation2 + $0x108] sm:$0xff]  ;;  %v12179_v25 = vld [vmem:[#allocation2 + $0x110] sm:$0xff]  ;;  %v9524_v53 = vpop.f32.mrf.mxu0 }
 0x224   : > { %13843 = vst [vmem:[#allocation17_spill] sm:$0xff] %v12177_v6  ;;  %13844 = vst [vmem:[#allocation19_spill] sm:$0xff] %v12179_v25  ;;  %v3604_v4 = vadd.f32 %v3565_v8, %v3214_v44  ;;  %v4032_v2 = vmul.f32 %v11730_v41, %v3993_v58  ;;  %v3992_v13 = vadd.f32 %v3945_v26, %v3602_v36  ;;  %9560 = vmatprep.mubr.msk.f32.mxu1 %vm360_vm1, %v12175_v62  ;;  %v12188_v59 = vld [vmem:[#allocation2 + $0x111] sm:$0xff] }
 0x225   : > { %4201 = vst.msk [vmem:[#allocation2 + $0x139] sm:$0xff] %vm360_vm1, %v4169_v21  ;;  %9610 = vmatprep.mubr.msk.f32.mxu0 %vm360_vm1, %v12177_v6  ;;  %v4172_v11 = vsel %vm4101_vm2, %v4069_v30, %v4140_v28  ;;  %vm4100_vm3 = vcmp.ge.f32.partialorder %v4068_v5, 0.0  ;;  %v4139_v56 = vmul.f32 %v11763_v17, %v4068_v5  ;;  %v3995_v14 = vadd.f32 %v9524_v53, %v3605_v51  ;;  %v3955_v8 = vpop.f32.mrf.mxu0 }
 0x226   : > { %4204 = vst.msk [vmem:[#allocation2 + $0x159] sm:$0xff] %vm360_vm1, %v4172_v11  ;;  %v4071_v44 = vadd.f32 %v11749_v48, %v4032_v2  ;;  %v4031_v36 = vmul.f32 %v11730_v41, %v3992_v13  ;;  %9561 = vmatmul.mubr.msk.f32.gmra.mxu1 %vm360_vm1, %v12188_v59  ;;  %v3994_v26 = vadd.f32 %v3955_v8, %v3604_v4  ;;  %v12213_v4 = vld [vmem:[#allocation2 + $0x129] sm:$0xff] }
 0x227   : > { %9611 = vmatmul.mubr.msk.f32.gmra.mxu0 %vm360_vm1, %v12179_v25  ;;  %v4171_v30 = vsel %vm4100_vm3, %v4068_v5, %v4139_v56  ;;  %v4034_v58 = vmul.f32 %v11730_v41, %v3995_v14 }
 0x228   : > { %4203 = vst.msk [vmem:[#allocation2 + $0x151] sm:$0xff] %vm360_vm1, %v4171_v30  ;;  %vm4103_vm4 = vcmp.ge.f32.partialorder %v4071_v44, 0.0  ;;  %v4142_v51 = vmul.f32 %v11763_v17, %v4071_v44  ;;  %v4070_v21 = vadd.f32 %v11749_v48, %v4031_v36  ;;  %v12201_v28 = vld [vmem:[#allocation2 + $0x121] sm:$0xff]  ;;  %v4033_v5 = vmul.f32 %v11730_v41, %v3994_v26 }
 0x229   : > { %v12203_v2 = vld [vmem:[#allocation2 + $0x120] sm:$0xff]  ;;  %v12205_v13 = vld [vmem:[#allocation2 + $0x128] sm:$0xff]  ;;  %v4073_v53 = vadd.f32 %v11749_v48, %v4034_v58  ;;  %9563 = vmatprep.mubr.msk.f32.mxu1 %vm360_vm1, %v12201_v28 }
 0x22a   : > { %13845 = vst [vmem:[#allocation21_spill] sm:$0xff] %v12203_v2  ;;  %13846 = vst [vmem:[#allocation20_spill] sm:$0xff] %v12205_v13  ;;  %9613 = vmatprep.mubr.msk.f32.mxu0 %vm360_vm1, %v12203_v2  ;;  %v4174_v11 = vsel %vm4103_vm4, %v4071_v44, %v4142_v51  ;;  %vm4102_vm5 = vcmp.ge.f32.partialorder %v4070_v21, 0.0  ;;  %v4141_v56 = vmul.f32 %v11763_v17, %v4070_v21  ;;  %9564 = vmatmul.mubr.msk.f32.gmra.mxu1 %vm360_vm1, %v12213_v4 }
 0x22b   : > { %9614 = vmatmul.mubr.msk.f32.gmra.mxu0 %vm360_vm1, %v12205_v13  ;;  %4206 = vst.msk [vmem:[#allocation2 + $0x171] sm:$0xff] %vm360_vm1, %v4174_v11  ;;  %vm4105_vm6 = vcmp.ge.f32.partialorder %v4073_v53, 0.0  ;;  %v4144_v41 = vmul.f32 %v11763_v17, %v4073_v53  ;;  %v4072_v14 = vadd.f32 %v11749_v48, %v4033_v5  ;;  %v12235_v48 = vld [vmem:[#allocation2 + $0x141] sm:$0xff] }
 0x22c   : > { %v12223_v36 = vld [vmem:[#allocation2 + $0x139] sm:$0xff]  ;;  %v4173_v30 = vsel %vm4102_vm5, %v4070_v21, %v4141_v56 }
 0x22d   : > { %v12225_v8 = vld [vmem:[#allocation2 + $0x138] sm:$0xff]  ;;  %v12227_v44 = vld [vmem:[#allocation2 + $0x140] sm:$0xff]  ;;  %9566 = vmatprep.mubr.msk.f32.mxu1 %vm360_vm1, %v12223_v36  ;;  %4205 = vst.msk [vmem:[#allocation2 + $0x169] sm:$0xff] %vm360_vm1, %v4173_v30  ;;  %v4176_v58 = vsel %vm4105_vm6, %v4073_v53, %v4144_v41  ;;  %vm4104_vm7 = vcmp.ge.f32.partialorder %v4072_v14, 0.0  ;;  %v4143_v26 = vmul.f32 %v11763_v17, %v4072_v14 }
 0x22e   : > { %13847 = vst [vmem:[#allocation22_spill] sm:$0xff] %v12225_v8  ;;  %13848 = vst [vmem:[#allocation24_spill] sm:$0xff] %v12227_v44  ;;  %9616 = vmatprep.mubr.msk.f32.mxu0 %vm360_vm1, %v12225_v8  ;;  %9567 = vmatmul.mubr.msk.f32.gmra.mxu1 %vm360_vm1, %v12235_v48  ;;  %v12253_v17 = vld [vmem:[#allocation2 + $0x159] sm:$0xff]  ;;  %v4924_v53 = vld [vmem:[#allocation2 + $0x2] sm:$0xff] }
 0x22f   : > { %4208 = vst.msk [vmem:[#allocation2 + $0x189] sm:$0xff] %vm360_vm1, %v4176_v58  ;;  %9617 = vmatmul.mubr.msk.f32.gmra.mxu0 %vm360_vm1, %v12227_v44  ;;  %v4175_v51 = vsel %vm4104_vm7, %v4072_v14, %v4143_v26  ;;  %v12242_v21 = vld [vmem:[#allocation2 + $0x151] sm:$0xff] }
 0x230   : > { %v12244_v5 = vld [vmem:[#allocation2 + $0x150] sm:$0xff]  ;;  %v12246_v11 = vld [vmem:[#allocation2 + $0x158] sm:$0xff]  ;;  %4207 = vst.msk [vmem:[#allocation2 + $0x181] sm:$0xff] %vm360_vm1, %v4175_v51  ;;  %9569 = vmatprep.mubr.msk.f32.mxu1 %vm360_vm1, %v12242_v21 }
 0x231   : > { %13849 = vst [vmem:[#allocation23_spill] sm:$0xff] %v12244_v5  ;;  %13850 = vst [vmem:[#allocation25_spill] sm:$0xff] %v12246_v11  ;;  %9619 = vmatprep.mubr.msk.f32.mxu0 %vm360_vm1, %v12244_v5  ;;  %v4925_v58 = vld [vmem:[#allocation2 + $0xa] sm:$0xff] }
 0x232   : > { %9570 = vmatmul.mubr.msk.f32.gmra.mxu1 %vm360_vm1, %v12253_v17  ;;  %v12269_v30 = vld [vmem:[#allocation2 + $0x171] sm:$0xff] }
 0x233   : > { %9620 = vmatmul.mubr.msk.f32.gmra.mxu0 %vm360_vm1, %v12246_v11  ;;  %13853 = vst [vmem:[#allocation28_spill] sm:$0xff] %v12269_v30 }
 0x234   : > { %v12259_v56 = vld [vmem:[#allocation2 + $0x169] sm:$0xff] }
 0x235   : > { %13851 = vst [vmem:[#allocation27_spill] sm:$0xff] %v12259_v56  ;;  %v12261_v41 = vld [vmem:[#allocation2 + $0x168] sm:$0xff]  ;;  %v12263_v14 = vld [vmem:[#allocation2 + $0x170] sm:$0xff]  ;;  %9572 = vmatprep.mubr.msk.f32.mxu1 %vm360_vm1, %v12259_v56  ;;  %v9579_v51 = vpop.f32.mrf.mxu0  ;;  %v12281_v56 = vld [vmem:[#allocation2 + $0x1a] sm:$0xff] }
 0x236   : > { %13852 = vst [vmem:[#allocation26_spill] sm:$0xff] %v12261_v41  ;;  %9622 = vmatprep.mubr.msk.f32.mxu0 %vm360_vm1, %v12261_v41  ;;  %9573 = vmatmul.mubr.msk.f32.gmra.mxu1 %vm360_vm1, %v12269_v30  ;;  %v12286_v30 = vld [vmem:[%s13518_s2 + $0x18] sm:$0xf] }
 0x237   : > { %9623 = vmatmul.mubr.msk.f32.gmra.mxu0 %vm360_vm1, %v12263_v14  ;;  %9627 = vmatprep.mubr.msk.f32.mxu1 %vm360_vm1, %v4924_v53  ;;  %v9529_v26 = vpop.f32.mrf.mxu1 }
 0x238   : > { %9677 = vmatprep.mubr.msk.f32.mxu0 %vm360_vm1, %v11854_v43  ;;  %v12291_v43 = vld [vmem:[%s13518_s2 + $0x1c] sm:$0xf]  ;;  %v12293_v53 = vadd.f32 %v9579_v51, %v9529_v26  ;;  %v12315_v26 = vld [vmem:[#allocation2 + $0x32] sm:$0xff] }
 0x239   : > { %v12363_v51 = vld [vmem:[#allocation2 + $0x92] sm:$0xff] }
 0x23a   : > { %9628 = vmatmul.mubr.msk.f32.vlgmr.msra.gmra.mxu1 %vm360_vm1, %v4925_v58  ;;  %13854 = vst [vmem:[#allocation32_spill] sm:$0xff] %v12293_v53  ;;  %v9984_v58 = vld [vmem:[%s13518_s2 + $0x10] sm:$0xf] }
 0x23b   : > { %9678 = vmatmul.mubr.msk.f32.vlgmr.msra.gmra.mxu0 %vm360_vm1, %v11856_v33  ;;  %9726 = vmatpush3.msk.msra.mxu1 %vm712_vm0, %v9984_v58  ;;  %v12305_v33 = vld [vmem:[#allocation2 + $0x22] sm:$0xff]  ;;  %v12369_v58 = vld [vmem:[#allocation2 + $0x9a] sm:$0xff]  ;;  %v12375_v53 = vld [vmem:[#allocation2 + $0xaa] sm:$0xff] }
 0x23c   : > { %9630 = vmatprep.mubr.msk.f32.mxu1 %vm360_vm1, %v12281_v56  ;;  %9680 = vmatprep.mubr.msk.f32.mxu0 %vm360_vm1, %v11898_v40  ;;  %v12327_v40 = vld [vmem:[#allocation2 + $0x4a] sm:$0xff] }
 0x23d   : > { %9776 = vmatpush3.msk.msra.mxu0 %vm712_vm0, %v11830_v16  ;;  %9825 = vmatprep.subr.msk.mxu1 %vm712_vm0, %v12286_v30  ;;  %v12321_v16 = vld [vmem:[#allocation2 + $0x3a] sm:$0xff] }
 0x23e   : > { %9875 = vmatprep.subr.msk.mxu0 %vm712_vm0, %v12291_v43  ;;  %9631 = vmatmul.mubr.msk.f32.gmra.mxu1 %vm360_vm1, %v12305_v33 }
 0x23f   : > { %9681 = vmatmul.mubr.msk.f32.gmra.mxu0 %vm360_vm1, %v11900_v50  ;;  %9633 = vmatprep.mubr.msk.f32.mxu1 %vm360_vm1, %v12315_v26  ;;  %v12333_v50 = vld [vmem:[#allocation2 + $0x52] sm:$0xff] }
 0x240   : > { %9683 = vmatprep.mubr.msk.f32.mxu0 %vm360_vm1, %v11926_v22  ;;  %v12339_v22 = vld [vmem:[#allocation2 + $0x62] sm:$0xff] }
 0x242   : > { %9634 = vmatmul.mubr.msk.f32.gmra.mxu1 %vm360_vm1, %v12321_v16 }
 0x243   : > { %9684 = vmatmul.mubr.msk.f32.gmra.mxu0 %vm360_vm1, %v11928_v27  ;;  %9636 = vmatprep.mubr.msk.f32.mxu1 %vm360_vm1, %v12327_v40  ;;  %v12345_v27 = vld [vmem:[#allocation2 + $0x6a] sm:$0xff] }
 0x244   : > { %9686 = vmatprep.mubr.msk.f32.mxu0 %vm360_vm1, %v11958_v45  ;;  %v12351_v45 = vld [vmem:[#allocation2 + $0x7a] sm:$0xff] }
 0x246   : > { %9637 = vmatmul.mubr.msk.f32.gmra.mxu1 %vm360_vm1, %v12333_v50 }
 0x247   : > { %9687 = vmatmul.mubr.msk.f32.gmra.mxu0 %vm360_vm1, %v11960_v37  ;;  %9639 = vmatprep.mubr.msk.f32.mxu1 %vm360_vm1, %v12339_v22  ;;  %v12357_v37 = vld [vmem:[#allocation2 + $0x82] sm:$0xff] }
 0x248   : > { %9689 = vmatprep.mubr.msk.f32.mxu0 %vm360_vm1, %v12001_v9 }
 0x24a   : > { %9640 = vmatmul.mubr.msk.f32.gmra.mxu1 %vm360_vm1, %v12345_v27 }
 0x24b   : > { %9690 = vmatmul.mubr.msk.f32.gmra.mxu0 %vm360_vm1, %v12003_v19  ;;  %9642 = vmatprep.mubr.msk.f32.mxu1 %vm360_vm1, %v12351_v45 }
 0x24c   : > { %9692 = vmatprep.mubr.msk.f32.mxu0 %vm360_vm1, %v12030_v57  ;;  %v12473_v57 = vld [vmem:[#allocation2 + $0x180] sm:$0xff] }
 0x24d   : > { %13855 = vst [vmem:[#allocation31_spill] sm:$0xff] %v12473_v57 }
 0x24e   : > { %9643 = vmatmul.mubr.msk.f32.gmra.mxu1 %vm360_vm1, %v12357_v37 }
 0x24f   : > { %9693 = vmatmul.mubr.msk.f32.gmra.mxu0 %vm360_vm1, %v12032_v29  ;;  %9645 = vmatprep.mubr.msk.f32.mxu1 %vm360_vm1, %v12363_v51  ;;  %v12381_v29 = vld [vmem:[#allocation2 + $0xb2] sm:$0xff] }
 0x250   : > { %9695 = vmatprep.mubr.msk.f32.mxu0 %vm360_vm1, %v12069_v42  ;;  %v12387_v42 = vld [vmem:[#allocation2 + $0xc2] sm:$0xff] }
 0x252   : > { %9646 = vmatmul.mubr.msk.f32.gmra.mxu1 %vm360_vm1, %v12369_v58 }
 0x253   : > { %9696 = vmatmul.mubr.msk.f32.gmra.mxu0 %vm360_vm1, %v12071_v61  ;;  %9648 = vmatprep.mubr.msk.f32.mxu1 %vm360_vm1, %v12375_v53  ;;  %v12393_v61 = vld [vmem:[#allocation2 + $0xca] sm:$0xff] }
 0x254   : > { %9698 = vmatprep.mubr.msk.f32.mxu0 %vm360_vm1, %v12094_v10  ;;  %v12399_v10 = vld [vmem:[#allocation2 + $0xda] sm:$0xff] }
 0x256   : > { %9649 = vmatmul.mubr.msk.f32.gmra.mxu1 %vm360_vm1, %v12381_v29 }
 0x257   : > { %9699 = vmatmul.mubr.msk.f32.gmra.mxu0 %vm360_vm1, %v12096_v35  ;;  %9651 = vmatprep.mubr.msk.f32.mxu1 %vm360_vm1, %v12387_v42  ;;  %v12405_v35 = vld [vmem:[#allocation2 + $0xe2] sm:$0xff] }
 0x258   : > { %9701 = vmatprep.mubr.msk.f32.mxu0 %vm360_vm1, %v12122_v23  ;;  %v12411_v23 = vld [vmem:[#allocation2 + $0xf2] sm:$0xff] }
 0x25a   : > { %9652 = vmatmul.mubr.msk.f32.gmra.mxu1 %vm360_vm1, %v12393_v61 }
 0x25b   : > { %9702 = vmatmul.mubr.msk.f32.gmra.mxu0 %vm360_vm1, %v12124_v47  ;;  %9654 = vmatprep.mubr.msk.f32.mxu1 %vm360_vm1, %v12399_v10  ;;  %v12417_v47 = vld [vmem:[#allocation2 + $0xfa] sm:$0xff] }
 0x25c   : > { %9704 = vmatprep.mubr.msk.f32.mxu0 %vm360_vm1, %v12153_v3  ;;  %v12423_v3 = vld [vmem:[#allocation2 + $0x10a] sm:$0xff] }
 0x25e   : > { %9655 = vmatmul.mubr.msk.f32.gmra.mxu1 %vm360_vm1, %v12405_v35 }
 0x25f   : > { %9705 = vmatmul.mubr.msk.f32.gmra.mxu0 %vm360_vm1, %v12155_v18  ;;  %9657 = vmatprep.mubr.msk.f32.mxu1 %vm360_vm1, %v12411_v23  ;;  %v12429_v18 = vld [vmem:[#allocation2 + $0x112] sm:$0xff] }
 0x260   : > { %9707 = vmatprep.mubr.msk.f32.mxu0 %vm360_vm1, %v12177_v6  ;;  %v12435_v6 = vld [vmem:[#allocation2 + $0x122] sm:$0xff] }
 0x262   : > { %9658 = vmatmul.mubr.msk.f32.gmra.mxu1 %vm360_vm1, %v12417_v47 }
 0x263   : > { %9708 = vmatmul.mubr.msk.f32.gmra.mxu0 %vm360_vm1, %v12179_v25  ;;  %9660 = vmatprep.mubr.msk.f32.mxu1 %vm360_vm1, %v12423_v3  ;;  %v12441_v25 = vld [vmem:[#allocation2 + $0x12a] sm:$0xff] }
 0x264   : > { %9710 = vmatprep.mubr.msk.f32.mxu0 %vm360_vm1, %v12203_v2  ;;  %v12447_v2 = vld [vmem:[#allocation2 + $0x13a] sm:$0xff] }
 0x266   : > { %9661 = vmatmul.mubr.msk.f32.gmra.mxu1 %vm360_vm1, %v12429_v18 }
 0x267   : > { %9711 = vmatmul.mubr.msk.f32.gmra.mxu0 %vm360_vm1, %v12205_v13  ;;  %9663 = vmatprep.mubr.msk.f32.mxu1 %vm360_vm1, %v12435_v6  ;;  %v12453_v13 = vld [vmem:[#allocation2 + $0x142] sm:$0xff] }
 0x268   : > { %9713 = vmatprep.mubr.msk.f32.mxu0 %vm360_vm1, %v12225_v8  ;;  %v12459_v8 = vld [vmem:[#allocation2 + $0x152] sm:$0xff] }
 0x26a   : > { %9664 = vmatmul.mubr.msk.f32.gmra.mxu1 %vm360_vm1, %v12441_v25 }
 0x26b   : > { %9714 = vmatmul.mubr.msk.f32.gmra.mxu0 %vm360_vm1, %v12227_v44  ;;  %9666 = vmatprep.mubr.msk.f32.mxu1 %vm360_vm1, %v12447_v2  ;;  %v12465_v44 = vld [vmem:[#allocation2 + $0x15a] sm:$0xff] }
 0x26c   : > { %9716 = vmatprep.mubr.msk.f32.mxu0 %vm360_vm1, %v12244_v5  ;;  %v12471_v5 = vld [vmem:[#allocation2 + $0x16a] sm:$0xff] }
 0x26e   : > { %9667 = vmatmul.mubr.msk.f32.gmra.mxu1 %vm360_vm1, %v12453_v13 }
 0x26f   : > { %9717 = vmatmul.mubr.msk.f32.gmra.mxu0 %vm360_vm1, %v12246_v11  ;;  %9669 = vmatprep.mubr.msk.f32.mxu1 %vm360_vm1, %v12459_v8  ;;  %v12479_v11 = vld [vmem:[#allocation2 + $0x172] sm:$0xff] }
 0x270   : > { %9719 = vmatprep.mubr.msk.f32.mxu0 %vm360_vm1, %v12261_v41  ;;  %v12481_v41 = vld [vmem:[#allocation2 + $0x188] sm:$0xff] }
 0x272   : > { %9670 = vmatmul.mubr.msk.f32.gmra.mxu1 %vm360_vm1, %v12465_v44 }
 0x273   : > { %9720 = vmatmul.mubr.msk.f32.gmra.mxu0 %vm360_vm1, %v12263_v14  ;;  %9672 = vmatprep.mubr.msk.f32.mxu1 %vm360_vm1, %v12471_v5 }
 0x274   : > { %9722 = vmatprep.mubr.msk.f32.mxu0 %vm360_vm1, %v12473_v57  ;;  %v12498_v57 = vld [vmem:[%s13518_s2 + $0x20] sm:$0xf] }
 0x276   : > { %9673 = vmatmul.mubr.msk.f32.gmra.mxu1 %vm360_vm1, %v12479_v11 }
 0x277   : > { %9723 = vmatmul.mubr.msk.f32.gmra.mxu0 %vm360_vm1, %v12481_v41  ;;  %9727 = vmatprep.mubr.msk.f32.mxu1 %vm360_vm1, %v11852_v46  ;;  %v13856_v46 = vld [vmem:[#allocation14_spill] sm:$0xff] }
 0x278   : > { %9777 = vmatprep.mubr.msk.f32.mxu0 %vm360_vm1, %v12281_v56  ;;  %v6487_v56 = vld [vmem:[#allocation2 + $0x50] sm:$0xff] }
 0x27a   : > { %9728 = vmatmul.mubr.msk.f32.vlgmr.msra.gmra.mxu1 %vm360_vm1, %v11867_v55  ;;  %v13857_v55 = vld [vmem:[#allocation27_spill] sm:$0xff] }
 0x27b   : > { %9778 = vmatmul.mubr.msk.f32.vlgmr.msra.gmra.mxu0 %vm360_vm1, %v12305_v33  ;;  %9826 = vmatpush3.msk.msra.mxu1 %vm712_vm0, %v12286_v30  ;;  %v6877_v30 = vld [vmem:[#allocation2 + $0x51] sm:$0xff]  ;;  %v6488_v33 = vld [vmem:[#allocation2 + $0x60] sm:$0xff] }
 0x27c   : > { %9730 = vmatprep.mubr.msk.f32.mxu1 %vm360_vm1, %v11896_v32  ;;  %9780 = vmatprep.mubr.msk.f32.mxu0 %vm360_vm1, %v12315_v26  ;;  %v13858_v32 = vld [vmem:[#allocation28_spill] sm:$0xff] }
 0x27d   : > { %9876 = vmatpush3.msk.msra.mxu0 %vm712_vm0, %v12291_v43  ;;  %9925 = vmatprep.subr.msk.mxu1 %vm712_vm0, %v12498_v57 }
 0x27e   : > { %9731 = vmatmul.mubr.msk.f32.gmra.mxu1 %vm360_vm1, %v11911_v34  ;;  %v12618_v34 = vld [vmem:[#allocation2 + $0x181] sm:$0xff] }
 0x27f   : > { %9781 = vmatmul.mubr.msk.f32.gmra.mxu0 %vm360_vm1, %v12321_v16  ;;  %9733 = vmatprep.mubr.msk.f32.mxu1 %vm360_vm1, %v11924_v0  ;;  %v12620_v0 = vld [vmem:[#allocation2 + $0x182] sm:$0xff] }
 0x280   : > { %9783 = vmatprep.mubr.msk.f32.mxu0 %vm360_vm1, %v12327_v40 }
 0x282   : > { %9734 = vmatmul.mubr.msk.f32.gmra.mxu1 %vm360_vm1, %v11943_v60  ;;  %v12626_v60 = vld [vmem:[#allocation2 + $0x189] sm:$0xff] }
 0x283   : > { %9784 = vmatmul.mubr.msk.f32.gmra.mxu0 %vm360_vm1, %v12333_v50  ;;  %9736 = vmatprep.mubr.msk.f32.mxu1 %vm360_vm1, %v11956_v54  ;;  %v12628_v54 = vld [vmem:[#allocation2 + $0x18a] sm:$0xff] }
 0x284   : > { %9786 = vmatprep.mubr.msk.f32.mxu0 %vm360_vm1, %v12339_v22  ;;  %13859 = vst [vmem:[#allocation33_spill] sm:$0xff] %v12628_v54 }
 0x286   : > { %9737 = vmatmul.mubr.msk.f32.gmra.mxu1 %vm360_vm1, %v11978_v52  ;;  %v6484_v52 = vld [vmem:[#allocation2 + $0x30] sm:$0xff] }
 0x287   : > { %9787 = vmatmul.mubr.msk.f32.gmra.mxu0 %vm360_vm1, %v12345_v27  ;;  %9739 = vmatprep.mubr.msk.f32.mxu1 %vm360_vm1, %v11999_v63 }
 0x288   : > { %9789 = vmatprep.mubr.msk.f32.mxu0 %vm360_vm1, %v12351_v45 }
 0x28a   : > { %9740 = vmatmul.mubr.msk.f32.gmra.mxu1 %vm360_vm1, %v12015_v12  ;;  %v6874_v12 = vld [vmem:[#allocation2 + $0x31] sm:$0xff] }
 0x28b   : > { %9790 = vmatmul.mubr.msk.f32.gmra.mxu0 %vm360_vm1, %v12357_v37  ;;  %9742 = vmatprep.mubr.msk.f32.mxu1 %vm360_vm1, %v12028_v7 }
 0x28c   : > { %9792 = vmatprep.mubr.msk.f32.mxu0 %vm360_vm1, %v12363_v51 }
 0x28e   : > { %9743 = vmatmul.mubr.msk.f32.gmra.mxu1 %vm360_vm1, %v12048_v15 }
 0x28f   : > { %9793 = vmatmul.mubr.msk.f32.gmra.mxu0 %vm360_vm1, %v12369_v58  ;;  %9745 = vmatprep.mubr.msk.f32.mxu1 %vm360_vm1, %v12067_v49 }
 0x290   : > { %9795 = vmatprep.mubr.msk.f32.mxu0 %vm360_vm1, %v12375_v53 }
 0x292   : > { %9746 = vmatmul.mubr.msk.f32.gmra.mxu1 %vm360_vm1, %v12080_v24 }
 0x293   : > { %9796 = vmatmul.mubr.msk.f32.gmra.mxu0 %vm360_vm1, %v12381_v29  ;;  %9748 = vmatprep.mubr.msk.f32.mxu1 %vm360_vm1, %v12092_v38 }
 0x294   : > { %9798 = vmatprep.mubr.msk.f32.mxu0 %vm360_vm1, %v12387_v42 }
 0x296   : > { %9749 = vmatmul.mubr.msk.f32.gmra.mxu1 %vm360_vm1, %v12108_v31 }
 0x297   : > { %9799 = vmatmul.mubr.msk.f32.gmra.mxu0 %vm360_vm1, %v12393_v61  ;;  %9751 = vmatprep.mubr.msk.f32.mxu1 %vm360_vm1, %v12120_v39 }
 0x298   : > { %9801 = vmatprep.mubr.msk.f32.mxu0 %vm360_vm1, %v12399_v10 }
 0x29a   : > { %9752 = vmatmul.mubr.msk.f32.gmra.mxu1 %vm360_vm1, %v13856_v46 }
 0x29b   : > { %9802 = vmatmul.mubr.msk.f32.gmra.mxu0 %vm360_vm1, %v12405_v35  ;;  %9754 = vmatprep.mubr.msk.f32.mxu1 %vm360_vm1, %v12151_v1 }
 0x29c   : > { %9804 = vmatprep.mubr.msk.f32.mxu0 %vm360_vm1, %v12411_v23 }
 0x29e   : > { %9755 = vmatmul.mubr.msk.f32.gmra.mxu1 %vm360_vm1, %v12165_v20 }
 0x29f   : > { %9805 = vmatmul.mubr.msk.f32.gmra.mxu0 %vm360_vm1, %v12417_v47  ;;  %9757 = vmatprep.mubr.msk.f32.mxu1 %vm360_vm1, %v12175_v62 }
 0x2a0   : > { %9807 = vmatprep.mubr.msk.f32.mxu0 %vm360_vm1, %v12423_v3 }
 0x2a2   : > { %9758 = vmatmul.mubr.msk.f32.gmra.mxu1 %vm360_vm1, %v12188_v59 }
 0x2a3   : > { %9808 = vmatmul.mubr.msk.f32.gmra.mxu0 %vm360_vm1, %v12429_v18  ;;  %9760 = vmatprep.mubr.msk.f32.mxu1 %vm360_vm1, %v12201_v28  ;;  %v6485_v18 = vld [vmem:[#allocation2 + $0x38] sm:$0xff] }
 0x2a4   : > { %9810 = vmatprep.mubr.msk.f32.mxu0 %vm360_vm1, %v12435_v6 }
 0x2a6   : > { %9761 = vmatmul.mubr.msk.f32.gmra.mxu1 %vm360_vm1, %v12213_v4 }
 0x2a7   : > { %9811 = vmatmul.mubr.msk.f32.gmra.mxu0 %vm360_vm1, %v12441_v25  ;;  %9763 = vmatprep.mubr.msk.f32.mxu1 %vm360_vm1, %v12223_v36  ;;  %v6875_v25 = vld [vmem:[#allocation2 + $0x39] sm:$0xff] }
 0x2a8   : > { %9813 = vmatprep.mubr.msk.f32.mxu0 %vm360_vm1, %v12447_v2  ;;  %v6486_v2 = vld [vmem:[#allocation2 + $0x48] sm:$0xff] }
 0x2aa   : > { %9764 = vmatmul.mubr.msk.f32.gmra.mxu1 %vm360_vm1, %v12235_v48 }
 0x2ab   : > { %9814 = vmatmul.mubr.msk.f32.gmra.mxu0 %vm360_vm1, %v12453_v13  ;;  %9766 = vmatprep.mubr.msk.f32.mxu1 %vm360_vm1, %v12242_v21  ;;  %v12638_v13 = vpop.f32.mrf.mxu1 }
 0x2ac   : > { %9816 = vmatprep.mubr.msk.f32.mxu0 %vm360_vm1, %v12459_v8  ;;  %v12640_v8 = vpop.f32.mrf.mxu0 }
 0x2ae   : > { %9767 = vmatmul.mubr.msk.f32.gmra.mxu1 %vm360_vm1, %v12253_v17 }
 0x2af   : > { %9817 = vmatmul.mubr.msk.f32.gmra.mxu0 %vm360_vm1, %v12465_v44  ;;  %9769 = vmatprep.mubr.msk.f32.mxu1 %vm360_vm1, %v13857_v55  ;;  %v6876_v44 = vld [vmem:[#allocation2 + $0x49] sm:$0xff] }
 0x2b0   : > { %9819 = vmatprep.mubr.msk.f32.mxu0 %vm360_vm1, %v12471_v5 }
 0x2b2   : > { %9770 = vmatmul.mubr.msk.f32.gmra.mxu1 %vm360_vm1, %v13858_v32 }
 0x2b3   : > { %9820 = vmatmul.mubr.msk.f32.gmra.mxu0 %vm360_vm1, %v12479_v11  ;;  %9772 = vmatprep.mubr.msk.f32.mxu1 %vm360_vm1, %v12618_v34 }
 0x2b4   : > { %9822 = vmatprep.mubr.msk.f32.mxu0 %vm360_vm1, %v12620_v0 }
 0x2b6   : > { %9773 = vmatmul.mubr.msk.f32.gmra.mxu1 %vm360_vm1, %v12626_v60 }
 0x2b7   : > { %9823 = vmatmul.mubr.msk.f32.gmra.mxu0 %vm360_vm1, %v12628_v54  ;;  %9827 = vmatprep.mubr.msk.f32.mxu1 %vm360_vm1, %v6484_v52  ;;  %v6878_v52 = vld [vmem:[#allocation2 + $0x61] sm:$0xff] }
 0x2b8   : > { %9877 = vmatprep.mubr.msk.f32.mxu0 %vm360_vm1, %v6874_v12 }
 0x2ba   : > { %9828 = vmatmul.mubr.msk.f32.vlgmr.msra.gmra.mxu1 %vm360_vm1, %v6485_v18 }
 0x2bb   : > { %9878 = vmatmul.mubr.msk.f32.vlgmr.msra.gmra.mxu0 %vm360_vm1, %v6875_v25  ;;  %9926 = vmatpush3.msk.msra.mxu1 %vm712_vm0, %v12498_v57  ;;  %v6489_v25 = vld [vmem:[#allocation2 + $0x68] sm:$0xff] }
 0x2bc   : > { %9830 = vmatprep.mubr.msk.f32.mxu1 %vm360_vm1, %v6486_v2  ;;  %9880 = vmatprep.mubr.msk.f32.mxu0 %vm360_vm1, %v6876_v44  ;;  %v9532_v5 = vpop.f32.mrf.mxu1  ;;  %v6879_v2 = vld [vmem:[#allocation2 + $0x69] sm:$0xff] }
 0x2bd   : > { %v9582_v11 = vpop.f32.mrf.mxu0 }
 0x2be   : > { %v12646_v43 = vadd.f32 %v9582_v11, %v9532_v5  ;;  %9831 = vmatmul.mubr.msk.f32.gmra.mxu1 %vm360_vm1, %v6487_v56  ;;  %v4451_v57 = vpop.f32.mrf.mxu1 }
 0x2bf   : > { %9881 = vmatmul.mubr.msk.f32.gmra.mxu0 %vm360_vm1, %v6877_v30  ;;  %9833 = vmatprep.mubr.msk.f32.mxu1 %vm360_vm1, %v6488_v33  ;;  %v4775_v12 = vpop.f32.mrf.mxu0  ;;  %v6881_v33 = vld [vmem:[#allocation2 + $0x81] sm:$0xff] }
 0x2c0   : > { %9883 = vmatprep.mubr.msk.f32.mxu0 %vm360_vm1, %v6878_v52  ;;  %v12652_v18 = vadd.f32 %v4775_v12, %v4451_v57  ;;  %v13860_v12 = vld [vmem:[#allocation7_spill] sm:$0xff] }
 0x2c1   : > { %v9535_v44 = vpop.f32.mrf.mxu1 }
 0x2c2   : > { %v9585_v54 = vpop.f32.mrf.mxu0  ;;  %9834 = vmatmul.mubr.msk.f32.gmra.mxu1 %vm360_vm1, %v6489_v25 }
 0x2c3   : > { %9884 = vmatmul.mubr.msk.f32.gmra.mxu0 %vm360_vm1, %v6879_v2  ;;  %v12656_v5 = vadd.f32 %v9585_v54, %v9535_v44  ;;  %9836 = vmatprep.mubr.msk.f32.mxu1 %vm360_vm1, %v12001_v9  ;;  %v4461_v11 = vpop.f32.mrf.mxu1 }
 0x2c4   : > { %9886 = vmatprep.mubr.msk.f32.mxu0 %vm360_vm1, %v11999_v63  ;;  %v4785_v56 = vpop.f32.mrf.mxu0 }
 0x2c5   : > { %v12662_v30 = vadd.f32 %v4785_v56, %v4461_v11  ;;  %v9538_v52 = vpop.f32.mrf.mxu1  ;;  %v13861_v11 = vld [vmem:[#allocation8_spill] sm:$0xff]  ;;  %v13862_v56 = vld [vmem:[#allocation9_spill] sm:$0xff] }
 0x2c6   : > { %v9588_v57 = vpop.f32.mrf.mxu0  ;;  %9837 = vmatmul.mubr.msk.f32.gmra.mxu1 %vm360_vm1, %v12003_v19 }
 0x2c7   : > { %9887 = vmatmul.mubr.msk.f32.gmra.mxu0 %vm360_vm1, %v6881_v33  ;;  %v12667_v54 = vadd.f32 %v9588_v57, %v9538_v52  ;;  %9839 = vmatprep.mubr.msk.f32.mxu1 %vm360_vm1, %v13860_v12  ;;  %v4471_v63 = vpop.f32.mrf.mxu1 }
 0x2c8   : > { %9889 = vmatprep.mubr.msk.f32.mxu0 %vm360_vm1, %v12028_v7  ;;  %v4795_v9 = vpop.f32.mrf.mxu0 }
 0x2c9   : > { %v12673_v25 = vadd.f32 %v4795_v9, %v4471_v63  ;;  %v9541_v2 = vpop.f32.mrf.mxu1  ;;  %v13863_v63 = vld [vmem:[#allocation10_spill] sm:$0xff]  ;;  %v13864_v9 = vld [vmem:[#allocation12_spill] sm:$0xff] }
 0x2ca   : > { %v9591_v44 = vpop.f32.mrf.mxu0  ;;  %9840 = vmatmul.mubr.msk.f32.gmra.mxu1 %vm360_vm1, %v13861_v11 }
 0x2cb   : > { %9890 = vmatmul.mubr.msk.f32.gmra.mxu0 %vm360_vm1, %v12048_v15  ;;  %v12679_v19 = vadd.f32 %v9591_v44, %v9541_v2  ;;  %9842 = vmatprep.mubr.msk.f32.mxu1 %vm360_vm1, %v13862_v56  ;;  %v4481_v7 = vpop.f32.mrf.mxu1 }
 0x2cc   : > { %9892 = vmatprep.mubr.msk.f32.mxu0 %vm360_vm1, %v12067_v49  ;;  %v4805_v33 = vpop.f32.mrf.mxu0 }
 0x2cd   : > { %v12685_v52 = vadd.f32 %v4805_v33, %v4481_v7  ;;  %v9544_v57 = vpop.f32.mrf.mxu1  ;;  %v13865_v7 = vld [vmem:[#allocation11_spill] sm:$0xff]  ;;  %v13866_v33 = vld [vmem:[#allocation13_spill] sm:$0xff] }
 0x2ce   : > { %v9594_v12 = vpop.f32.mrf.mxu0  ;;  %9843 = vmatmul.mubr.msk.f32.gmra.mxu1 %vm360_vm1, %v13863_v63 }
 0x2cf   : > { %9893 = vmatmul.mubr.msk.f32.gmra.mxu0 %vm360_vm1, %v12080_v24  ;;  %v12691_v15 = vadd.f32 %v9594_v12, %v9544_v57  ;;  %9845 = vmatprep.mubr.msk.f32.mxu1 %vm360_vm1, %v13864_v9  ;;  %v4491_v49 = vpop.f32.mrf.mxu1 }
 0x2d0   : > { %9895 = vmatprep.mubr.msk.f32.mxu0 %vm360_vm1, %v12092_v38  ;;  %v4815_v2 = vpop.f32.mrf.mxu0 }
 0x2d1   : > { %v12697_v44 = vadd.f32 %v4815_v2, %v4491_v49  ;;  %v9547_v11 = vpop.f32.mrf.mxu1  ;;  %v13867_v49 = vld [vmem:[#allocation15_spill] sm:$0xff]  ;;  %v13868_v2 = vld [vmem:[#allocation16_spill] sm:$0xff] }
 0x2d2   : > { %v9597_v56 = vpop.f32.mrf.mxu0  ;;  %9846 = vmatmul.mubr.msk.f32.gmra.mxu1 %vm360_vm1, %v13865_v7 }
 0x2d3   : > { %9896 = vmatmul.mubr.msk.f32.gmra.mxu0 %vm360_vm1, %v12108_v31  ;;  %v12703_v24 = vadd.f32 %v9597_v56, %v9547_v11  ;;  %9848 = vmatprep.mubr.msk.f32.mxu1 %vm360_vm1, %v13866_v33  ;;  %v4501_v38 = vpop.f32.mrf.mxu1 }
 0x2d4   : > { %9898 = vmatprep.mubr.msk.f32.mxu0 %vm360_vm1, %v12120_v39  ;;  %v4825_v57 = vpop.f32.mrf.mxu0 }
 0x2d5   : > { %v12709_v12 = vadd.f32 %v4825_v57, %v4501_v38  ;;  %v9550_v63 = vpop.f32.mrf.mxu1  ;;  %v13869_v38 = vld [vmem:[#allocation18_spill] sm:$0xff]  ;;  %v13870_v57 = vld [vmem:[#allocation17_spill] sm:$0xff] }
 0x2d6   : > { %v9600_v9 = vpop.f32.mrf.mxu0  ;;  %9849 = vmatmul.mubr.msk.f32.gmra.mxu1 %vm360_vm1, %v13867_v49 }
 0x2d7   : > { %9899 = vmatmul.mubr.msk.f32.gmra.mxu0 %vm360_vm1, %v13856_v46  ;;  %v12715_v31 = vadd.f32 %v9600_v9, %v9550_v63  ;;  %9851 = vmatprep.mubr.msk.f32.mxu1 %vm360_vm1, %v13868_v2  ;;  %v4511_v39 = vpop.f32.mrf.mxu1 }
 0x2d8   : > { %9901 = vmatprep.mubr.msk.f32.mxu0 %vm360_vm1, %v12151_v1  ;;  %v4835_v11 = vpop.f32.mrf.mxu0 }
 0x2d9   : > { %v12721_v56 = vadd.f32 %v4835_v11, %v4511_v39  ;;  %v13871_v39 = vld [vmem:[#allocation19_spill] sm:$0xff]  ;;  %v13872_v11 = vld [vmem:[#allocation21_spill] sm:$0xff] }
 0x2da   : > { %v9553_v7 = vpop.f32.mrf.mxu1  ;;  %v9603_v33 = vpop.f32.mrf.mxu0  ;;  %9852 = vmatmul.mubr.msk.f32.gmra.mxu1 %vm360_vm1, %v13869_v38 }
 0x2db   : > { %9902 = vmatmul.mubr.msk.f32.gmra.mxu0 %vm360_vm1, %v12165_v20  ;;  %v12727_v46 = vadd.f32 %v9603_v33, %v9553_v7  ;;  %9854 = vmatprep.mubr.msk.f32.mxu1 %vm360_vm1, %v13870_v57 }
 0x2dc   : > { %9904 = vmatprep.mubr.msk.f32.mxu0 %vm360_vm1, %v12175_v62  ;;  %v4521_v1 = vpop.f32.mrf.mxu1  ;;  %v4845_v63 = vpop.f32.mrf.mxu0 }
 0x2dd   : > { %v12733_v9 = vadd.f32 %v4845_v63, %v4521_v1  ;;  %v13873_v1 = vld [vmem:[#allocation20_spill] sm:$0xff]  ;;  %v13874_v63 = vld [vmem:[#allocation22_spill] sm:$0xff] }
 0x2de   : > { %v9556_v49 = vpop.f32.mrf.mxu1  ;;  %9855 = vmatmul.mubr.msk.f32.gmra.mxu1 %vm360_vm1, %v13871_v39 }
 0x2df   : > { %v9606_v2 = vpop.f32.mrf.mxu0  ;;  %9905 = vmatmul.mubr.msk.f32.gmra.mxu0 %vm360_vm1, %v12188_v59  ;;  %9857 = vmatprep.mubr.msk.f32.mxu1 %vm360_vm1, %v13872_v11 }
 0x2e0   : > { %v12739_v20 = vadd.f32 %v9606_v2, %v9556_v49  ;;  %9907 = vmatprep.mubr.msk.f32.mxu0 %vm360_vm1, %v12201_v28  ;;  %v4531_v62 = vpop.f32.mrf.mxu1 }
 0x2e1   : > { %v4855_v7 = vpop.f32.mrf.mxu0 }
 0x2e2   : > { %v12745_v33 = vadd.f32 %v4855_v7, %v4531_v62  ;;  %v9559_v38 = vpop.f32.mrf.mxu1  ;;  %9858 = vmatmul.mubr.msk.f32.gmra.mxu1 %vm360_vm1, %v13873_v1  ;;  %v13875_v62 = vld [vmem:[#allocation24_spill] sm:$0xff]  ;;  %v13876_v7 = vld [vmem:[#allocation23_spill] sm:$0xff] }
 0x2e3   : > { %v9609_v57 = vpop.f32.mrf.mxu0  ;;  %9908 = vmatmul.mubr.msk.f32.gmra.mxu0 %vm360_vm1, %v12213_v4  ;;  %9860 = vmatprep.mubr.msk.f32.mxu1 %vm360_vm1, %v13874_v63 }
 0x2e4   : > { %v12751_v59 = vadd.f32 %v9609_v57, %v9559_v38  ;;  %9910 = vmatprep.mubr.msk.f32.mxu0 %vm360_vm1, %v12223_v36  ;;  %v4541_v28 = vpop.f32.mrf.mxu1 }
 0x2e5   : > { %v4865_v49 = vpop.f32.mrf.mxu0 }
 0x2e6   : > { %v12757_v2 = vadd.f32 %v4865_v49, %v4541_v28  ;;  %v9562_v39 = vpop.f32.mrf.mxu1  ;;  %9861 = vmatmul.mubr.msk.f32.gmra.mxu1 %vm360_vm1, %v13875_v62  ;;  %v13877_v28 = vld [vmem:[#allocation25_spill] sm:$0xff]  ;;  %v13878_v49 = vld [vmem:[#allocation26_spill] sm:$0xff] }
 0x2e7   : > { %v9612_v11 = vpop.f32.mrf.mxu0  ;;  %9911 = vmatmul.mubr.msk.f32.gmra.mxu0 %vm360_vm1, %v12235_v48  ;;  %9863 = vmatprep.mubr.msk.f32.mxu1 %vm360_vm1, %v13876_v7 }
 0x2e8   : > { %v12763_v4 = vadd.f32 %v9612_v11, %v9562_v39  ;;  %9913 = vmatprep.mubr.msk.f32.mxu0 %vm360_vm1, %v12242_v21  ;;  %v4551_v36 = vpop.f32.mrf.mxu1 }
 0x2e9   : > { %v4875_v38 = vpop.f32.mrf.mxu0 }
 0x2ea   : > { %v12769_v57 = vadd.f32 %v4875_v38, %v4551_v36  ;;  %v9565_v1 = vpop.f32.mrf.mxu1  ;;  %9864 = vmatmul.mubr.msk.f32.gmra.mxu1 %vm360_vm1, %v13877_v28  ;;  %v13879_v36 = vld [vmem:[#allocation31_spill] sm:$0xff] }
 0x2eb   : > { %v9615_v63 = vpop.f32.mrf.mxu0  ;;  %9914 = vmatmul.mubr.msk.f32.gmra.mxu0 %vm360_vm1, %v12253_v17  ;;  %9866 = vmatprep.mubr.msk.f32.mxu1 %vm360_vm1, %v13878_v49 }
 0x2ec   : > { %v12775_v48 = vadd.f32 %v9615_v63, %v9565_v1  ;;  %9916 = vmatprep.mubr.msk.f32.mxu0 %vm360_vm1, %v13857_v55  ;;  %v4561_v21 = vpop.f32.mrf.mxu1  ;;  %v6514_v1 = vld [vmem:[#allocation2 + $0x198] sm:$0xff] }
 0x2ed   : > { %v4885_v39 = vpop.f32.mrf.mxu0  ;;  %v6904_v63 = vld [vmem:[#allocation2 + $0x199] sm:$0xff] }
 0x2ee   : > { %v12781_v11 = vadd.f32 %v4885_v39, %v4561_v21  ;;  %v9568_v62 = vpop.f32.mrf.mxu1  ;;  %9867 = vmatmul.mubr.msk.f32.gmra.mxu1 %vm360_vm1, %v12263_v14 }
 0x2ef   : > { %v9618_v7 = vpop.f32.mrf.mxu0  ;;  %9917 = vmatmul.mubr.msk.f32.gmra.mxu0 %vm360_vm1, %v13858_v32  ;;  %9869 = vmatprep.mubr.msk.f32.mxu1 %vm360_vm1, %v13879_v36  ;;  %v6515_v32 = vld [vmem:[#allocation2 + $0x1a0] sm:$0xff] }
 0x2f0   : > { %v12787_v17 = vadd.f32 %v9618_v7, %v9568_v62  ;;  %9919 = vmatprep.mubr.msk.f32.mxu0 %vm360_vm1, %v12618_v34  ;;  %v4571_v55 = vpop.f32.mrf.mxu1  ;;  %v6905_v34 = vld [vmem:[#allocation2 + $0x1a1] sm:$0xff] }
 0x2f1   : > { %v4895_v38 = vpop.f32.mrf.mxu0 }
 0x2f2   : > { %v12793_v28 = vadd.f32 %v4895_v38, %v4571_v55  ;;  %v9571_v49 = vpop.f32.mrf.mxu1  ;;  %9870 = vmatmul.mubr.msk.f32.gmra.mxu1 %vm360_vm1, %v12481_v41 }
 0x2f3   : > { %v9621_v21 = vpop.f32.mrf.mxu0  ;;  %9920 = vmatmul.mubr.msk.f32.gmra.mxu0 %vm360_vm1, %v12626_v60  ;;  %9872 = vmatprep.mubr.msk.f32.mxu1 %vm360_vm1, %v6514_v1 }
 0x2f4   : > { %v12799_v14 = vadd.f32 %v9621_v21, %v9571_v49  ;;  %9922 = vmatprep.mubr.msk.f32.mxu0 %vm360_vm1, %v6904_v63  ;;  %v4581_v39 = vpop.f32.mrf.mxu1  ;;  %v4766_v21 = vadd.f32 %v12640_v8, %v12638_v13 }
 0x2f5   : > { %v4905_v62 = vpop.f32.mrf.mxu0 }
 0x2f6   : > { %v12803_v7 = vadd.f32 %v4905_v62, %v4581_v39  ;;  %v9574_v36 = vpop.f32.mrf.mxu1  ;;  %9873 = vmatmul.mubr.msk.f32.gmra.mxu1 %vm360_vm1, %v6515_v32  ;;  %v13880_v32 = vld [vmem:[#allocation32_spill] sm:$0xff] }
 0x2f7   : > { %v9624_v55 = vpop.f32.mrf.mxu0  ;;  %9923 = vmatmul.mubr.msk.f32.gmra.mxu0 %vm360_vm1, %v6905_v34  ;;  %9927 = vmatprep.mubr.msk.f32.mxu1 %vm360_vm1, %v12315_v26 }
 0x2f8   : > { %v12807_v41 = vadd.f32 %v9624_v55, %v9574_v36  ;;  %v4591_v60 = vpop.f32.mrf.mxu1 }
 0x2f9   : > { %v4915_v38 = vpop.f32.mrf.mxu0 }
 0x2fa   : > { %v12811_v1 = vadd.f32 %v4915_v38, %v4591_v60  ;;  %v9629_v63 = vpop.f32.mrf.mxu1  ;;  %9928 = vmatmul.mubr.msk.f32.vlgmr.msra.gmra.mxu1 %vm360_vm1, %v12321_v16 }
 0x2fb   : > { %v9679_v49 = vpop.f32.mrf.mxu0  ;;  %v5283_v39 = vadd.f32 %v9629_v63, %v13880_v32  ;;  %9930 = vmatprep.mubr.msk.f32.mxu1 %vm360_vm1, %v12327_v40 }
 0x2fc   : > { %v5123_v34 = vpop.f32.mrf.mxu1 }
 0x2fd   : > { %v5513_v62 = vpop.f32.mrf.mxu0  ;;  %v12820_v26 = vadd.f32 %v9679_v49, %v5283_v39  ;;  %v5282_v36 = vadd.f32 %v5123_v34, %v4766_v21 }
 0x2fe   : > { %v9632_v55 = vpop.f32.mrf.mxu1  ;;  %9931 = vmatmul.mubr.msk.f32.gmra.mxu1 %vm360_vm1, %v12333_v50 }
 0x2ff   : > { %v9682_v60 = vpop.f32.mrf.mxu0  ;;  %v12824_v38 = vadd.f32 %v5513_v62, %v5282_v36  ;;  %v5285_v16 = vadd.f32 %v9632_v55, %v12646_v43  ;;  %9933 = vmatprep.mubr.msk.f32.mxu1 %vm360_vm1, %v12339_v22 }
 0x300   : > { %v5133_v13 = vpop.f32.mrf.mxu1 }
 0x301   : > { %v5523_v8 = vpop.f32.mrf.mxu0  ;;  %v12829_v40 = vadd.f32 %v9682_v60, %v5285_v16  ;;  %v5284_v63 = vadd.f32 %v5133_v13, %v12652_v18 }
 0x302   : > { %v9635_v49 = vpop.f32.mrf.mxu1  ;;  %9934 = vmatmul.mubr.msk.f32.gmra.mxu1 %vm360_vm1, %v12345_v27 }
 0x303   : > { %v9685_v21 = vpop.f32.mrf.mxu0  ;;  %v12834_v32 = vadd.f32 %v5523_v8, %v5284_v63  ;;  %v5287_v50 = vadd.f32 %v9635_v49, %v12656_v5  ;;  %9936 = vmatprep.mubr.msk.f32.mxu1 %vm360_vm1, %v12351_v45 }
 0x304   : > { %v5143_v43 = vpop.f32.mrf.mxu1 }
 0x305   : > { %v5533_v22 = vpop.f32.mrf.mxu0  ;;  %v12839_v39 = vadd.f32 %v9685_v21, %v5287_v50  ;;  %v5286_v34 = vadd.f32 %v5143_v43, %v12662_v30 }
 0x306   : > { %v9638_v62 = vpop.f32.mrf.mxu1  ;;  %9937 = vmatmul.mubr.msk.f32.gmra.mxu1 %vm360_vm1, %v12357_v37 }
 0x307   : > { %v9688_v18 = vpop.f32.mrf.mxu0  ;;  %v12844_v36 = vadd.f32 %v5533_v22, %v5286_v34  ;;  %v5289_v27 = vadd.f32 %v9638_v62, %v12667_v54  ;;  %9939 = vmatprep.mubr.msk.f32.mxu1 %vm360_vm1, %v12363_v51 }
 0x308   : > { %v5153_v5 = vpop.f32.mrf.mxu1 }
 0x309   : > { %v5543_v45 = vpop.f32.mrf.mxu0  ;;  %v12849_v55 = vadd.f32 %v9688_v18, %v5289_v27  ;;  %v5288_v60 = vadd.f32 %v5153_v5, %v12673_v25 }
 0x30a   : > { %v9641_v16 = vpop.f32.mrf.mxu1  ;;  %9940 = vmatmul.mubr.msk.f32.gmra.mxu1 %vm360_vm1, %v12369_v58 }
 0x30b   : > { %v9691_v30 = vpop.f32.mrf.mxu0  ;;  %v12854_v13 = vadd.f32 %v5543_v45, %v5288_v60  ;;  %v5291_v37 = vadd.f32 %v9641_v16, %v12679_v19  ;;  %9942 = vmatprep.mubr.msk.f32.mxu1 %vm360_vm1, %v12375_v53 }
 0x30c   : > { %v5163_v54 = vpop.f32.mrf.mxu1 }
 0x30d   : > { %v5553_v51 = vpop.f32.mrf.mxu0  ;;  %v12859_v8 = vadd.f32 %v9691_v30, %v5291_v37  ;;  %v5290_v63 = vadd.f32 %v5163_v54, %v12685_v52 }
 0x30e   : > { %v9644_v49 = vpop.f32.mrf.mxu1  ;;  %9943 = vmatmul.mubr.msk.f32.gmra.mxu1 %vm360_vm1, %v12381_v29 }
 0x30f   : > { %v9694_v25 = vpop.f32.mrf.mxu0  ;;  %v12864_v21 = vadd.f32 %v5553_v51, %v5290_v63  ;;  %v5293_v58 = vadd.f32 %v9644_v49, %v12691_v15  ;;  %9945 = vmatprep.mubr.msk.f32.mxu1 %vm360_vm1, %v12387_v42  ;;  %v7283_v51 = vld [vmem:[#allocation2 + $0x112] sm:$0xff] }
 0x310   : > { %v5173_v19 = vpop.f32.mrf.mxu1 }
 0x311   : > { %v5563_v53 = vpop.f32.mrf.mxu0  ;;  %v12869_v50 = vadd.f32 %v9694_v25, %v5293_v58  ;;  %v5292_v43 = vadd.f32 %v5173_v19, %v12697_v44  ;;  %v7285_v19 = vld [vmem:[#allocation2 + $0x12a] sm:$0xff] }
 0x312   : > { %v9647_v22 = vpop.f32.mrf.mxu1  ;;  %9946 = vmatmul.mubr.msk.f32.gmra.mxu1 %vm360_vm1, %v12393_v61 }
 0x313   : > { %v9697_v52 = vpop.f32.mrf.mxu0  ;;  %v12874_v34 = vadd.f32 %v5563_v53, %v5292_v43  ;;  %v5295_v29 = vadd.f32 %v9647_v22, %v12703_v24  ;;  %9948 = vmatprep.mubr.msk.f32.mxu1 %vm360_vm1, %v12399_v10  ;;  %v7286_v43 = vld [vmem:[#allocation2 + $0x13a] sm:$0xff] }
 0x314   : > { %v5183_v15 = vpop.f32.mrf.mxu1 }
 0x315   : > { %v5573_v42 = vpop.f32.mrf.mxu0  ;;  %v12879_v62 = vadd.f32 %v9697_v52, %v5295_v29  ;;  %v5294_v18 = vadd.f32 %v5183_v15, %v12709_v12 }
 0x316   : > { %v9650_v27 = vpop.f32.mrf.mxu1  ;;  %9949 = vmatmul.mubr.msk.f32.gmra.mxu1 %vm360_vm1, %v12405_v35 }
 0x317   : > { %v9700_v44 = vpop.f32.mrf.mxu0  ;;  %v12884_v5 = vadd.f32 %v5573_v42, %v5294_v18  ;;  %v5297_v61 = vadd.f32 %v9650_v27, %v12715_v31  ;;  %9951 = vmatprep.mubr.msk.f32.mxu1 %vm360_vm1, %v12411_v23  ;;  %v7287_v42 = vld [vmem:[#allocation2 + $0x142] sm:$0xff]  ;;  %v7288_v27 = vld [vmem:[#allocation2 + $0x152] sm:$0xff] }
 0x318   : > { %v5193_v24 = vpop.f32.mrf.mxu1 }
 0x319   : > { %v5583_v10 = vpop.f32.mrf.mxu0  ;;  %v12889_v45 = vadd.f32 %v9700_v44, %v5297_v61  ;;  %v5296_v60 = vadd.f32 %v5193_v24, %v12721_v56 }
 0x31a   : > { %v9653_v16 = vpop.f32.mrf.mxu1  ;;  %9952 = vmatmul.mubr.msk.f32.gmra.mxu1 %vm360_vm1, %v12417_v47 }
 0x31b   : > { %v9703_v12 = vpop.f32.mrf.mxu0  ;;  %v12894_v30 = vadd.f32 %v5583_v10, %v5296_v60  ;;  %v5299_v35 = vadd.f32 %v9653_v16, %v12727_v46  ;;  %9954 = vmatprep.mubr.msk.f32.mxu1 %vm360_vm1, %v12423_v3  ;;  %v7289_v16 = vld [vmem:[#allocation2 + $0x15a] sm:$0xff] }
 0x31c   : > { %v5203_v31 = vpop.f32.mrf.mxu1 }
 0x31d   : > { %v5593_v23 = vpop.f32.mrf.mxu0  ;;  %v12899_v37 = vadd.f32 %v9703_v12, %v5299_v35  ;;  %v5298_v54 = vadd.f32 %v5203_v31, %v12733_v9  ;;  %v7290_v35 = vld [vmem:[#allocation2 + $0x16a] sm:$0xff] }
 0x31e   : > { %v9656_v56 = vpop.f32.mrf.mxu1  ;;  %9955 = vmatmul.mubr.msk.f32.gmra.mxu1 %vm360_vm1, %v7283_v51 }
 0x31f   : > { %v9706_v63 = vpop.f32.mrf.mxu0  ;;  %v12903_v49 = vadd.f32 %v5593_v23, %v5298_v54  ;;  %v5301_v47 = vadd.f32 %v9656_v56, %v12739_v20  ;;  %9957 = vmatprep.mubr.msk.f32.mxu1 %vm360_vm1, %v12435_v6 }
 0x320   : > { %v5213_v46 = vpop.f32.mrf.mxu1 }
 0x321   : > { %v5603_v3 = vpop.f32.mrf.mxu0  ;;  %v12908_v25 = vadd.f32 %v9706_v63, %v5301_v47  ;;  %v5300_v58 = vadd.f32 %v5213_v46, %v12745_v33  ;;  %v7291_v63 = vld [vmem:[#allocation2 + $0x172] sm:$0xff] }
 0x322   : > { %v9659_v9 = vpop.f32.mrf.mxu1  ;;  %9958 = vmatmul.mubr.msk.f32.gmra.mxu1 %vm360_vm1, %v7285_v19  ;;  %v7294_v19 = vld [vmem:[#allocation2 + $0x19a] sm:$0xff] }
 0x323   : > { %v9709_v53 = vpop.f32.mrf.mxu0  ;;  %v12912_v22 = vadd.f32 %v5603_v3, %v5300_v58  ;;  %v5303_v52 = vadd.f32 %v9659_v9, %v12751_v59  ;;  %9960 = vmatprep.mubr.msk.f32.mxu1 %vm360_vm1, %v7286_v43 }
 0x324   : > { %v5223_v20 = vpop.f32.mrf.mxu1 }
 0x325   : > { %v5613_v6 = vpop.f32.mrf.mxu0  ;;  %v12916_v29 = vadd.f32 %v9709_v53, %v5303_v52  ;;  %v5302_v15 = vadd.f32 %v5223_v20, %v12757_v2  ;;  %v13881_v52 = vld [vmem:[#allocation33_spill] sm:$0xff] }
 0x326   : > { %v9662_v33 = vpop.f32.mrf.mxu1  ;;  %9961 = vmatmul.mubr.msk.f32.gmra.mxu1 %vm360_vm1, %v7287_v42 }
 0x327   : > { %v9712_v18 = vpop.f32.mrf.mxu0  ;;  %v12920_v44 = vadd.f32 %v5613_v6, %v5302_v15  ;;  %v5305_v61 = vadd.f32 %v9662_v33, %v12763_v4  ;;  %9963 = vmatprep.mubr.msk.f32.mxu1 %vm360_vm1, %v7288_v27 }
 0x328   : > { %v5233_v59 = vpop.f32.mrf.mxu1 }
 0x329   : > { %v5623_v24 = vpop.f32.mrf.mxu0  ;;  %v12924_v10 = vadd.f32 %v9712_v18, %v5305_v61  ;;  %v5304_v60 = vadd.f32 %v5233_v59, %v12769_v57 }
 0x32a   : > { %v9665_v2 = vpop.f32.mrf.mxu1  ;;  %9964 = vmatmul.mubr.msk.f32.gmra.mxu1 %vm360_vm1, %v7289_v16 }
 0x32b   : > { %v9715_v12 = vpop.f32.mrf.mxu0  ;;  %v12928_v31 = vadd.f32 %v5623_v24, %v5304_v60  ;;  %v5307_v23 = vadd.f32 %v9665_v2, %v12775_v48  ;;  %9966 = vmatprep.mubr.msk.f32.mxu1 %vm360_vm1, %v7290_v35 }
 0x32c   : > { %v5243_v4 = vpop.f32.mrf.mxu1 }
 0x32d   : > { %v5633_v54 = vpop.f32.mrf.mxu0  ;;  %v12932_v51 = vadd.f32 %v9715_v12, %v5307_v23  ;;  %v5306_v56 = vadd.f32 %v5243_v4, %v12781_v11 }
 0x32e   : > { %v9668_v57 = vpop.f32.mrf.mxu1  ;;  %9967 = vmatmul.mubr.msk.f32.gmra.mxu1 %vm360_vm1, %v7291_v63 }
 0x32f   : > { %v9718_v47 = vpop.f32.mrf.mxu0  ;;  %v12936_v46 = vadd.f32 %v5633_v54, %v5306_v56  ;;  %v5309_v3 = vadd.f32 %v9668_v57, %v12787_v17  ;;  %9969 = vmatprep.mubr.msk.f32.mxu1 %vm360_vm1, %v12620_v0  ;;  %v7295_v17 = vld [vmem:[#allocation2 + $0x1a2] sm:$0xff] }
 0x330   : > { %v5253_v48 = vpop.f32.mrf.mxu1 }
 0x331   : > { %v5643_v58 = vpop.f32.mrf.mxu0  ;;  %v12941_v9 = vadd.f32 %v9718_v47, %v5309_v3  ;;  %v5308_v53 = vadd.f32 %v5253_v48, %v12793_v28 }
 0x332   : > { %v9671_v11 = vpop.f32.mrf.mxu1  ;;  %9970 = vmatmul.mubr.msk.f32.gmra.mxu1 %vm360_vm1, %v13881_v52 }
 0x333   : > { %v9721_v43 = vpop.f32.mrf.mxu0  ;;  %v12946_v20 = vadd.f32 %v5643_v58, %v5308_v53  ;;  %v5311_v6 = vadd.f32 %v9671_v11, %v12799_v14  ;;  %9972 = vmatprep.mubr.msk.f32.mxu1 %vm360_vm1, %v7294_v19 }
 0x334   : > { %v5263_v0 = vpop.f32.mrf.mxu1 }
 0x335   : > { %v5653_v15 = vpop.f32.mrf.mxu0  ;;  %v12950_v42 = vadd.f32 %v9721_v43, %v5311_v6  ;;  %v5310_v33 = vadd.f32 %v5263_v0, %v12803_v7 }
 0x336   : > { %v9674_v18 = vpop.f32.mrf.mxu1  ;;  %9973 = vmatmul.mubr.msk.f32.gmra.mxu1 %vm360_vm1, %v7295_v17 }
 0x337   : > { %v9724_v28 = vpop.f32.mrf.mxu0  ;;  %v12954_v27 = vadd.f32 %v5653_v15, %v5310_v33  ;;  %v5313_v61 = vadd.f32 %v9674_v18, %v12807_v41 }
 0x338   : > { %v5273_v59 = vpop.f32.mrf.mxu1 }
 0x339   : > { %v5663_v24 = vpop.f32.mrf.mxu0  ;;  %v12957_v14 = vadd.f32 %v9724_v28, %v5313_v61  ;;  %v5312_v60 = vadd.f32 %v5273_v59, %v12811_v1 }
 0x33a   : > { %v9729_v16 = vpop.f32.mrf.mxu1 }
 0x33b   : > { %v12960_v2 = vpop.f32.mrf.mxu0  ;;  %v12962_v12 = vadd.f32 %v5663_v24, %v5312_v60  ;;  %v12965_v7 = vadd.f32 %v9729_v16, %v12820_v26 }
 0x33c   : > { %v5903_v35 = vpop.f32.mrf.mxu1 }
 0x33d   : > { %v12967_v23 = vpop.f32.mrf.mxu0  ;;  %v12970_v4 = vadd.f32 %v5903_v35, %v12824_v38 }
 0x33e   : > { %v9732_v41 = vpop.f32.mrf.mxu1 }
 0x33f   : > { %v12972_v54 = vpop.f32.mrf.mxu0  ;;  %v12975_v56 = vadd.f32 %v9732_v41, %v12829_v40 }
 0x340   : > { %v5913_v1 = vpop.f32.mrf.mxu1 }
 0x341   : > { %v12977_v63 = vpop.f32.mrf.mxu0  ;;  %v12980_v57 = vadd.f32 %v5913_v1, %v12834_v32 }
 0x342   : > { %v9735_v26 = vpop.f32.mrf.mxu1 }
 0x343   : > { %v12982_v47 = vpop.f32.mrf.mxu0  ;;  %v12985_v3 = vadd.f32 %v9735_v26, %v12839_v39 }
 0x344   : > { %v5923_v38 = vpop.f32.mrf.mxu1 }
 0x345   : > { %v12987_v48 = vpop.f32.mrf.mxu0  ;;  %v12990_v58 = vadd.f32 %v5923_v38, %v12844_v36 }
 0x346   : > { %v9738_v40 = vpop.f32.mrf.mxu1 }
 0x347   : > { %v12992_v19 = vpop.f32.mrf.mxu0  ;;  %v12995_v53 = vadd.f32 %v9738_v40, %v12849_v55 }
 0x348   : > { %v5933_v32 = vpop.f32.mrf.mxu1 }
 0x349   : > { %v12997_v11 = vpop.f32.mrf.mxu0  ;;  %v13000_v43 = vadd.f32 %v5933_v32, %v12854_v13 }
 0x34a   : > { %v9741_v39 = vpop.f32.mrf.mxu1 }
 0x34b   : > { %v13002_v52 = vpop.f32.mrf.mxu0  ;;  %v13005_v6 = vadd.f32 %v9741_v39, %v12859_v8 }
 0x34c   : > { %v5943_v36 = vpop.f32.mrf.mxu1 }
 0x34d   : > { %v13007_v17 = vpop.f32.mrf.mxu0  ;;  %v13010_v0 = vadd.f32 %v5943_v36, %v12864_v21 }
 0x34e   : > { %v9744_v55 = vpop.f32.mrf.mxu1 }
 0x34f   : > { %v13012_v15 = vpop.f32.mrf.mxu0  ;;  %v13015_v33 = vadd.f32 %v9744_v55, %v12869_v50 }
 0x350   : > { %v5953_v13 = vpop.f32.mrf.mxu1 }
 0x351   : > { %v13017_v18 = vpop.f32.mrf.mxu0  ;;  %v13020_v28 = vadd.f32 %v5953_v13, %v12874_v34 }
 0x352   : > { %v9747_v8 = vpop.f32.mrf.mxu1 }
 0x353   : > { %v13022_v61 = vpop.f32.mrf.mxu0  ;;  %v13025_v59 = vadd.f32 %v9747_v8, %v12879_v62 }
 0x354   : > { %v5963_v21 = vpop.f32.mrf.mxu1 }
 0x355   : > { %v13027_v24 = vpop.f32.mrf.mxu0  ;;  %v13030_v60 = vadd.f32 %v5963_v21, %v12884_v5 }
 0x356   : > { %v9750_v50 = vpop.f32.mrf.mxu1 }
 0x357   : > { %v13032_v16 = vpop.f32.mrf.mxu0  ;;  %v13035_v35 = vadd.f32 %v9750_v50, %v12889_v45 }
 0x358   : > { %13882 = vst [vmem:[#allocation35_spill] sm:$0xff] %v13032_v16  ;;  %v5973_v34 = vpop.f32.mrf.mxu1 }
 0x359   : > { %v13037_v41 = vpop.f32.mrf.mxu0  ;;  %v13040_v1 = vadd.f32 %v5973_v34, %v12894_v30 }
 0x35a   : > { %13883 = vst [vmem:[#allocation34_spill] sm:$0xff] %v13037_v41  ;;  %v9753_v62 = vpop.f32.mrf.mxu1 }
 0x35b   : > { %13884 = vst [vmem:[#allocation36_spill] sm:$0xff] %v13040_v1  ;;  %v13042_v26 = vpop.f32.mrf.mxu0  ;;  %v13045_v38 = vadd.f32 %v9753_v62, %v12899_v37 }
 0x35c   : > { %13885 = vst [vmem:[#allocation38_spill] sm:$0xff] %v13042_v26  ;;  %v5983_v5 = vpop.f32.mrf.mxu1 }
 0x35d   : > { %13886 = vst [vmem:[#allocation37_spill] sm:$0xff] %v13045_v38  ;;  %v13047_v40 = vpop.f32.mrf.mxu0  ;;  %v13050_v32 = vadd.f32 %v5983_v5, %v12903_v49 }
 0x35e   : > { %13887 = vst [vmem:[#allocation39_spill] sm:$0xff] %v13047_v40  ;;  %v9756_v45 = vpop.f32.mrf.mxu1 }
 0x35f   : > { %13888 = vst [vmem:[#allocation41_spill] sm:$0xff] %v13050_v32  ;;  %v13052_v39 = vpop.f32.mrf.mxu0  ;;  %v13055_v36 = vadd.f32 %v9756_v45, %v12908_v25 }
 0x360   : > { %13889 = vst [vmem:[#allocation40_spill] sm:$0xff] %v13052_v39  ;;  %v5993_v30 = vpop.f32.mrf.mxu1 }
 0x361   : > { %13890 = vst [vmem:[#allocation42_spill] sm:$0xff] %v13055_v36  ;;  %v13057_v55 = vpop.f32.mrf.mxu0  ;;  %v13060_v13 = vadd.f32 %v5993_v30, %v12912_v22 }
 0x362   : > { %13891 = vst [vmem:[#allocation44_spill] sm:$0xff] %v13057_v55  ;;  %v9759_v37 = vpop.f32.mrf.mxu1 }
 0x363   : > { %13892 = vst [vmem:[#allocation43_spill] sm:$0xff] %v13060_v13  ;;  %v13062_v8 = vpop.f32.mrf.mxu0  ;;  %v13065_v21 = vadd.f32 %v9759_v37, %v12916_v29 }
 0x364   : > { %13893 = vst [vmem:[#allocation45_spill] sm:$0xff] %v13062_v8  ;;  %v6003_v49 = vpop.f32.mrf.mxu1 }
 0x365   : > { %13894 = vst [vmem:[#allocation47_spill] sm:$0xff] %v13065_v21  ;;  %v13067_v50 = vpop.f32.mrf.mxu0  ;;  %v13070_v34 = vadd.f32 %v6003_v49, %v12920_v44 }
 0x366   : > { %13895 = vst [vmem:[#allocation46_spill] sm:$0xff] %v13067_v50  ;;  %v9762_v25 = vpop.f32.mrf.mxu1 }
 0x367   : > { %13896 = vst [vmem:[#allocation48_spill] sm:$0xff] %v13070_v34  ;;  %v13072_v62 = vpop.f32.mrf.mxu0  ;;  %v13075_v5 = vadd.f32 %v9762_v25, %v12924_v10 }
 0x368   : > { %13897 = vst [vmem:[#allocation50_spill] sm:$0xff] %v13072_v62  ;;  %v6013_v22 = vpop.f32.mrf.mxu1 }
 0x369   : > { %13898 = vst [vmem:[#allocation49_spill] sm:$0xff] %v13075_v5  ;;  %v13077_v45 = vpop.f32.mrf.mxu0  ;;  %v13080_v30 = vadd.f32 %v6013_v22, %v12928_v31 }
 0x36a   : > { %13899 = vst [vmem:[#allocation51_spill] sm:$0xff] %v13077_v45  ;;  %v9765_v29 = vpop.f32.mrf.mxu1 }
 0x36b   : > { %13900 = vst [vmem:[#allocation53_spill] sm:$0xff] %v13080_v30  ;;  %v13082_v37 = vpop.f32.mrf.mxu0  ;;  %v13085_v50 = vadd.f32 %v9765_v29, %v12932_v51 }
 0x36c   : > { %13901 = vst [vmem:[#allocation52_spill] sm:$0xff] %v13082_v37  ;;  %v6023_v44 = vpop.f32.mrf.mxu1 }
 0x36d   : > { %13902 = vst [vmem:[#allocation54_spill] sm:$0xff] %v13085_v50  ;;  %v13087_v49 = vpop.f32.mrf.mxu0  ;;  %v13090_v62 = vadd.f32 %v6023_v44, %v12936_v46 }
 0x36e   : > { %13903 = vst [vmem:[#allocation56_spill] sm:$0xff] %v13087_v49  ;;  %v9768_v10 = vpop.f32.mrf.mxu1 }
 0x36f   : > { %13904 = vst [vmem:[#allocation55_spill] sm:$0xff] %v13090_v62  ;;  %v13092_v25 = vpop.f32.mrf.mxu0  ;;  %v13095_v45 = vadd.f32 %v9768_v10, %v12941_v9 }
 0x370   : > { %13905 = vst [vmem:[#allocation60_spill] sm:$0xff] %v13092_v25  ;;  %v6033_v31 = vpop.f32.mrf.mxu1 }
 0x371   : > { %13906 = vst [vmem:[#allocation62_spill] sm:$0xff] %v13095_v45  ;;  %v13097_v22 = vpop.f32.mrf.mxu0  ;;  %v13100_v37 = vadd.f32 %v6033_v31, %v12946_v20 }
 0x372   : > { %13907 = vst [vmem:[#allocation64_spill] sm:$0xff] %v13097_v22  ;;  %v9771_v51 = vpop.f32.mrf.mxu1 }
 0x373   : > { %13908 = vst [vmem:[#allocation66_spill] sm:$0xff] %v13100_v37  ;;  %v13102_v29 = vpop.f32.mrf.mxu0  ;;  %v13105_v49 = vadd.f32 %v9771_v51, %v12950_v42 }
 0x374   : > { %13909 = vst [vmem:[#allocation67_spill] sm:$0xff] %v13102_v29  ;;  %v6043_v46 = vpop.f32.mrf.mxu1 }
 0x375   : > { %13910 = vst [vmem:[#allocation69_spill] sm:$0xff] %v13105_v49  ;;  %v13107_v44 = vpop.f32.mrf.mxu0  ;;  %v13110_v25 = vadd.f32 %v6043_v46, %v12954_v27 }
 0x376   : > { %13911 = vst [vmem:[#allocation70_spill] sm:$0xff] %v13107_v44  ;;  %v9774_v9 = vpop.f32.mrf.mxu1 }
 0x377   : > { %13912 = vst [vmem:[#allocation57_spill] sm:$0xff] %v13110_v25  ;;  %v13112_v10 = vpop.f32.mrf.mxu0  ;;  %v13115_v22 = vadd.f32 %v9774_v9, %v12957_v14 }
 0x378   : > { %13913 = vst [vmem:[#allocation63_spill] sm:$0xff] %v13112_v10  ;;  %v6053_v20 = vpop.f32.mrf.mxu1 }
 0x379   : > { %13914 = vst [vmem:[#allocation72_spill] sm:$0xff] %v13115_v22  ;;  %v13117_v31 = vpop.f32.mrf.mxu0  ;;  %v13120_v29 = vadd.f32 %v6053_v20, %v12962_v12 }
 0x37a   : > { %13915 = vst [vmem:[#allocation59_spill] sm:$0xff] %v13117_v31  ;;  %v9829_v42 = vpop.f32.mrf.mxu1 }
 0x37b   : > { %13916 = vst [vmem:[#allocation58_spill] sm:$0xff] %v13120_v29  ;;  %v9879_v51 = vpop.f32.mrf.mxu0 }
 0x37c   : > { %v6683_v49 = vpop.f32.mrf.mxu1 }
 0x37d   : > { %v7073_v37 = vpop.f32.mrf.mxu0 }
 0x37e   : > { %v9832_v44 = vpop.f32.mrf.mxu1 }
 0x37f   : > { %v9882_v27 = vpop.f32.mrf.mxu0 }
 0x380   : > { %v6693_v45 = vpop.f32.mrf.mxu1 }
 0x381   : > { %v13124_v10 = vpop.f32.mrf.mxu0 }
 0x382   : > { %v9835_v46 = vpop.f32.mrf.mxu1 }
 0x383   : > { %v13130_v31 = vpop.f32.mrf.mxu0 }
 0x384   : > { %v13122_v25 = vpop.f32.mrf.mxu1 }
 0x385   : > { %v13136_v29 = vpop.f32.mrf.mxu0 }
 0x386   : > { %v13126_v14 = vpop.f32.mrf.mxu1 }
 0x387   : > { %v13142_v50 = vpop.f32.mrf.mxu0 }
 0x388   : > { %v13128_v9 = vpop.f32.mrf.mxu1 }
 0x389   : > { %v13148_v34 = vpop.f32.mrf.mxu0 }
 0x38a   : > { %v13132_v12 = vpop.f32.mrf.mxu1 }
 0x38b   : > { %v13154_v55 = vpop.f32.mrf.mxu0 }
 0x38c   : > { %v13134_v20 = vpop.f32.mrf.mxu1 }
 0x38d   : > { %v13160_v36 = vpop.f32.mrf.mxu0 }
 0x38e   : > { %v13138_v22 = vpop.f32.mrf.mxu1 }
 0x38f   : > { %v13166_v26 = vpop.f32.mrf.mxu0 }
 0x390   : > { %v13140_v62 = vpop.f32.mrf.mxu1 }
 0x392   : > { %v13144_v30 = vpop.f32.mrf.mxu1 }
 0x394   : > { %v13146_v5 = vpop.f32.mrf.mxu1 }
 0x395   : > { %13917 = vst [vmem:[#allocation73_spill] sm:$0xff] %v13146_v5 }
 0x396   : > { %v13150_v8 = vpop.f32.mrf.mxu1 }
 0x397   : > { %13918 = vst [vmem:[#allocation75_spill] sm:$0xff] %v13150_v8  ;;  %v13172_v8 = vpop.f32.mrf.mxu0 }
 0x398   : > { %v13152_v21 = vpop.f32.mrf.mxu1 }
 0x399   : > { %13919 = vst [vmem:[#allocation76_spill] sm:$0xff] %v13152_v21 }
 0x39a   : > { %v13156_v13 = vpop.f32.mrf.mxu1 }
 0x39b   : > { %13920 = vst [vmem:[#allocation61_spill] sm:$0xff] %v13156_v13  ;;  %v13178_v13 = vpop.f32.mrf.mxu0 }
 0x39c   : > { %v13158_v39 = vpop.f32.mrf.mxu1  ;;  %13928 = vst [vmem:[#allocation79_spill] sm:$0xff] %v13178_v13 }
 0x39d   : > { %13921 = vst [vmem:[#allocation65_spill] sm:$0xff] %v13158_v39 }
 0x39e   : > { %v13162_v40 = vpop.f32.mrf.mxu1 }
 0x39f   : > { %13922 = vst [vmem:[#allocation68_spill] sm:$0xff] %v13162_v40  ;;  %v13184_v40 = vpop.f32.mrf.mxu0 }
 0x3a0   : > { %v13164_v32 = vpop.f32.mrf.mxu1  ;;  %13931 = vst [vmem:[#allocation89_spill] sm:$0xff] %v13184_v40 }
 0x3a1   : > { %13923 = vst [vmem:[#allocation71_spill] sm:$0xff] %v13164_v32 }
 0x3a2   : > { %v13168_v38 = vpop.f32.mrf.mxu1 }
 0x3a3   : > { %13924 = vst [vmem:[#allocation74_spill] sm:$0xff] %v13168_v38  ;;  %v13190_v38 = vpop.f32.mrf.mxu0 }
 0x3a4   : > { %v13170_v41 = vpop.f32.mrf.mxu1  ;;  %13934 = vst [vmem:[#allocation85_spill] sm:$0xff] %v13190_v38 }
 0x3a5   : > { %13925 = vst [vmem:[#allocation77_spill] sm:$0xff] %v13170_v41 }
 0x3a6   : > { %v13174_v21 = vpop.f32.mrf.mxu1 }
 0x3a7   : > { %13926 = vst [vmem:[#allocation80_spill] sm:$0xff] %v13174_v21  ;;  %v6453_v21 = vadd.f32 %v12960_v2, %v12965_v7 }
 0x3a8   : > { %v13176_v1 = vpop.f32.mrf.mxu1 }
 0x3a9   : > { %13927 = vst [vmem:[#allocation78_spill] sm:$0xff] %v13176_v1  ;;  %v6843_v13 = vadd.f32 %v9829_v42, %v6453_v21  ;;  %v13217_v21 = vld [vmem:[%s13524_s8] ss:$0 sm:$0xff] }
 0x3aa   : > { %v13180_v39 = vpop.f32.mrf.mxu1 }
 0x3ab   : > { %13929 = vst [vmem:[#allocation81_spill] sm:$0xff] %v13180_v39  ;;  %v6452_v39 = vadd.f32 %v12967_v23, %v12970_v4  ;;  %v7233_v2 = vadd.f32 %v9879_v51, %v6843_v13  ;;  %v6457_v23 = vadd.f32 %v12982_v47, %v12985_v3  ;;  %v6458_v51 = vadd.f32 %v12997_v11, %v13000_v43 }
 0x3ac   : > { %v13182_v5 = vpop.f32.mrf.mxu1 }
 0x3ad   : > { %13930 = vst [vmem:[#allocation82_spill] sm:$0xff] %v13182_v5  ;;  %v13200_v5 = vpop.f32.mrf.mxu0 }
 0x3ae   : > { %v13186_v32 = vpop.f32.mrf.mxu1 }
 0x3af   : > { %13932 = vst [vmem:[#allocation83_spill] sm:$0xff] %v13186_v32  ;;  %v6842_v32 = vadd.f32 %v6683_v49, %v6452_v39  ;;  %v6456_v49 = vadd.f32 %v12987_v48, %v12990_v58 }
 0x3b0   : > { %v13188_v16 = vpop.f32.mrf.mxu1 }
 0x3b1   : > { %13933 = vst [vmem:[#allocation84_spill] sm:$0xff] %v13188_v16  ;;  %v6455_v16 = vadd.f32 %v12972_v54, %v12975_v56  ;;  %v7232_v54 = vadd.f32 %v7073_v37, %v6842_v32  ;;  %v6846_v48 = vadd.f32 %v13122_v25, %v6456_v49  ;;  %v9985_v25 = vld [vmem:[%s10178_s29 + $0x8] sm:$0xff] }
 0x3b2   : > { %v13192_v41 = vpop.f32.mrf.mxu1 }
 0x3b3   : > { %13935 = vst [vmem:[#allocation86_spill] sm:$0xff] %v13192_v41  ;;  %v6454_v41 = vadd.f32 %v12977_v63, %v12980_v57  ;;  %v6845_v7 = vadd.f32 %v9832_v44, %v6455_v16  ;;  %v6847_v63 = vadd.f32 %v9835_v46, %v6457_v23  ;;  %v13224_v57 = vld [vmem:[%s13525_s9] ss:$0 sm:$0xff] }
 0x3b4   : > { %v13196_v1 = vpop.f32.mrf.mxu1 }
 0x3b5   : > { %13936 = vst [vmem:[#allocation87_spill] sm:$0xff] %v13196_v1  ;;  %v13210_v1 = vpop.f32.mrf.mxu0  ;;  %v6844_v56 = vadd.f32 %v6693_v45, %v6454_v41  ;;  %v7235_v3 = vadd.f32 %v9882_v27, %v6845_v7  ;;  %v6459_v41 = vadd.f32 %v12992_v19, %v12995_v53  ;;  %v7237_v27 = vadd.f32 %v13130_v31, %v6847_v63 }
 0x3b6   : > { %v13202_v40 = vpop.f32.mrf.mxu1  ;;  %v6461_v31 = vadd.f32 %v13002_v52, %v13005_v6  ;;  %v6848_v7 = vadd.f32 %v13128_v9, %v6458_v51  ;;  %v6460_v63 = vadd.f32 %v13007_v17, %v13010_v0  ;;  %v6463_v17 = vadd.f32 %v13012_v15, %v13015_v33  ;;  %v9989_v51 = vld [vmem:[%s10178_s29 + $0x28] sm:$0xff] }
 0x3b7   : > { %v13226_v16 = vpop.f32.mrf.mxu0  ;;  %v7234_v45 = vadd.f32 %v13124_v10, %v6844_v56  ;;  %v6849_v46 = vadd.f32 %v13126_v14, %v6459_v41  ;;  %v7236_v14 = vadd.f32 %v13136_v29, %v6846_v48  ;;  %v9988_v48 = vld [vmem:[%s10178_s29 + $0x10] sm:$0xff] }
 0x3b8   : > { %v13206_v38 = vpop.f32.mrf.mxu1  ;;  %v6851_v6 = vadd.f32 %v13132_v12, %v6461_v31  ;;  %v7238_v0 = vadd.f32 %v13148_v34, %v6848_v7  ;;  %v6853_v33 = vadd.f32 %v13138_v22, %v6463_v17  ;;  %v9991_v7 = vld [vmem:[%s10178_s29 + $0x38] sm:$0xff] }
 0x3b9   : > { %v13246_v53 = vpop.f32.mrf.mxu0  ;;  %v7239_v52 = vadd.f32 %v13142_v50, %v6849_v46  ;;  %v6850_v50 = vadd.f32 %v13134_v20, %v6460_v63  ;;  %v9992_v63 = vld [vmem:[%s10178_s29 + $0x30] sm:$0xff] }
 0x3ba   : > { %v9929_v4 = vpop.f32.mrf.mxu1  ;;  %v7241_v15 = vadd.f32 %v13154_v55, %v6851_v6 }
 0x3bb   : > { %v7623_v39 = vadd.f32 %v9929_v4, %v7233_v2  ;;  %v9986_v4 = vld [vmem:[%s10178_s29] sm:$0xff]  ;;  %v13264_v9 = vpop.f32.mrf.mxu0 }
 0x3bc   : > { %v7463_v47 = vpop.f32.mrf.mxu1 }
 0x3bd   : > { %v7662_v13 = vmul.f32 %v13217_v21, %v7623_v39  ;;  %v7622_v32 = vadd.f32 %v7463_v47, %v7232_v54  ;;  %v9987_v47 = vld [vmem:[%s10178_s29 + $0x18] sm:$0xff]  ;;  %v13284_v20 = vpop.f32.mrf.mxu0 }
 0x3be   : > { %v9932_v58 = vpop.f32.mrf.mxu1 }
 0x3bf   : > { %v7701_v37 = vadd.f32 %v13224_v57, %v7662_v13  ;;  %v7661_v44 = vmul.f32 %v13217_v21, %v7622_v32  ;;  %v7625_v42 = vadd.f32 %v9932_v58, %v7235_v3 }
 0x3c0   : > { %v7473_v19 = vpop.f32.mrf.mxu1 }
 0x3c1   : > { %v7733_v10 = vadd.f32 %v9985_v25, %v7701_v37  ;;  %v7700_v2 = vadd.f32 %v13224_v57, %v7661_v44  ;;  %v7664_v11 = vmul.f32 %v13217_v21, %v7625_v42  ;;  %v7624_v43 = vadd.f32 %v7473_v19, %v7234_v45 }
 0x3c2   : > { %v9935_v23 = vpop.f32.mrf.mxu1  ;;  %v6462_v42 = vadd.f32 %v13017_v18, %v13020_v28  ;;  %v6465_v18 = vadd.f32 %v13022_v61, %v13025_v59  ;;  %v7240_v28 = vadd.f32 %v13160_v36, %v6850_v50  ;;  %v7243_v61 = vadd.f32 %v13166_v26, %v6853_v33  ;;  %v13938_v26 = vld [vmem:[#allocation73_spill] sm:$0xff] }
 0x3c3   : > { %7765 = vst.msk [vmem:[%s13244_s25 + $0x8] sm:$0xff] %vm360_vm1, %v7733_v10  ;;  %v7732_v54 = vadd.f32 %v9986_v4, %v7700_v2  ;;  %v7703_v56 = vadd.f32 %v13224_v57, %v7664_v11  ;;  %v7663_v39 = vmul.f32 %v13217_v21, %v7624_v43  ;;  %v7627_v49 = vadd.f32 %v9935_v23, %v7237_v27  ;;  %v9990_v10 = vld [vmem:[%s10178_s29 + $0x20] sm:$0xff] }
 0x3c4   : > { %v7483_v29 = vpop.f32.mrf.mxu1  ;;  %v6852_v55 = vadd.f32 %v13140_v62, %v6462_v42  ;;  %v6855_v59 = vadd.f32 %v13144_v30, %v6465_v18  ;;  %v13304_v62 = vpop.f32.mrf.mxu0  ;;  %v13944_v42 = vld [vmem:[#allocation38_spill] sm:$0xff]  ;;  %v13945_v33 = vld [vmem:[#allocation89_spill] sm:$0xff] }
 0x3c5   : > { %7764 = vst.msk [vmem:[%s13244_s25] sm:$0xff] %vm360_vm1, %v7732_v54  ;;  %v7735_v3 = vadd.f32 %v9987_v47, %v7703_v56  ;;  %v7702_v13 = vadd.f32 %v13224_v57, %v7663_v39  ;;  %v7666_v32 = vmul.f32 %v13217_v21, %v7627_v49  ;;  %v7626_v41 = vadd.f32 %v7483_v29, %v7236_v14  ;;  %v13937_v39 = vld [vmem:[#allocation35_spill] sm:$0xff] }
 0x3c6   : > { %v9938_v12 = vpop.f32.mrf.mxu1  ;;  %v6464_v14 = vadd.f32 %v13027_v24, %v13030_v60  ;;  %v6467_v24 = vadd.f32 %v13937_v39, %v13035_v35  ;;  %v7242_v60 = vadd.f32 %v13172_v8, %v6852_v55  ;;  %v13941_v35 = vld [vmem:[#allocation79_spill] sm:$0xff]  ;;  %v13324_v50 = vpop.f32.mrf.mxu0  ;;  %v13952_v39 = vld [vmem:[#allocation40_spill] sm:$0xff] }
 0x3c7   : > { %7767 = vst.msk [vmem:[%s13244_s25 + $0x18] sm:$0xff] %vm360_vm1, %v7735_v3  ;;  %v7734_v58 = vadd.f32 %v9988_v48, %v7702_v13  ;;  %v7705_v45 = vadd.f32 %v13224_v57, %v7666_v32  ;;  %v7665_v37 = vmul.f32 %v13217_v21, %v7626_v41  ;;  %v7629_v44 = vadd.f32 %v9938_v12, %v7239_v52  ;;  %v13939_v3 = vld [vmem:[#allocation36_spill] sm:$0xff]  ;;  %v13940_v13 = vld [vmem:[#allocation34_spill] sm:$0xff]  ;;  %v13942_v8 = vld [vmem:[#allocation75_spill] sm:$0xff] }
 0x3c8   : > { %v7493_v34 = vpop.f32.mrf.mxu1  ;;  %v6854_v30 = vadd.f32 %v13938_v26, %v6464_v14  ;;  %v6466_v32 = vadd.f32 %v13940_v13, %v13939_v3  ;;  %v7245_v41 = vadd.f32 %v13941_v35, %v6855_v59  ;;  %v6857_v17 = vadd.f32 %v13942_v8, %v6467_v24  ;;  %v9993_v12 = vld [vmem:[%s10178_s29 + $0x48] sm:$0xff]  ;;  %v13344_v59 = vpop.f32.mrf.mxu0  ;;  %v13953_v26 = vld [vmem:[#allocation65_spill] sm:$0xff]  ;;  %v13954_v3 = vld [vmem:[#allocation43_spill] sm:$0xff] }
 0x3c9   : > { %7766 = vst.msk [vmem:[%s13244_s25 + $0x10] sm:$0xff] %vm360_vm1, %v7734_v58  ;;  %v7737_v27 = vadd.f32 %v9989_v51, %v7705_v45  ;;  %v7704_v46 = vadd.f32 %v13224_v57, %v7665_v37  ;;  %v7668_v19 = vmul.f32 %v13217_v21, %v7629_v44  ;;  %v7628_v25 = vadd.f32 %v7493_v34, %v7238_v0  ;;  %v13943_v44 = vld [vmem:[#allocation37_spill] sm:$0xff]  ;;  %v13946_v51 = vld [vmem:[#allocation76_spill] sm:$0xff] }
 0x3ca   : > { %v9941_v22 = vpop.f32.mrf.mxu1  ;;  %v7244_v34 = vadd.f32 %v13945_v33, %v6854_v30  ;;  %v13955_v13 = vld [vmem:[#allocation44_spill] sm:$0xff] }
 0x3cb   : > { %7769 = vst.msk [vmem:[%s13244_s25 + $0x28] sm:$0xff] %vm360_vm1, %v7737_v27  ;;  %v7736_v2 = vadd.f32 %v9990_v10, %v7704_v46  ;;  %v7707_v11 = vadd.f32 %v13224_v57, %v7668_v19  ;;  %v7667_v43 = vmul.f32 %v13217_v21, %v7628_v25  ;;  %v7631_v31 = vadd.f32 %v9941_v22, %v7241_v15  ;;  %v9994_v19 = vld [vmem:[%s10178_s29 + $0x40] sm:$0xff]  ;;  %v13948_v10 = vld [vmem:[#allocation39_spill] sm:$0xff] }
 0x3cc   : > { %v7503_v36 = vpop.f32.mrf.mxu1  ;;  %v6469_v15 = vadd.f32 %v13944_v42, %v13943_v44  ;;  %v6856_v27 = vadd.f32 %v13946_v51, %v6466_v32  ;;  %v13947_v22 = vld [vmem:[#allocation41_spill] sm:$0xff]  ;;  %v6470_v32 = vadd.f32 %v13955_v13, %v13954_v3 }
 0x3cd   : > { %7768 = vst.msk [vmem:[%s13244_s25 + $0x20] sm:$0xff] %vm360_vm1, %v7736_v2  ;;  %v7739_v23 = vadd.f32 %v9991_v7, %v7707_v11  ;;  %v7706_v4 = vadd.f32 %v13224_v57, %v7667_v43  ;;  %v7670_v54 = vmul.f32 %v13217_v21, %v7631_v31  ;;  %v7630_v56 = vadd.f32 %v7503_v36, %v7240_v28  ;;  %v13949_v11 = vld [vmem:[#allocation85_spill] sm:$0xff]  ;;  %v9995_v36 = vld [vmem:[%s10178_s29 + $0x58] sm:$0xff] }
 0x3ce   : > { %v9944_v49 = vpop.f32.mrf.mxu1  ;;  %v6468_v2 = vadd.f32 %v13948_v10, %v13947_v22  ;;  %v7247_v43 = vadd.f32 %v13949_v11, %v6857_v17  ;;  %v13950_v31 = vld [vmem:[#allocation61_spill] sm:$0xff]  ;;  %v13364_v17 = vpop.f32.mrf.mxu0 }
 0x3cf   : > { %7771 = vst.msk [vmem:[%s13244_s25 + $0x38] sm:$0xff] %vm360_vm1, %v7739_v23  ;;  %v7738_v52 = vadd.f32 %v9992_v63, %v7706_v4  ;;  %v7709_v6 = vadd.f32 %v13224_v57, %v7670_v54  ;;  %v7669_v29 = vmul.f32 %v13217_v21, %v7630_v56  ;;  %v7633_v47 = vadd.f32 %v9944_v49, %v7243_v61  ;;  %v13951_v56 = vld [vmem:[#allocation42_spill] sm:$0xff]  ;;  %v9996_v63 = vld [vmem:[%s10178_s29 + $0x50] sm:$0xff]  ;;  %v13958_v44 = vld [vmem:[#allocation45_spill] sm:$0xff] }
 0x3d0   : > { %v7513_v0 = vpop.f32.mrf.mxu1  ;;  %v6859_v14 = vadd.f32 %v13950_v31, %v6469_v15  ;;  %v6471_v24 = vadd.f32 %v13952_v39, %v13951_v56  ;;  %v6858_v30 = vadd.f32 %v13953_v26, %v6468_v2  ;;  %v13959_v15 = vld [vmem:[#allocation71_spill] sm:$0xff]  ;;  %v9998_v51 = vld [vmem:[%s10178_s29 + $0x60] sm:$0xff]  ;;  %v13384_v11 = vpop.f32.mrf.mxu0 }
 0x3d1   : > { %7770 = vst.msk [vmem:[%s13244_s25 + $0x30] sm:$0xff] %vm360_vm1, %v7738_v52  ;;  %v7741_v48 = vadd.f32 %v9993_v12, %v7709_v6  ;;  %v7708_v58 = vadd.f32 %v13224_v57, %v7669_v29  ;;  %v7672_v45 = vmul.f32 %v13217_v21, %v7633_v47  ;;  %v7632_v37 = vadd.f32 %v7513_v0, %v7242_v60  ;;  %v9997_v0 = vld [vmem:[%s10178_s29 + $0x68] sm:$0xff] }
 0x3d2   : > { %v9947_v46 = vpop.f32.mrf.mxu1  ;;  %v7246_v60 = vadd.f32 %v13200_v5, %v6856_v27  ;;  %v7249_v35 = vadd.f32 %v13210_v1, %v6859_v14  ;;  %v13956_v5 = vld [vmem:[#allocation68_spill] sm:$0xff]  ;;  %v7248_v1 = vadd.f32 %v13226_v16, %v6858_v30  ;;  %v6860_v33 = vadd.f32 %v13959_v15, %v6470_v32  ;;  %v13962_v16 = vld [vmem:[#allocation74_spill] sm:$0xff]  ;;  %v9918_v13 = vpop.f32.mrf.mxu0 }
 0x3d3   : > { %7773 = vst.msk [vmem:[%s13244_s25 + $0x48] sm:$0xff] %vm360_vm1, %v7741_v48  ;;  %v7740_v25 = vadd.f32 %v9994_v19, %v7708_v58  ;;  %v7711_v18 = vadd.f32 %v13224_v57, %v7672_v45  ;;  %v7671_v28 = vmul.f32 %v13217_v21, %v7632_v37  ;;  %v7635_v55 = vadd.f32 %v9947_v46, %v7245_v41  ;;  %v13957_v37 = vld [vmem:[#allocation47_spill] sm:$0xff]  ;;  %v10001_v32 = vld [vmem:[%s10178_s29 + $0x88] sm:$0xff] }
 0x3d4   : > { %v7523_v61 = vpop.f32.mrf.mxu1  ;;  %v6861_v41 = vadd.f32 %v13956_v5, %v6471_v24  ;;  %v6473_v42 = vadd.f32 %v13958_v44, %v13957_v37  ;;  %v10000_v24 = vld [vmem:[%s10178_s29 + $0x70] sm:$0xff]  ;;  %v10002_v44 = vld [vmem:[%s10178_s29 + $0x80] sm:$0xff] }
 0x3d5   : > { %7772 = vst.msk [vmem:[%s13244_s25 + $0x40] sm:$0xff] %vm360_vm1, %v7740_v25  ;;  %v7743_v7 = vadd.f32 %v9995_v36, %v7711_v18  ;;  %v7710_v23 = vadd.f32 %v13224_v57, %v7671_v28  ;;  %v7674_v4 = vmul.f32 %v13217_v21, %v7635_v55  ;;  %v7634_v54 = vadd.f32 %v7523_v61, %v7244_v34  ;;  %v13960_v18 = vld [vmem:[#allocation48_spill] sm:$0xff]  ;;  %v13961_v28 = vld [vmem:[#allocation46_spill] sm:$0xff] }
 0x3d6   : > { %v9950_v49 = vpop.f32.mrf.mxu1  ;;  %v6472_v55 = vadd.f32 %v13961_v28, %v13960_v18  ;;  %v7251_v22 = vadd.f32 %v13246_v53, %v6861_v41  ;;  %v6863_v10 = vadd.f32 %v13962_v16, %v6473_v42  ;;  %v7250_v53 = vadd.f32 %v13264_v9, %v6860_v33  ;;  %v13968_v9 = vld [vmem:[#allocation80_spill] sm:$0xff]  ;;  %v7203_v18 = vpop.f32.mrf.mxu0 }
 0x3d7   : > { %7775 = vst.msk [vmem:[%s13244_s25 + $0x58] sm:$0xff] %vm360_vm1, %v7743_v7  ;;  %v7742_v52 = vadd.f32 %v9996_v63, %v7710_v23  ;;  %v7713_v6 = vadd.f32 %v13224_v57, %v7674_v4  ;;  %v7673_v29 = vmul.f32 %v13217_v21, %v7634_v54  ;;  %v7637_v47 = vadd.f32 %v9950_v49, %v7247_v43  ;;  %v9999_v43 = vld [vmem:[%s10178_s29 + $0x78] sm:$0xff]  ;;  %v13963_v7 = vld [vmem:[#allocation49_spill] sm:$0xff]  ;;  %v13964_v23 = vld [vmem:[#allocation50_spill] sm:$0xff] }
 0x3d8   : > { %v7533_v8 = vpop.f32.mrf.mxu1  ;;  %v6475_v4 = vadd.f32 %v13964_v23, %v13963_v7  ;;  %v13965_v54 = vld [vmem:[#allocation77_spill] sm:$0xff]  ;;  %v10003_v28 = vld [vmem:[%s10178_s29 + $0x98] sm:$0xff]  ;;  %v10004_v7 = vld [vmem:[%s10178_s29 + $0x90] sm:$0xff] }
 0x3d9   : > { %7774 = vst.msk [vmem:[%s13244_s25 + $0x50] sm:$0xff] %vm360_vm1, %v7742_v52  ;;  %v7745_v12 = vadd.f32 %v9997_v0, %v7713_v6  ;;  %v7712_v48 = vadd.f32 %v13224_v57, %v7673_v29  ;;  %v7676_v58 = vmul.f32 %v13217_v21, %v7637_v47  ;;  %v7636_v45 = vadd.f32 %v7533_v8, %v7246_v60  ;;  %v13966_v63 = vld [vmem:[#allocation53_spill] sm:$0xff]  ;;  %v13967_v52 = vld [vmem:[#allocation51_spill] sm:$0xff]  ;;  %v13969_v0 = vld [vmem:[#allocation54_spill] sm:$0xff] }
 0x3da   : > { %v9953_v34 = vpop.f32.mrf.mxu1  ;;  %v6862_v56 = vadd.f32 %v13965_v54, %v6472_v55  ;;  %v6474_v6 = vadd.f32 %v13967_v52, %v13966_v63  ;;  %v7253_v29 = vadd.f32 %v13284_v20, %v6863_v10  ;;  %v6865_v47 = vadd.f32 %v13968_v9, %v6475_v4  ;;  %v10005_v63 = vld [vmem:[%s10178_s29 + $0xa8] sm:$0xff] }
 0x3db   : > { %7777 = vst.msk [vmem:[%s13244_s25 + $0x68] sm:$0xff] %vm360_vm1, %v7745_v12  ;;  %v7744_v27 = vadd.f32 %v9998_v51, %v7712_v48  ;;  %v7715_v46 = vadd.f32 %v13224_v57, %v7676_v58  ;;  %v7675_v19 = vmul.f32 %v13217_v21, %v7636_v45  ;;  %v7639_v25 = vadd.f32 %v9953_v34, %v7249_v35  ;;  %v13970_v12 = vld [vmem:[#allocation52_spill] sm:$0xff]  ;;  %v13971_v58 = vld [vmem:[#allocation78_spill] sm:$0xff]  ;;  %v13972_v34 = vld [vmem:[#allocation55_spill] sm:$0xff] }
 0x3dc   : > { %v7543_v2 = vpop.f32.mrf.mxu1  ;;  %v6477_v48 = vadd.f32 %v13970_v12, %v13969_v0  ;;  %v7252_v20 = vadd.f32 %v13304_v62, %v6862_v56  ;;  %v6864_v45 = vadd.f32 %v13971_v58, %v6474_v6  ;;  %v13973_v51 = vld [vmem:[#allocation56_spill] sm:$0xff]  ;;  %v13974_v62 = vld [vmem:[#allocation81_spill] sm:$0xff]  ;;  %v13978_v56 = vld [vmem:[#allocation66_spill] sm:$0xff] }
 0x3dd   : > { %7776 = vst.msk [vmem:[%s13244_s25 + $0x60] sm:$0xff] %vm360_vm1, %v7744_v27  ;;  %v7747_v31 = vadd.f32 %v9999_v43, %v7715_v46  ;;  %v7714_v14 = vadd.f32 %v13224_v57, %v7675_v19  ;;  %v7678_v61 = vmul.f32 %v13217_v21, %v7639_v25  ;;  %v7638_v36 = vadd.f32 %v7543_v2, %v7248_v1  ;;  %v13975_v2 = vld [vmem:[#allocation62_spill] sm:$0xff]  ;;  %v13976_v43 = vld [vmem:[#allocation60_spill] sm:$0xff]  ;;  %v13984_v58 = vld [vmem:[#allocation57_spill] sm:$0xff] }
 0x3de   : > { %v9956_v39 = vpop.f32.mrf.mxu1  ;;  %v6476_v27 = vadd.f32 %v13973_v51, %v13972_v34  ;;  %v7255_v46 = vadd.f32 %v13324_v50, %v6865_v47  ;;  %v6867_v19 = vadd.f32 %v13974_v62, %v6477_v48  ;;  %v7254_v50 = vadd.f32 %v13344_v59, %v6864_v45  ;;  %v13980_v59 = vld [vmem:[#allocation83_spill] sm:$0xff]  ;;  %v13981_v47 = vld [vmem:[#allocation69_spill] sm:$0xff]  ;;  %v13985_v45 = vld [vmem:[#allocation70_spill] sm:$0xff] }
 0x3df   : > { %7779 = vst.msk [vmem:[%s13244_s25 + $0x78] sm:$0xff] %vm360_vm1, %v7747_v31  ;;  %v7746_v60 = vadd.f32 %v10000_v24, %v7714_v14  ;;  %v7717_v26 = vadd.f32 %v13224_v57, %v7678_v61  ;;  %v7677_v30 = vmul.f32 %v13217_v21, %v7638_v36  ;;  %v7641_v49 = vadd.f32 %v9956_v39, %v7251_v22  ;;  %v13977_v14 = vld [vmem:[#allocation82_spill] sm:$0xff]  ;;  %v13979_v39 = vld [vmem:[#allocation64_spill] sm:$0xff] }
 0x3e0   : > { %v7553_v3 = vpop.f32.mrf.mxu1  ;;  %v6479_v31 = vadd.f32 %v13976_v43, %v13975_v2  ;;  %v6866_v61 = vadd.f32 %v13977_v14, %v6476_v27  ;;  %v6478_v24 = vadd.f32 %v13979_v39, %v13978_v56  ;;  %v13987_v62 = vld [vmem:[#allocation72_spill] sm:$0xff]  ;;  %v13990_v14 = vld [vmem:[#allocation58_spill] sm:$0xff] }
 0x3e1   : > { %7778 = vst.msk [vmem:[%s13244_s25 + $0x70] sm:$0xff] %vm360_vm1, %v7746_v60  ;;  %v7749_v35 = vadd.f32 %v10001_v32, %v7717_v26  ;;  %v7716_v5 = vadd.f32 %v13224_v57, %v7677_v30  ;;  %v7680_v41 = vmul.f32 %v13217_v21, %v7641_v49  ;;  %v7640_v8 = vadd.f32 %v7553_v3, %v7250_v53  ;;  %v9921_v49 = vpop.f32.mrf.mxu0  ;;  %v13982_v3 = vld [vmem:[#allocation67_spill] sm:$0xff] }
 0x3e2   : > { %v9959_v37 = vpop.f32.mrf.mxu1  ;;  %v7257_v60 = vadd.f32 %v13364_v17, %v6867_v19  ;;  %v6869_v26 = vadd.f32 %v13980_v59, %v6479_v31  ;;  %v6481_v32 = vadd.f32 %v13982_v3, %v13981_v47  ;;  %v7256_v17 = vadd.f32 %v13384_v11, %v6866_v61  ;;  %v13988_v19 = vld [vmem:[#allocation63_spill] sm:$0xff] }
 0x3e3   : > { %7781 = vst.msk [vmem:[%s13244_s25 + $0x88] sm:$0xff] %vm360_vm1, %v7749_v35  ;;  %v7748_v42 = vadd.f32 %v10002_v44, %v7716_v5  ;;  %v7719_v1 = vadd.f32 %v13224_v57, %v7680_v41  ;;  %v7679_v15 = vmul.f32 %v13217_v21, %v7640_v8  ;;  %v7643_v33 = vadd.f32 %v9959_v37, %v7253_v29  ;;  %v13983_v35 = vld [vmem:[#allocation84_spill] sm:$0xff]  ;;  %v10006_v8 = vld [vmem:[%s10178_s29 + $0xa0] sm:$0xff]  ;;  %v13991_v61 = vld [vmem:[#allocation59_spill] sm:$0xff] }
 0x3e4   : > { %v7563_v25 = vpop.f32.mrf.mxu1  ;;  %v6868_v5 = vadd.f32 %v13983_v35, %v6478_v24  ;;  %v6480_v37 = vadd.f32 %v13985_v45, %v13984_v58  ;;  %v7259_v44 = vadd.f32 %v9918_v13, %v6869_v26 }
 0x3e5   : > { %7780 = vst.msk [vmem:[%s13244_s25 + $0x80] sm:$0xff] %vm360_vm1, %v7748_v42  ;;  %v7751_v55 = vadd.f32 %v10003_v28, %v7719_v1  ;;  %v7718_v22 = vadd.f32 %v13224_v57, %v7679_v15  ;;  %v7682_v16 = vmul.f32 %v13217_v21, %v7643_v33  ;;  %v7642_v10 = vadd.f32 %v7563_v25, %v7252_v20  ;;  %v13986_v42 = vld [vmem:[#allocation86_spill] sm:$0xff]  ;;  %v7213_v15 = vpop.f32.mrf.mxu0  ;;  %v10007_v33 = vld [vmem:[%s10178_s29 + $0xb8] sm:$0xff]  ;;  %v13989_v28 = vld [vmem:[#allocation87_spill] sm:$0xff] }
 0x3e6   : > { %v9962_v36 = vpop.f32.mrf.mxu1  ;;  %v6871_v11 = vadd.f32 %v13986_v42, %v6481_v32  ;;  %v6483_v25 = vadd.f32 %v13988_v19, %v13987_v62  ;;  %v7258_v13 = vadd.f32 %v7203_v18, %v6868_v5  ;;  %v10012_v5 = vld [vmem:[%s10178_s29 + $0xd0] sm:$0xff]  ;;  %v10014_v42 = vld [vmem:[%s10178_s29 + $0xe0] sm:$0xff] }
 0x3e7   : > { %7783 = vst.msk [vmem:[%s13244_s25 + $0x98] sm:$0xff] %vm360_vm1, %v7751_v55  ;;  %v7750_v23 = vadd.f32 %v10004_v7, %v7718_v22  ;;  %v7721_v4 = vadd.f32 %v13224_v57, %v7682_v16  ;;  %v7681_v53 = vmul.f32 %v13217_v21, %v7642_v10  ;;  %v7645_v54 = vadd.f32 %v9962_v36, %v7255_v46  ;;  %v9924_v16 = vpop.f32.mrf.mxu0  ;;  %v10008_v10 = vld [vmem:[%s10178_s29 + $0xb0] sm:$0xff] }
 0x3e8   : > { %v7573_v30 = vpop.f32.mrf.mxu1  ;;  %v6870_v55 = vadd.f32 %v13989_v28, %v6480_v37  ;;  %v6482_v36 = vadd.f32 %v13991_v61, %v13990_v14  ;;  %v7261_v7 = vadd.f32 %v9921_v49, %v6871_v11  ;;  %v6873_v18 = vadd.f32 %v13202_v40, %v6483_v25  ;;  %v10010_v40 = vld [vmem:[%s10178_s29 + $0xc0] sm:$0xff] }
 0x3e9   : > { %7782 = vst.msk [vmem:[%s13244_s25 + $0x90] sm:$0xff] %vm360_vm1, %v7750_v23  ;;  %v7753_v52 = vadd.f32 %v10005_v63, %v7721_v4  ;;  %v7720_v6 = vadd.f32 %v13224_v57, %v7681_v53  ;;  %v7684_v29 = vmul.f32 %v13217_v21, %v7645_v54  ;;  %v7644_v9 = vadd.f32 %v7573_v30, %v7254_v50  ;;  %v10009_v4 = vld [vmem:[%s10178_s29 + $0xc8] sm:$0xff]  ;;  %v7223_v26 = vpop.f32.mrf.mxu0 }
 0x3ea   : > { %v9965_v41 = vpop.f32.mrf.mxu1  ;;  %v7260_v24 = vadd.f32 %v7213_v15, %v6870_v55 }
 0x3eb   : > { %7785 = vst.msk [vmem:[%s13244_s25 + $0xa8] sm:$0xff] %vm360_vm1, %v7753_v52  ;;  %v7752_v0 = vadd.f32 %v10006_v8, %v7720_v6  ;;  %v7723_v12 = vadd.f32 %v13224_v57, %v7684_v29  ;;  %v7683_v48 = vmul.f32 %v13217_v21, %v7644_v9  ;;  %v7647_v20 = vadd.f32 %v9965_v41, %v7257_v60 }
 0x3ec   : > { %v7583_v1 = vpop.f32.mrf.mxu1  ;;  %v6872_v60 = vadd.f32 %v13206_v38, %v6482_v36  ;;  %v7263_v6 = vadd.f32 %v9924_v16, %v6873_v18  ;;  %v10011_v38 = vld [vmem:[%s10178_s29 + $0xd8] sm:$0xff] }
 0x3ed   : > { %7784 = vst.msk [vmem:[%s13244_s25 + $0xa0] sm:$0xff] %vm360_vm1, %v7752_v0  ;;  %v7755_v34 = vadd.f32 %v10007_v33, %v7723_v12  ;;  %v7722_v51 = vadd.f32 %v13224_v57, %v7683_v48  ;;  %v7686_v27 = vmul.f32 %v13217_v21, %v7647_v20  ;;  %v7646_v46 = vadd.f32 %v7583_v1, %v7256_v17  ;;  %v10013_v20 = vld [vmem:[%s10178_s29 + $0xe8] sm:$0xff]  ;;  %v10015_v33 = vld [vmem:[%s10178_s29 + $0xf8] sm:$0xff] }
 0x3ee   : > { %v9968_v22 = vpop.f32.mrf.mxu1  ;;  %v7262_v17 = vadd.f32 %v7223_v26, %v6872_v60 }
 0x3ef   : > { %7787 = vst.msk [vmem:[%s13244_s25 + $0xb8] sm:$0xff] %vm360_vm1, %v7755_v34  ;;  %v7754_v2 = vadd.f32 %v10008_v10, %v7722_v51  ;;  %v7725_v43 = vadd.f32 %v13224_v57, %v7686_v27  ;;  %v7685_v31 = vmul.f32 %v13217_v21, %v7646_v46  ;;  %v7649_v50 = vadd.f32 %v9968_v22, %v7259_v44  ;;  %v10016_v27 = vld [vmem:[%s10178_s29 + $0xf0] sm:$0xff] }
 0x3f0   : > { %v7593_v23 = vpop.f32.mrf.mxu1 }
 0x3f1   : > { %7786 = vst.msk [vmem:[%s13244_s25 + $0xb0] sm:$0xff] %vm360_vm1, %v7754_v2  ;;  %v7757_v53 = vadd.f32 %v10009_v4, %v7725_v43  ;;  %v7724_v54 = vadd.f32 %v13224_v57, %v7685_v31  ;;  %v7688_v56 = vmul.f32 %v13217_v21, %v7649_v50  ;;  %v7648_v39 = vadd.f32 %v7593_v23, %v7258_v13 }
 0x3f2   : > { %v9971_v59 = vpop.f32.mrf.mxu1 }
 0x3f3   : > { %7789 = vst.msk [vmem:[%s13244_s25 + $0xc8] sm:$0xff] %vm360_vm1, %v7757_v53  ;;  %v7756_v30 = vadd.f32 %v10010_v40, %v7724_v54  ;;  %v7727_v49 = vadd.f32 %v13224_v57, %v7688_v56  ;;  %v7687_v63 = vmul.f32 %v13217_v21, %v7648_v39  ;;  %v7651_v52 = vadd.f32 %v9971_v59, %v7261_v7 }
 0x3f4   : > { %v7603_v29 = vpop.f32.mrf.mxu1 }
 0x3f5   : > { %7788 = vst.msk [vmem:[%s13244_s25 + $0xc0] sm:$0xff] %vm360_vm1, %v7756_v30  ;;  %v7759_v9 = vadd.f32 %v10011_v38, %v7727_v49  ;;  %v7726_v47 = vadd.f32 %v13224_v57, %v7687_v63  ;;  %v7690_v3 = vmul.f32 %v13217_v21, %v7651_v52  ;;  %v7650_v32 = vadd.f32 %v7603_v29, %v7260_v24 }
 0x3f6   : > { %v9974_v35 = vpop.f32.mrf.mxu1 }
 0x3f7   : > { %7791 = vst.msk [vmem:[%s13244_s25 + $0xd8] sm:$0xff] %vm360_vm1, %v7759_v9  ;;  %v7758_v41 = vadd.f32 %v10012_v5, %v7726_v47  ;;  %v7729_v8 = vadd.f32 %v13224_v57, %v7690_v3  ;;  %v7689_v0 = vmul.f32 %v13217_v21, %v7650_v32  ;;  %v7653_v12 = vadd.f32 %v9974_v35, %v7263_v6 }
 0x3f8   : > { %v7613_v48 = vpop.f32.mrf.mxu1 }
 0x3f9   : > { %7790 = vst.msk [vmem:[%s13244_s25 + $0xd0] sm:$0xff] %vm360_vm1, %v7758_v41  ;;  %v7761_v58 = vadd.f32 %v10013_v20, %v7729_v8  ;;  %v7728_v45 = vadd.f32 %v13224_v57, %v7689_v0  ;;  %v7692_v37 = vmul.f32 %v13217_v21, %v7653_v12  ;;  %v7652_v44 = vadd.f32 %v7613_v48, %v7262_v17 }
 0x3fb   : > { %7793 = vst.msk [vmem:[%s13244_s25 + $0xe8] sm:$0xff] %vm360_vm1, %v7761_v58  ;;  %v7760_v11 = vadd.f32 %v10014_v42, %v7728_v45  ;;  %v7731_v1 = vadd.f32 %v13224_v57, %v7692_v37  ;;  %v7691_v15 = vmul.f32 %v13217_v21, %v7652_v44 }
 0x3fd   : > { %7792 = vst.msk [vmem:[%s13244_s25 + $0xe0] sm:$0xff] %vm360_vm1, %v7760_v11  ;;  %v7763_v34 = vadd.f32 %v10015_v33, %v7731_v1  ;;  %v7730_v51 = vadd.f32 %v13224_v57, %v7691_v15 }
 0x3ff   : > { %7795 = vst.msk [vmem:[%s13244_s25 + $0xf8] sm:$0xff] %vm360_vm1, %v7763_v34  ;;  %v7762_v46 = vadd.f32 %v10016_v27, %v7730_v51 }
 0x401   : > { %7794 = vst.msk [vmem:[%s13244_s25 + $0xf0] sm:$0xff] %vm360_vm1, %v7762_v46 }
 0x402 PF: > { %s20_s13 = sadd.s32 1, %s10023_s13  }
 0x403   : > { %p17_p4 = scmp.ge.s32.totalorder %s20_s13, 4  }
 0x405   :  { %19 = sbr.rel (!%p17_p4) target bundleno = 1 (0x1), region = 109 }

</bundles_post_ra>
